<compile_context>
chip_gen: v6e
topology: v6e:2x2x1
jax: 0.10.0
libtpu: 0.0.40
codegen_flags: <defaults>
</compile_context>

<pallas_src>
import functools
import math

import jax
import jax.numpy as jnp
from jax import lax
from jax.experimental import pallas as pl
from jax.experimental.pallas import tpu as pltpu


def srgnn_kernel(a_in_ref, a_out_ref, h_ref, alias_ref, mask_ref, *refs,
                 step, last_wrap):
  (w_ei_ref, b_ei_ref, w_eo_ref, b_eo_ref, b_iah_ref, b_oah_ref,
   wi_in_ref, wi_out_ref, bi_ref, wh_ref, bh_ref,
   w1_ref, b1_ref, w2_ref, b2_ref, w3_ref,
   wn1_a_ref, wn1_h_ref, bn1_ref, wn2_ref, bn2_ref,
   out_ref) = refs

  BB, N, H = h_ref.shape          # H = lane-padded hidden (multiple of 128)
  L = mask_ref.shape[1]
  f32 = jnp.float32

  def mmb(x, w):
    # bf16 MXU operands (weights already bf16), f32 accumulation.
    return jnp.dot(x.astype(jnp.bfloat16), w, preferred_element_type=f32)

  A_in = a_in_ref[...].astype(f32)       # [BB, N, N]
  A_out = a_out_ref[...].astype(f32)
  hidden = h_ref[...].astype(f32)        # [BB, N, H]

  # --- only the weights used inside the GNN step loop are hoisted here;
  #     attention / head weights are loaded after the loop (vreg pressure). ---
  W_ei = w_ei_ref[...]; B_ei = b_ei_ref[...]
  W_eo = w_eo_ref[...]; B_eo = b_eo_ref[...]
  B_iah = b_iah_ref[...]; B_oah = b_oah_ref[...]
  Wi_in = wi_in_ref[...]; Wi_out = wi_out_ref[...]; Bi = bi_ref[...]
  Wh = wh_ref[...]; Bh = bh_ref[...]

  def mac_over_nodes(A_b, E):
    # out[b, i, :] = sum_j A_b[b, i, j] * E[b, j, :] on the VPU.  With N <= 16
    # this beats BB serialized 8x8 MXU matmuls (fill/drain dominated) and
    # leaves the MXU free for the fused gate projections.
    acc = A_b[:, :, 0:1] * E[:, 0:1, :]
    for j in range(1, N):
      acc = acc + A_b[:, :, j:j + 1] * E[:, j:j + 1, :]
    return acc

  def gnn_step(h2):                      # h2: [BB*N, H] f32
    edge_in = (mmb(h2, W_ei) + B_ei).reshape(BB, N, H)
    edge_out = (mmb(h2, W_eo) + B_eo).reshape(BB, N, H)
    in_in = (mac_over_nodes(A_in, edge_in) + B_iah).reshape(BB * N, H)
    in_out = (mac_over_nodes(A_out, edge_out) + B_oah).reshape(BB * N, H)
    # Fused (r,i,n) gate projections: one 3H-wide matmul per operand; the
    # slices below land on 128-lane (vreg) boundaries since H % 128 == 0.
    gi = mmb(in_in, Wi_in) + mmb(in_out, Wi_out) + Bi    # [BB*N, 3H]
    gh = mmb(h2, Wh) + Bh                                # [BB*N, 3H]
    r = jax.nn.sigmoid(gi[:, :H] + gh[:, :H])
    z = jax.nn.sigmoid(gi[:, H:2 * H] + gh[:, H:2 * H])
    n = jnp.tanh(gi[:, 2 * H:] + r * gh[:, 2 * H:])
    return n + z * (h2 - n)

  h2 = hidden.reshape(BB * N, H)         # free relayout (N % 8 == 0 by padding)
  if step <= 2:
    for _ in range(step):
      h2 = gnn_step(h2)
  else:
    h2 = lax.fori_loop(0, step, lambda _, h: gnn_step(h), h2, unroll=True)
  hidden = h2.reshape(BB, N, H)

  # ---- per-position node gather: select / accumulate over N on the VPU ------
  alias_idx = alias_ref[...]                               # [BB, L, 1] int32
  seq_hidden = (alias_idx == 0).astype(f32) * hidden[:, 0:1, :]
  for j in range(1, N):
    seq_hidden = seq_hidden + (alias_idx == j).astype(f32) * hidden[:, j:j + 1, :]
  # seq_hidden: [BB, L, H]

  maskf = mask_ref[...]                                    # [BB, L, 1]
  last_raw = jnp.sum(maskf, axis=1, keepdims=True).astype(jnp.int32) - 1
  # All-zero mask rows wrap to the last real position, matching the PyTorch
  # reference's index -1 behaviour (and the padded batch rows stay finite).
  last_idx = jnp.where(last_raw < 0, last_wrap, last_raw)  # [BB, 1, 1]
  pos_iota = lax.broadcasted_iota(jnp.int32, (BB, L, 1), 1)
  last_oh = (pos_iota == last_idx).astype(f32)             # [BB, L, 1]
  ht = jnp.sum(seq_hidden * last_oh, axis=1)               # [BB, H]

  # ---- soft-attention session readout ---------------------------------------
  W1 = w1_ref[...]; B1 = b1_ref[...]
  W2 = w2_ref[...]; B2 = b2_ref[...]
  W3 = w3_ref[...]                                         # [1, H] f32 (VPU)
  q1 = mmb(ht, W1) + B1                                    # [BB, H]
  q2 = (mmb(seq_hidden.reshape(BB * L, H), W2) + B2).reshape(BB, L, H)
  sig = jax.nn.sigmoid(q1[:, None, :] + q2)                # [BB, L, H]
  # alpha via broadcast-mul + lane reduce (a [H,1] matmul would waste the MXU).
  alpha = jnp.sum(sig * W3.reshape(1, 1, H), axis=-1, keepdims=True)  # [BB,L,1]
  a_vec = jnp.sum(alpha * maskf * seq_hidden, axis=1)      # [BB, H]

  # ---- dense head: Linear(2H->LH) -> ReLU -> Linear(LH->H), concat-free -----
  Wn1_a = wn1_a_ref[...]; Wn1_h = wn1_h_ref[...]; Bn1 = bn1_ref[...]
  Wn2 = wn2_ref[...]; Bn2 = bn2_ref[...]
  h1 = jnp.maximum(mmb(a_vec, Wn1_a) + mmb(ht, Wn1_h) + Bn1, 0.0)   # [BB, LH]
  out_ref[...] = (mmb(h1, Wn2) + Bn2).astype(out_ref.dtype)         # [BB, H]


def init_params(key, H, V, LH):
  std = 1.0 / math.sqrt(H)
  keys = jax.random.split(key, 20)
  u = lambda k, shape: jax.random.uniform(k, shape, jnp.float32, -std, std)
  # nn.Linear weights stored pre-transposed as [in, out] so kernel does x @ W + b.
  return dict(
      embedding=u(keys[0], (V, H)),
      w_ei=u(keys[1], (H, H)), b_ei=u(keys[2], (1, H)),
      w_eo=u(keys[3], (H, H)), b_eo=u(keys[4], (1, H)),
      b_iah=u(keys[5], (1, H)), b_oah=u(keys[6], (1, H)),
      w_i=u(keys[7], (2 * H, 3 * H)), b_i=u(keys[8], (1, 3 * H)),
      w_h=u(keys[9], (H, 3 * H)), b_h=u(keys[10], (1, 3 * H)),
      w1=u(keys[11], (H, H)), b1=u(keys[12], (1, H)),
      w2=u(keys[13], (H, H)), b2=u(keys[14], (1, H)),
      w3=u(keys[15], (1, H)),                       # linear_three (no bias)
      wn1=u(keys[16], (2 * H, LH)), bn1=u(keys[17], (1, LH)),
      wn2=u(keys[18], (LH, H)), bn2=u(keys[19], (1, H)),
  )


def _round_up(x, m):
  return ((x + m - 1) // m) * m


def _pick_block_batch(B):
  # Biggest batch block that still yields >= 2 grid programs (keeps both v7x
  # TensorCores busy); tiny batches are padded up to a single 8-row block.
  for bb in (128, 64, 32, 16, 8):
    if B >= 2 * bb:
      return bb
  return 8


def _pad2(w, rows, cols, dtype):
  r, c = w.shape
  return jnp.pad(w, ((0, rows - r), (0, cols - c))).astype(dtype)


def srgnn_forward(params, alias_inputs, A, items, mask, *, step=1):
  B, L = alias_inputs.shape
  N = A.shape[1]
  H = params['w_ei'].shape[0]
  LH = params['wn1'].shape[1]
  f32, bf16 = jnp.float32, jnp.bfloat16

  # ---- padding targets: lane-dense features, sublane-aligned node/seq dims --
  Hp = _round_up(H, 128)
  LHp = _round_up(LH, 128)
  Np = _round_up(N, 8)
  Lp = _round_up(L, 8)
  BB = _pick_block_batch(B)
  Bp = _round_up(B, BB)

  # ---- glue (plain JAX): embedding lookup + light preprocessing -------------
  # TODO(synk): the embedding gather could move in-kernel (scalar-prefetched
  # item ids + per-row DMA) to avoid materializing [B, N, H] in HBM.
  # TODO(synk): embed_dropout treated as identity (eval / inference mode).
  sess_embed = params['embedding'][items].astype(f32)                  # [B, N, H]
  sess_embed = jnp.pad(sess_embed,
                       ((0, Bp - B), (0, Np - N), (0, Hp - H))).astype(bf16)
  Af = A.astype(f32)
  A_in = jnp.pad(Af[:, :, :N],
                 ((0, Bp - B), (0, Np - N), (0, Np - N))).astype(bf16)
  A_out = jnp.pad(Af[:, :, N:2 * N],
                  ((0, Bp - B), (0, Np - N), (0, Np - N))).astype(bf16)
  alias_i = jnp.pad(alias_inputs.astype(jnp.int32),
                    ((0, Bp - B), (0, Lp - L)))[:, :, None]             # [Bp,Lp,1]
  maskf = jnp.pad(mask.astype(f32), ((0, Bp - B), (0, Lp - L)))[:, :, None]

  # ---- weight prep: lane-pad to Hp/LHp, keep (r,i,n) gates FUSED with thirds
  #      at Hp offsets, split 2H-row inputs into halves (concat-free), cast
  #      matmul weights to bf16 (biases / the VPU-side w3 row stay f32). ------
  def pad_gate_w(w):   # [H, 3H] -> [Hp, 3Hp], thirds placed at Hp offsets
    return jnp.concatenate(
        [_pad2(w[:, k * H:(k + 1) * H], Hp, Hp, bf16) for k in range(3)], axis=1)

  def pad_gate_b(b):   # [1, 3H] -> [1, 3Hp]
    return jnp.concatenate(
        [_pad2(b[:, k * H:(k + 1) * H], 1, Hp, f32) for k in range(3)], axis=1)

  wi, wh = params['w_i'], params['w_h']
  weights = [
      _pad2(params['w_ei'], Hp, Hp, bf16), _pad2(params['b_ei'], 1, Hp, f32),
      _pad2(params['w_eo'], Hp, Hp, bf16), _pad2(params['b_eo'], 1, Hp, f32),
      _pad2(params['b_iah'], 1, Hp, f32), _pad2(params['b_oah'], 1, Hp, f32),
      pad_gate_w(wi[:H]), pad_gate_w(wi[H:]), pad_gate_b(params['b_i']),
      pad_gate_w(wh), pad_gate_b(params['b_h']),
      _pad2(params['w1'], Hp, Hp, bf16), _pad2(params['b1'], 1, Hp, f32),
      _pad2(params['w2'], Hp, Hp, bf16), _pad2(params['b2'], 1, Hp, f32),
      _pad2(params['w3'], 1, Hp, f32),
      _pad2(params['wn1'][:H], Hp, LHp, bf16),
      _pad2(params['wn1'][H:], Hp, LHp, bf16),
      _pad2(params['bn1'], 1, LHp, f32),
      _pad2(params['wn2'], LHp, Hp, bf16), _pad2(params['bn2'], 1, Hp, f32),
  ]

  grid = (Bp // BB,)
  in_specs = [
      pl.BlockSpec((BB, Np, Np), lambda b: (b, 0, 0)),   # A_in (bf16)
      pl.BlockSpec((BB, Np, Np), lambda b: (b, 0, 0)),   # A_out (bf16)
      pl.BlockSpec((BB, Np, Hp), lambda b: (b, 0, 0)),   # sess_embed (bf16)
      pl.BlockSpec((BB, Lp, 1), lambda b: (b, 0, 0)),    # alias indices (int32)
      pl.BlockSpec((BB, Lp, 1), lambda b: (b, 0, 0)),    # mask (f32)
  ]
  # Batch-invariant full blocks for all (2-D) parameters.
  # TODO(synk): on v7x these could be single-buffered / packed into one fused
  # array to halve weight VMEM; default double-buffering kept for portability.
  for w in weights:
    in_specs.append(pl.BlockSpec(w.shape, lambda b: (0, 0)))

  kernel = functools.partial(srgnn_kernel, step=step, last_wrap=L - 1)
  out = pl.pallas_call(
      kernel,
      out_shape=jax.ShapeDtypeStruct((Bp, Hp), jnp.float32),
      grid_spec=pltpu.PrefetchScalarGridSpec(
          num_scalar_prefetch=0,
          grid=grid,
          in_specs=in_specs,
          out_specs=pl.BlockSpec((BB, Hp), lambda b: (b, 0)),
      ),
      compiler_params=pltpu.CompilerParams(dimension_semantics=("parallel",)),
  )(A_in, A_out, sess_embed, alias_i, maskf, *weights)
  return out[:B, :H]                                                  # [B, H]


def srgnn_reference(params, alias_inputs, A, items, mask, *, step=1):
  """Pure-JAX reference mirroring the PyTorch forward."""
  N = A.shape[1]
  B = alias_inputs.shape[0]
  hidden = params['embedding'][items].astype(jnp.float32)
  Af = A.astype(jnp.float32)
  for _ in range(step):
    edge_in = hidden @ params['w_ei'] + params['b_ei'][0]
    edge_out = hidden @ params['w_eo'] + params['b_eo'][0]
    input_in = jnp.matmul(Af[:, :, :N], edge_in) + params['b_iah'][0]
    input_out = jnp.matmul(Af[:, :, N:2 * N], edge_out) + params['b_oah'][0]
    inputs = jnp.concatenate([input_in, input_out], axis=-1)
    gi = inputs @ params['w_i'] + params['b_i'][0]
    gh = hidden @ params['w_h'] + params['b_h'][0]
    i_r, i_i, i_n = jnp.split(gi, 3, axis=-1)
    h_r, h_i, h_n = jnp.split(gh, 3, axis=-1)
    r = jax.nn.sigmoid(i_r + h_r)
    ig = jax.nn.sigmoid(i_i + h_i)
    n = jnp.tanh(i_n + r * h_n)
    hidden = n + ig * (hidden - n)
  seq_hidden = jnp.take_along_axis(hidden, alias_inputs[:, :, None], axis=1)
  last_idx = jnp.sum(mask, axis=1).astype(jnp.int32) - 1
  ht = seq_hidden[jnp.arange(B), last_idx]
  q1 = (ht @ params['w1'] + params['b1'][0])[:, None, :]
  q2 = seq_hidden @ params['w2'] + params['b2'][0]
  alpha = jax.nn.sigmoid(q1 + q2) @ params['w3'].T
  a = jnp.sum(alpha * seq_hidden * mask[:, :, None].astype(jnp.float32), axis=1)
  feat = jnp.concatenate([a, ht], axis=-1)
  h1 = jax.nn.relu(feat @ params['wn1'] + params['bn1'][0])
  return h1 @ params['wn2'] + params['bn2'][0]


if __name__ == "__main__":
  B, N, L, H, V, LH = 2, 8, 8, 32, 50, 64   # batch, nodes, seq len, hidden, vocab, mlp hidden
  key = jax.random.PRNGKey(0)
  pkey, akey, ikey, alkey = jax.random.split(key, 4)

  params = init_params(pkey, H, V, LH)
  A = jax.random.uniform(akey, (B, N, 2 * N), jnp.float32)
  items = jax.random.randint(ikey, (B, N), 0, V)
  alias_inputs = jax.random.randint(alkey, (B, L), 0, N)
  lens = jnp.array([5, 8], dtype=jnp.int32)
  mask = (jnp.arange(L)[None, :] < lens[:, None]).astype(jnp.float32)   # [B, L]

  out = srgnn_forward(params, alias_inputs, A, items, mask, step=1)
  out = jax.block_until_ready(out)

  with jax.default_matmul_precision("float32"):
    ref = srgnn_reference(params, alias_inputs, A, items, mask, step=1)
  ref = jax.block_until_ready(ref)

  assert out.shape == (B, H)
  assert bool(jnp.all(jnp.isfinite(out)))
  assert bool(jnp.allclose(out, ref, rtol=2e-2, atol=2e-2))
  print("KERNEL_OK")
</pallas_src>

<mosaic_0001>
module attributes {stable_mosaic.version = 11 : i64} {
  func.func @srgnn_kernel(%arg0: i32, %arg1: memref<8x8x8xbf16, #tpu.memory_space<vmem>>, %arg2: memref<8x8x8xbf16, #tpu.memory_space<vmem>>, %arg3: memref<8x8x128xbf16, #tpu.memory_space<vmem>>, %arg4: memref<8x8x1xi32, #tpu.memory_space<vmem>>, %arg5: memref<8x8x1xf32, #tpu.memory_space<vmem>>, %arg6: memref<128x128xbf16, #tpu.memory_space<vmem>>, %arg7: memref<1x128xf32, #tpu.memory_space<vmem>>, %arg8: memref<128x128xbf16, #tpu.memory_space<vmem>>, %arg9: memref<1x128xf32, #tpu.memory_space<vmem>>, %arg10: memref<1x128xf32, #tpu.memory_space<vmem>>, %arg11: memref<1x128xf32, #tpu.memory_space<vmem>>, %arg12: memref<128x384xbf16, #tpu.memory_space<vmem>>, %arg13: memref<128x384xbf16, #tpu.memory_space<vmem>>, %arg14: memref<1x384xf32, #tpu.memory_space<vmem>>, %arg15: memref<128x384xbf16, #tpu.memory_space<vmem>>, %arg16: memref<1x384xf32, #tpu.memory_space<vmem>>, %arg17: memref<128x128xbf16, #tpu.memory_space<vmem>>, %arg18: memref<1x128xf32, #tpu.memory_space<vmem>>, %arg19: memref<128x128xbf16, #tpu.memory_space<vmem>>, %arg20: memref<1x128xf32, #tpu.memory_space<vmem>>, %arg21: memref<1x128xf32, #tpu.memory_space<vmem>>, %arg22: memref<128x128xbf16, #tpu.memory_space<vmem>>, %arg23: memref<128x128xbf16, #tpu.memory_space<vmem>>, %arg24: memref<1x128xf32, #tpu.memory_space<vmem>>, %arg25: memref<128x128xbf16, #tpu.memory_space<vmem>>, %arg26: memref<1x128xf32, #tpu.memory_space<vmem>>, %arg27: memref<8x128xf32, #tpu.memory_space<vmem>>) attributes {dimension_semantics = [#tpu.dimension_semantics<parallel>], iteration_bounds = array<i64: 1>, scalar_prefetch = 0 : i64, scratch_operands = 0 : i64, tpu.core_type = #tpu.core_type<tc>, window_params = [{transform_indices = @transform_0, window_bounds = array<i64: 8, 8, 8>}, {transform_indices = @transform_1, window_bounds = array<i64: 8, 8, 8>}, {transform_indices = @transform_2, window_bounds = array<i64: 8, 8, 128>}, {transform_indices = @transform_3, window_bounds = array<i64: 8, 8, 1>}, {transform_indices = @transform_4, window_bounds = array<i64: 8, 8, 1>}, {pipeline_mode = #tpu.pipeline_mode<synchronous>, transform_indices = @transform_5, window_bounds = array<i64: 128, 128>}, {pipeline_mode = #tpu.pipeline_mode<synchronous>, transform_indices = @transform_6, window_bounds = array<i64: 1, 128>}, {pipeline_mode = #tpu.pipeline_mode<synchronous>, transform_indices = @transform_7, window_bounds = array<i64: 128, 128>}, {pipeline_mode = #tpu.pipeline_mode<synchronous>, transform_indices = @transform_8, window_bounds = array<i64: 1, 128>}, {pipeline_mode = #tpu.pipeline_mode<synchronous>, transform_indices = @transform_9, window_bounds = array<i64: 1, 128>}, {pipeline_mode = #tpu.pipeline_mode<synchronous>, transform_indices = @transform_10, window_bounds = array<i64: 1, 128>}, {pipeline_mode = #tpu.pipeline_mode<synchronous>, transform_indices = @transform_11, window_bounds = array<i64: 128, 384>}, {pipeline_mode = #tpu.pipeline_mode<synchronous>, transform_indices = @transform_12, window_bounds = array<i64: 128, 384>}, {pipeline_mode = #tpu.pipeline_mode<synchronous>, transform_indices = @transform_13, window_bounds = array<i64: 1, 384>}, {pipeline_mode = #tpu.pipeline_mode<synchronous>, transform_indices = @transform_14, window_bounds = array<i64: 128, 384>}, {pipeline_mode = #tpu.pipeline_mode<synchronous>, transform_indices = @transform_15, window_bounds = array<i64: 1, 384>}, {pipeline_mode = #tpu.pipeline_mode<synchronous>, transform_indices = @transform_16, window_bounds = array<i64: 128, 128>}, {pipeline_mode = #tpu.pipeline_mode<synchronous>, transform_indices = @transform_17, window_bounds = array<i64: 1, 128>}, {pipeline_mode = #tpu.pipeline_mode<synchronous>, transform_indices = @transform_18, window_bounds = array<i64: 128, 128>}, {pipeline_mode = #tpu.pipeline_mode<synchronous>, transform_indices = @transform_19, window_bounds = array<i64: 1, 128>}, {pipeline_mode = #tpu.pipeline_mode<synchronous>, transform_indices = @transform_20, window_bounds = array<i64: 1, 128>}, {pipeline_mode = #tpu.pipeline_mode<synchronous>, transform_indices = @transform_21, window_bounds = array<i64: 128, 128>}, {pipeline_mode = #tpu.pipeline_mode<synchronous>, transform_indices = @transform_22, window_bounds = array<i64: 128, 128>}, {pipeline_mode = #tpu.pipeline_mode<synchronous>, transform_indices = @transform_23, window_bounds = array<i64: 1, 128>}, {pipeline_mode = #tpu.pipeline_mode<synchronous>, transform_indices = @transform_24, window_bounds = array<i64: 128, 128>}, {pipeline_mode = #tpu.pipeline_mode<synchronous>, transform_indices = @transform_25, window_bounds = array<i64: 1, 128>}, {transform_indices = @transform_26, window_bounds = array<i64: 8, 128>}]} {
    %c0 = arith.constant 0 : index
    %c0_0 = arith.constant 0 : index
    %c0_1 = arith.constant 0 : index
    %0 = vector.load %arg1[%c0, %c0_0, %c0_1] : memref<8x8x8xbf16, #tpu.memory_space<vmem>>, vector<8x8x8xbf16>
    %1 = arith.extf %0 : vector<8x8x8xbf16> to vector<8x8x8xf32>
    %c0_2 = arith.constant 0 : index
    %c0_3 = arith.constant 0 : index
    %c0_4 = arith.constant 0 : index
    %2 = vector.load %arg2[%c0_2, %c0_3, %c0_4] : memref<8x8x8xbf16, #tpu.memory_space<vmem>>, vector<8x8x8xbf16>
    %3 = arith.extf %2 : vector<8x8x8xbf16> to vector<8x8x8xf32>
    %c0_5 = arith.constant 0 : index
    %c0_6 = arith.constant 0 : index
    %c0_7 = arith.constant 0 : index
    %4 = vector.load %arg3[%c0_5, %c0_6, %c0_7] : memref<8x8x128xbf16, #tpu.memory_space<vmem>>, vector<8x8x128xbf16>
    %5 = arith.extf %4 : vector<8x8x128xbf16> to vector<8x8x128xf32>
    %c0_8 = arith.constant 0 : index
    %c0_9 = arith.constant 0 : index
    %6 = vector.load %arg6[%c0_8, %c0_9] : memref<128x128xbf16, #tpu.memory_space<vmem>>, vector<128x128xbf16>
    %c0_10 = arith.constant 0 : index
    %c0_11 = arith.constant 0 : index
    %7 = vector.load %arg7[%c0_10, %c0_11] : memref<1x128xf32, #tpu.memory_space<vmem>>, vector<1x128xf32>
    %c0_12 = arith.constant 0 : index
    %c0_13 = arith.constant 0 : index
    %8 = vector.load %arg8[%c0_12, %c0_13] : memref<128x128xbf16, #tpu.memory_space<vmem>>, vector<128x128xbf16>
    %c0_14 = arith.constant 0 : index
    %c0_15 = arith.constant 0 : index
    %9 = vector.load %arg9[%c0_14, %c0_15] : memref<1x128xf32, #tpu.memory_space<vmem>>, vector<1x128xf32>
    %c0_16 = arith.constant 0 : index
    %c0_17 = arith.constant 0 : index
    %10 = vector.load %arg10[%c0_16, %c0_17] : memref<1x128xf32, #tpu.memory_space<vmem>>, vector<1x128xf32>
    %c0_18 = arith.constant 0 : index
    %c0_19 = arith.constant 0 : index
    %11 = vector.load %arg11[%c0_18, %c0_19] : memref<1x128xf32, #tpu.memory_space<vmem>>, vector<1x128xf32>
    %c0_20 = arith.constant 0 : index
    %c0_21 = arith.constant 0 : index
    %12 = vector.load %arg12[%c0_20, %c0_21] : memref<128x384xbf16, #tpu.memory_space<vmem>>, vector<128x384xbf16>
    %c0_22 = arith.constant 0 : index
    %c0_23 = arith.constant 0 : index
    %13 = vector.load %arg13[%c0_22, %c0_23] : memref<128x384xbf16, #tpu.memory_space<vmem>>, vector<128x384xbf16>
    %c0_24 = arith.constant 0 : index
    %c0_25 = arith.constant 0 : index
    %14 = vector.load %arg14[%c0_24, %c0_25] : memref<1x384xf32, #tpu.memory_space<vmem>>, vector<1x384xf32>
    %c0_26 = arith.constant 0 : index
    %c0_27 = arith.constant 0 : index
    %15 = vector.load %arg15[%c0_26, %c0_27] : memref<128x384xbf16, #tpu.memory_space<vmem>>, vector<128x384xbf16>
    %c0_28 = arith.constant 0 : index
    %c0_29 = arith.constant 0 : index
    %16 = vector.load %arg16[%c0_28, %c0_29] : memref<1x384xf32, #tpu.memory_space<vmem>>, vector<1x384xf32>
    %17 = vector.shape_cast %5 : vector<8x8x128xf32> to vector<64x128xf32>
    %18 = arith.truncf %17 : vector<64x128xf32> to vector<64x128xbf16>
    %cst = arith.constant dense<0.000000e+00> : vector<64x128xf32>
    %19 = tpu.matmul %18, %6, %cst {dimension_numbers = #tpu.dot_dimension_numbers<[1], [0], [0], [1], [0, 0, 1, 1], [], []>} : vector<64x128xbf16>, vector<128x128xbf16>, vector<64x128xf32> -> vector<64x128xf32>
    %20 = vector.broadcast %7 : vector<1x128xf32> to vector<64x128xf32>
    %21 = arith.addf %19, %20 : vector<64x128xf32>
    %22 = vector.shape_cast %21 : vector<64x128xf32> to vector<8x8x128xf32>
    %23 = arith.truncf %17 : vector<64x128xf32> to vector<64x128xbf16>
    %cst_30 = arith.constant dense<0.000000e+00> : vector<64x128xf32>
    %24 = tpu.matmul %23, %8, %cst_30 {dimension_numbers = #tpu.dot_dimension_numbers<[1], [0], [0], [1], [0, 0, 1, 1], [], []>} : vector<64x128xbf16>, vector<128x128xbf16>, vector<64x128xf32> -> vector<64x128xf32>
    %25 = vector.broadcast %9 : vector<1x128xf32> to vector<64x128xf32>
    %26 = arith.addf %24, %25 : vector<64x128xf32>
    %27 = vector.shape_cast %26 : vector<64x128xf32> to vector<8x8x128xf32>
    %28 = vector.extract_strided_slice %1 {offsets = [0, 0, 0], sizes = [8, 8, 1], strides = [1, 1, 1]} : vector<8x8x8xf32> to vector<8x8x1xf32>
    %29 = vector.extract_strided_slice %22 {offsets = [0, 0, 0], sizes = [8, 1, 128], strides = [1, 1, 1]} : vector<8x8x128xf32> to vector<8x1x128xf32>
    %30 = vector.broadcast %28 : vector<8x8x1xf32> to vector<8x8x128xf32>
    %31 = vector.broadcast %29 : vector<8x1x128xf32> to vector<8x8x128xf32>
    %32 = arith.mulf %30, %31 : vector<8x8x128xf32>
    %33 = vector.extract_strided_slice %1 {offsets = [0, 0, 1], sizes = [8, 8, 1], strides = [1, 1, 1]} : vector<8x8x8xf32> to vector<8x8x1xf32>
    %34 = vector.extract_strided_slice %22 {offsets = [0, 1, 0], sizes = [8, 1, 128], strides = [1, 1, 1]} : vector<8x8x128xf32> to vector<8x1x128xf32>
    %35 = vector.broadcast %33 : vector<8x8x1xf32> to vector<8x8x128xf32>
    %36 = vector.broadcast %34 : vector<8x1x128xf32> to vector<8x8x128xf32>
    %37 = arith.mulf %35, %36 : vector<8x8x128xf32>
    %38 = arith.addf %32, %37 : vector<8x8x128xf32>
    %39 = vector.extract_strided_slice %1 {offsets = [0, 0, 2], sizes = [8, 8, 1], strides = [1, 1, 1]} : vector<8x8x8xf32> to vector<8x8x1xf32>
    %40 = vector.extract_strided_slice %22 {offsets = [0, 2, 0], sizes = [8, 1, 128], strides = [1, 1, 1]} : vector<8x8x128xf32> to vector<8x1x128xf32>
    %41 = vector.broadcast %39 : vector<8x8x1xf32> to vector<8x8x128xf32>
    %42 = vector.broadcast %40 : vector<8x1x128xf32> to vector<8x8x128xf32>
    %43 = arith.mulf %41, %42 : vector<8x8x128xf32>
    %44 = arith.addf %38, %43 : vector<8x8x128xf32>
    %45 = vector.extract_strided_slice %1 {offsets = [0, 0, 3], sizes = [8, 8, 1], strides = [1, 1, 1]} : vector<8x8x8xf32> to vector<8x8x1xf32>
    %46 = vector.extract_strided_slice %22 {offsets = [0, 3, 0], sizes = [8, 1, 128], strides = [1, 1, 1]} : vector<8x8x128xf32> to vector<8x1x128xf32>
    %47 = vector.broadcast %45 : vector<8x8x1xf32> to vector<8x8x128xf32>
    %48 = vector.broadcast %46 : vector<8x1x128xf32> to vector<8x8x128xf32>
    %49 = arith.mulf %47, %48 : vector<8x8x128xf32>
    %50 = arith.addf %44, %49 : vector<8x8x128xf32>
    %51 = vector.extract_strided_slice %1 {offsets = [0, 0, 4], sizes = [8, 8, 1], strides = [1, 1, 1]} : vector<8x8x8xf32> to vector<8x8x1xf32>
    %52 = vector.extract_strided_slice %22 {offsets = [0, 4, 0], sizes = [8, 1, 128], strides = [1, 1, 1]} : vector<8x8x128xf32> to vector<8x1x128xf32>
    %53 = vector.broadcast %51 : vector<8x8x1xf32> to vector<8x8x128xf32>
    %54 = vector.broadcast %52 : vector<8x1x128xf32> to vector<8x8x128xf32>
    %55 = arith.mulf %53, %54 : vector<8x8x128xf32>
    %56 = arith.addf %50, %55 : vector<8x8x128xf32>
    %57 = vector.extract_strided_slice %1 {offsets = [0, 0, 5], sizes = [8, 8, 1], strides = [1, 1, 1]} : vector<8x8x8xf32> to vector<8x8x1xf32>
    %58 = vector.extract_strided_slice %22 {offsets = [0, 5, 0], sizes = [8, 1, 128], strides = [1, 1, 1]} : vector<8x8x128xf32> to vector<8x1x128xf32>
    %59 = vector.broadcast %57 : vector<8x8x1xf32> to vector<8x8x128xf32>
    %60 = vector.broadcast %58 : vector<8x1x128xf32> to vector<8x8x128xf32>
    %61 = arith.mulf %59, %60 : vector<8x8x128xf32>
    %62 = arith.addf %56, %61 : vector<8x8x128xf32>
    %63 = vector.extract_strided_slice %1 {offsets = [0, 0, 6], sizes = [8, 8, 1], strides = [1, 1, 1]} : vector<8x8x8xf32> to vector<8x8x1xf32>
    %64 = vector.extract_strided_slice %22 {offsets = [0, 6, 0], sizes = [8, 1, 128], strides = [1, 1, 1]} : vector<8x8x128xf32> to vector<8x1x128xf32>
    %65 = vector.broadcast %63 : vector<8x8x1xf32> to vector<8x8x128xf32>
    %66 = vector.broadcast %64 : vector<8x1x128xf32> to vector<8x8x128xf32>
    %67 = arith.mulf %65, %66 : vector<8x8x128xf32>
    %68 = arith.addf %62, %67 : vector<8x8x128xf32>
    %69 = vector.extract_strided_slice %1 {offsets = [0, 0, 7], sizes = [8, 8, 1], strides = [1, 1, 1]} : vector<8x8x8xf32> to vector<8x8x1xf32>
    %70 = vector.extract_strided_slice %22 {offsets = [0, 7, 0], sizes = [8, 1, 128], strides = [1, 1, 1]} : vector<8x8x128xf32> to vector<8x1x128xf32>
    %71 = vector.broadcast %69 : vector<8x8x1xf32> to vector<8x8x128xf32>
    %72 = vector.broadcast %70 : vector<8x1x128xf32> to vector<8x8x128xf32>
    %73 = arith.mulf %71, %72 : vector<8x8x128xf32>
    %74 = arith.addf %68, %73 : vector<8x8x128xf32>
    %75 = vector.shape_cast %10 : vector<1x128xf32> to vector<1x1x128xf32>
    %76 = vector.broadcast %75 : vector<1x1x128xf32> to vector<8x8x128xf32>
    %77 = arith.addf %74, %76 : vector<8x8x128xf32>
    %78 = vector.shape_cast %77 : vector<8x8x128xf32> to vector<64x128xf32>
    %79 = vector.extract_strided_slice %3 {offsets = [0, 0, 0], sizes = [8, 8, 1], strides = [1, 1, 1]} : vector<8x8x8xf32> to vector<8x8x1xf32>
    %80 = vector.extract_strided_slice %27 {offsets = [0, 0, 0], sizes = [8, 1, 128], strides = [1, 1, 1]} : vector<8x8x128xf32> to vector<8x1x128xf32>
    %81 = vector.broadcast %79 : vector<8x8x1xf32> to vector<8x8x128xf32>
    %82 = vector.broadcast %80 : vector<8x1x128xf32> to vector<8x8x128xf32>
    %83 = arith.mulf %81, %82 : vector<8x8x128xf32>
    %84 = vector.extract_strided_slice %3 {offsets = [0, 0, 1], sizes = [8, 8, 1], strides = [1, 1, 1]} : vector<8x8x8xf32> to vector<8x8x1xf32>
    %85 = vector.extract_strided_slice %27 {offsets = [0, 1, 0], sizes = [8, 1, 128], strides = [1, 1, 1]} : vector<8x8x128xf32> to vector<8x1x128xf32>
    %86 = vector.broadcast %84 : vector<8x8x1xf32> to vector<8x8x128xf32>
    %87 = vector.broadcast %85 : vector<8x1x128xf32> to vector<8x8x128xf32>
    %88 = arith.mulf %86, %87 : vector<8x8x128xf32>
    %89 = arith.addf %83, %88 : vector<8x8x128xf32>
    %90 = vector.extract_strided_slice %3 {offsets = [0, 0, 2], sizes = [8, 8, 1], strides = [1, 1, 1]} : vector<8x8x8xf32> to vector<8x8x1xf32>
    %91 = vector.extract_strided_slice %27 {offsets = [0, 2, 0], sizes = [8, 1, 128], strides = [1, 1, 1]} : vector<8x8x128xf32> to vector<8x1x128xf32>
    %92 = vector.broadcast %90 : vector<8x8x1xf32> to vector<8x8x128xf32>
    %93 = vector.broadcast %91 : vector<8x1x128xf32> to vector<8x8x128xf32>
    %94 = arith.mulf %92, %93 : vector<8x8x128xf32>
    %95 = arith.addf %89, %94 : vector<8x8x128xf32>
    %96 = vector.extract_strided_slice %3 {offsets = [0, 0, 3], sizes = [8, 8, 1], strides = [1, 1, 1]} : vector<8x8x8xf32> to vector<8x8x1xf32>
    %97 = vector.extract_strided_slice %27 {offsets = [0, 3, 0], sizes = [8, 1, 128], strides = [1, 1, 1]} : vector<8x8x128xf32> to vector<8x1x128xf32>
    %98 = vector.broadcast %96 : vector<8x8x1xf32> to vector<8x8x128xf32>
    %99 = vector.broadcast %97 : vector<8x1x128xf32> to vector<8x8x128xf32>
    %100 = arith.mulf %98, %99 : vector<8x8x128xf32>
    %101 = arith.addf %95, %100 : vector<8x8x128xf32>
    %102 = vector.extract_strided_slice %3 {offsets = [0, 0, 4], sizes = [8, 8, 1], strides = [1, 1, 1]} : vector<8x8x8xf32> to vector<8x8x1xf32>
    %103 = vector.extract_strided_slice %27 {offsets = [0, 4, 0], sizes = [8, 1, 128], strides = [1, 1, 1]} : vector<8x8x128xf32> to vector<8x1x128xf32>
    %104 = vector.broadcast %102 : vector<8x8x1xf32> to vector<8x8x128xf32>
    %105 = vector.broadcast %103 : vector<8x1x128xf32> to vector<8x8x128xf32>
    %106 = arith.mulf %104, %105 : vector<8x8x128xf32>
    %107 = arith.addf %101, %106 : vector<8x8x128xf32>
    %108 = vector.extract_strided_slice %3 {offsets = [0, 0, 5], sizes = [8, 8, 1], strides = [1, 1, 1]} : vector<8x8x8xf32> to vector<8x8x1xf32>
    %109 = vector.extract_strided_slice %27 {offsets = [0, 5, 0], sizes = [8, 1, 128], strides = [1, 1, 1]} : vector<8x8x128xf32> to vector<8x1x128xf32>
    %110 = vector.broadcast %108 : vector<8x8x1xf32> to vector<8x8x128xf32>
    %111 = vector.broadcast %109 : vector<8x1x128xf32> to vector<8x8x128xf32>
    %112 = arith.mulf %110, %111 : vector<8x8x128xf32>
    %113 = arith.addf %107, %112 : vector<8x8x128xf32>
    %114 = vector.extract_strided_slice %3 {offsets = [0, 0, 6], sizes = [8, 8, 1], strides = [1, 1, 1]} : vector<8x8x8xf32> to vector<8x8x1xf32>
    %115 = vector.extract_strided_slice %27 {offsets = [0, 6, 0], sizes = [8, 1, 128], strides = [1, 1, 1]} : vector<8x8x128xf32> to vector<8x1x128xf32>
    %116 = vector.broadcast %114 : vector<8x8x1xf32> to vector<8x8x128xf32>
    %117 = vector.broadcast %115 : vector<8x1x128xf32> to vector<8x8x128xf32>
    %118 = arith.mulf %116, %117 : vector<8x8x128xf32>
    %119 = arith.addf %113, %118 : vector<8x8x128xf32>
    %120 = vector.extract_strided_slice %3 {offsets = [0, 0, 7], sizes = [8, 8, 1], strides = [1, 1, 1]} : vector<8x8x8xf32> to vector<8x8x1xf32>
    %121 = vector.extract_strided_slice %27 {offsets = [0, 7, 0], sizes = [8, 1, 128], strides = [1, 1, 1]} : vector<8x8x128xf32> to vector<8x1x128xf32>
    %122 = vector.broadcast %120 : vector<8x8x1xf32> to vector<8x8x128xf32>
    %123 = vector.broadcast %121 : vector<8x1x128xf32> to vector<8x8x128xf32>
    %124 = arith.mulf %122, %123 : vector<8x8x128xf32>
    %125 = arith.addf %119, %124 : vector<8x8x128xf32>
    %126 = vector.shape_cast %11 : vector<1x128xf32> to vector<1x1x128xf32>
    %127 = vector.broadcast %126 : vector<1x1x128xf32> to vector<8x8x128xf32>
    %128 = arith.addf %125, %127 : vector<8x8x128xf32>
    %129 = vector.shape_cast %128 : vector<8x8x128xf32> to vector<64x128xf32>
    %130 = arith.truncf %78 : vector<64x128xf32> to vector<64x128xbf16>
    %cst_31 = arith.constant dense<0.000000e+00> : vector<64x384xf32>
    %131 = tpu.matmul %130, %12, %cst_31 {dimension_numbers = #tpu.dot_dimension_numbers<[1], [0], [0], [1], [0, 0, 1, 1], [], []>} : vector<64x128xbf16>, vector<128x384xbf16>, vector<64x384xf32> -> vector<64x384xf32>
    %132 = arith.truncf %129 : vector<64x128xf32> to vector<64x128xbf16>
    %cst_32 = arith.constant dense<0.000000e+00> : vector<64x384xf32>
    %133 = tpu.matmul %132, %13, %cst_32 {dimension_numbers = #tpu.dot_dimension_numbers<[1], [0], [0], [1], [0, 0, 1, 1], [], []>} : vector<64x128xbf16>, vector<128x384xbf16>, vector<64x384xf32> -> vector<64x384xf32>
    %134 = arith.addf %131, %133 : vector<64x384xf32>
    %135 = vector.broadcast %14 : vector<1x384xf32> to vector<64x384xf32>
    %136 = arith.addf %134, %135 : vector<64x384xf32>
    %137 = arith.truncf %17 : vector<64x128xf32> to vector<64x128xbf16>
    %cst_33 = arith.constant dense<0.000000e+00> : vector<64x384xf32>
    %138 = tpu.matmul %137, %15, %cst_33 {dimension_numbers = #tpu.dot_dimension_numbers<[1], [0], [0], [1], [0, 0, 1, 1], [], []>} : vector<64x128xbf16>, vector<128x384xbf16>, vector<64x384xf32> -> vector<64x384xf32>
    %139 = vector.broadcast %16 : vector<1x384xf32> to vector<64x384xf32>
    %140 = arith.addf %138, %139 : vector<64x384xf32>
    %141 = vector.extract_strided_slice %136 {offsets = [0, 0], sizes = [64, 128], strides = [1, 1]} : vector<64x384xf32> to vector<64x128xf32>
    %142 = vector.extract_strided_slice %140 {offsets = [0, 0], sizes = [64, 128], strides = [1, 1]} : vector<64x384xf32> to vector<64x128xf32>
    %143 = arith.addf %141, %142 : vector<64x128xf32>
    %144 = arith.negf %143 : vector<64x128xf32>
    %145 = math.exp %144 : vector<64x128xf32>
    %cst_34 = arith.constant 1.000000e+00 : f32
    %146 = vector.broadcast %cst_34 : f32 to vector<64x128xf32>
    %147 = arith.addf %146, %145 : vector<64x128xf32>
    %148 = arith.divf %146, %147 : vector<64x128xf32>
    %149 = vector.extract_strided_slice %136 {offsets = [0, 128], sizes = [64, 128], strides = [1, 1]} : vector<64x384xf32> to vector<64x128xf32>
    %150 = vector.extract_strided_slice %140 {offsets = [0, 128], sizes = [64, 128], strides = [1, 1]} : vector<64x384xf32> to vector<64x128xf32>
    %151 = arith.addf %149, %150 : vector<64x128xf32>
    %152 = arith.negf %151 : vector<64x128xf32>
    %153 = math.exp %152 : vector<64x128xf32>
    %cst_35 = arith.constant 1.000000e+00 : f32
    %154 = vector.broadcast %cst_35 : f32 to vector<64x128xf32>
    %155 = arith.addf %154, %153 : vector<64x128xf32>
    %156 = arith.divf %154, %155 : vector<64x128xf32>
    %157 = vector.extract_strided_slice %136 {offsets = [0, 256], sizes = [64, 128], strides = [1, 1]} : vector<64x384xf32> to vector<64x128xf32>
    %158 = vector.extract_strided_slice %140 {offsets = [0, 256], sizes = [64, 128], strides = [1, 1]} : vector<64x384xf32> to vector<64x128xf32>
    %159 = arith.mulf %148, %158 : vector<64x128xf32>
    %160 = arith.addf %157, %159 : vector<64x128xf32>
    %161 = math.tanh %160 : vector<64x128xf32>
    %162 = arith.subf %17, %161 : vector<64x128xf32>
    %163 = arith.mulf %156, %162 : vector<64x128xf32>
    %164 = arith.addf %161, %163 : vector<64x128xf32>
    %165 = vector.shape_cast %164 : vector<64x128xf32> to vector<8x8x128xf32>
    %c0_36 = arith.constant 0 : index
    %c0_37 = arith.constant 0 : index
    %c0_38 = arith.constant 0 : index
    %166 = vector.load %arg4[%c0_36, %c0_37, %c0_38] : memref<8x8x1xi32, #tpu.memory_space<vmem>>, vector<8x8x1xi32>
    %c0_i32 = arith.constant 0 : i32
    %167 = vector.broadcast %c0_i32 : i32 to vector<8x8x1xi32>
    %168 = arith.cmpi eq, %166, %167 : vector<8x8x1xi32>
    %169 = arith.extui %168 : vector<8x8x1xi1> to vector<8x8x1xi32>
    %170 = arith.sitofp %169 : vector<8x8x1xi32> to vector<8x8x1xf32>
    %171 = vector.extract_strided_slice %165 {offsets = [0, 0, 0], sizes = [8, 1, 128], strides = [1, 1, 1]} : vector<8x8x128xf32> to vector<8x1x128xf32>
    %172 = vector.broadcast %170 : vector<8x8x1xf32> to vector<8x8x128xf32>
    %173 = vector.broadcast %171 : vector<8x1x128xf32> to vector<8x8x128xf32>
    %174 = arith.mulf %172, %173 : vector<8x8x128xf32>
    %c1_i32 = arith.constant 1 : i32
    %175 = vector.broadcast %c1_i32 : i32 to vector<8x8x1xi32>
    %176 = arith.cmpi eq, %166, %175 : vector<8x8x1xi32>
    %177 = arith.extui %176 : vector<8x8x1xi1> to vector<8x8x1xi32>
    %178 = arith.sitofp %177 : vector<8x8x1xi32> to vector<8x8x1xf32>
    %179 = vector.extract_strided_slice %165 {offsets = [0, 1, 0], sizes = [8, 1, 128], strides = [1, 1, 1]} : vector<8x8x128xf32> to vector<8x1x128xf32>
    %180 = vector.broadcast %178 : vector<8x8x1xf32> to vector<8x8x128xf32>
    %181 = vector.broadcast %179 : vector<8x1x128xf32> to vector<8x8x128xf32>
    %182 = arith.mulf %180, %181 : vector<8x8x128xf32>
    %183 = arith.addf %174, %182 : vector<8x8x128xf32>
    %c2_i32 = arith.constant 2 : i32
    %184 = vector.broadcast %c2_i32 : i32 to vector<8x8x1xi32>
    %185 = arith.cmpi eq, %166, %184 : vector<8x8x1xi32>
    %186 = arith.extui %185 : vector<8x8x1xi1> to vector<8x8x1xi32>
    %187 = arith.sitofp %186 : vector<8x8x1xi32> to vector<8x8x1xf32>
    %188 = vector.extract_strided_slice %165 {offsets = [0, 2, 0], sizes = [8, 1, 128], strides = [1, 1, 1]} : vector<8x8x128xf32> to vector<8x1x128xf32>
    %189 = vector.broadcast %187 : vector<8x8x1xf32> to vector<8x8x128xf32>
    %190 = vector.broadcast %188 : vector<8x1x128xf32> to vector<8x8x128xf32>
    %191 = arith.mulf %189, %190 : vector<8x8x128xf32>
    %192 = arith.addf %183, %191 : vector<8x8x128xf32>
    %c3_i32 = arith.constant 3 : i32
    %193 = vector.broadcast %c3_i32 : i32 to vector<8x8x1xi32>
    %194 = arith.cmpi eq, %166, %193 : vector<8x8x1xi32>
    %195 = arith.extui %194 : vector<8x8x1xi1> to vector<8x8x1xi32>
    %196 = arith.sitofp %195 : vector<8x8x1xi32> to vector<8x8x1xf32>
    %197 = vector.extract_strided_slice %165 {offsets = [0, 3, 0], sizes = [8, 1, 128], strides = [1, 1, 1]} : vector<8x8x128xf32> to vector<8x1x128xf32>
    %198 = vector.broadcast %196 : vector<8x8x1xf32> to vector<8x8x128xf32>
    %199 = vector.broadcast %197 : vector<8x1x128xf32> to vector<8x8x128xf32>
    %200 = arith.mulf %198, %199 : vector<8x8x128xf32>
    %201 = arith.addf %192, %200 : vector<8x8x128xf32>
    %c4_i32 = arith.constant 4 : i32
    %202 = vector.broadcast %c4_i32 : i32 to vector<8x8x1xi32>
    %203 = arith.cmpi eq, %166, %202 : vector<8x8x1xi32>
    %204 = arith.extui %203 : vector<8x8x1xi1> to vector<8x8x1xi32>
    %205 = arith.sitofp %204 : vector<8x8x1xi32> to vector<8x8x1xf32>
    %206 = vector.extract_strided_slice %165 {offsets = [0, 4, 0], sizes = [8, 1, 128], strides = [1, 1, 1]} : vector<8x8x128xf32> to vector<8x1x128xf32>
    %207 = vector.broadcast %205 : vector<8x8x1xf32> to vector<8x8x128xf32>
    %208 = vector.broadcast %206 : vector<8x1x128xf32> to vector<8x8x128xf32>
    %209 = arith.mulf %207, %208 : vector<8x8x128xf32>
    %210 = arith.addf %201, %209 : vector<8x8x128xf32>
    %c5_i32 = arith.constant 5 : i32
    %211 = vector.broadcast %c5_i32 : i32 to vector<8x8x1xi32>
    %212 = arith.cmpi eq, %166, %211 : vector<8x8x1xi32>
    %213 = arith.extui %212 : vector<8x8x1xi1> to vector<8x8x1xi32>
    %214 = arith.sitofp %213 : vector<8x8x1xi32> to vector<8x8x1xf32>
    %215 = vector.extract_strided_slice %165 {offsets = [0, 5, 0], sizes = [8, 1, 128], strides = [1, 1, 1]} : vector<8x8x128xf32> to vector<8x1x128xf32>
    %216 = vector.broadcast %214 : vector<8x8x1xf32> to vector<8x8x128xf32>
    %217 = vector.broadcast %215 : vector<8x1x128xf32> to vector<8x8x128xf32>
    %218 = arith.mulf %216, %217 : vector<8x8x128xf32>
    %219 = arith.addf %210, %218 : vector<8x8x128xf32>
    %c6_i32 = arith.constant 6 : i32
    %220 = vector.broadcast %c6_i32 : i32 to vector<8x8x1xi32>
    %221 = arith.cmpi eq, %166, %220 : vector<8x8x1xi32>
    %222 = arith.extui %221 : vector<8x8x1xi1> to vector<8x8x1xi32>
    %223 = arith.sitofp %222 : vector<8x8x1xi32> to vector<8x8x1xf32>
    %224 = vector.extract_strided_slice %165 {offsets = [0, 6, 0], sizes = [8, 1, 128], strides = [1, 1, 1]} : vector<8x8x128xf32> to vector<8x1x128xf32>
    %225 = vector.broadcast %223 : vector<8x8x1xf32> to vector<8x8x128xf32>
    %226 = vector.broadcast %224 : vector<8x1x128xf32> to vector<8x8x128xf32>
    %227 = arith.mulf %225, %226 : vector<8x8x128xf32>
    %228 = arith.addf %219, %227 : vector<8x8x128xf32>
    %c7_i32 = arith.constant 7 : i32
    %229 = vector.broadcast %c7_i32 : i32 to vector<8x8x1xi32>
    %230 = arith.cmpi eq, %166, %229 : vector<8x8x1xi32>
    %231 = arith.extui %230 : vector<8x8x1xi1> to vector<8x8x1xi32>
    %232 = arith.sitofp %231 : vector<8x8x1xi32> to vector<8x8x1xf32>
    %233 = vector.extract_strided_slice %165 {offsets = [0, 7, 0], sizes = [8, 1, 128], strides = [1, 1, 1]} : vector<8x8x128xf32> to vector<8x1x128xf32>
    %234 = vector.broadcast %232 : vector<8x8x1xf32> to vector<8x8x128xf32>
    %235 = vector.broadcast %233 : vector<8x1x128xf32> to vector<8x8x128xf32>
    %236 = arith.mulf %234, %235 : vector<8x8x128xf32>
    %237 = arith.addf %228, %236 : vector<8x8x128xf32>
    %c0_39 = arith.constant 0 : index
    %c0_40 = arith.constant 0 : index
    %c0_41 = arith.constant 0 : index
    %238 = vector.load %arg5[%c0_39, %c0_40, %c0_41] : memref<8x8x1xf32, #tpu.memory_space<vmem>>, vector<8x8x1xf32>
    %cst_42 = arith.constant dense<0.000000e+00> : vector<8x1xf32>
    %239 = vector.multi_reduction <add>, %238, %cst_42 [1] : vector<8x8x1xf32> to vector<8x1xf32>
    %240 = vector.shape_cast %239 : vector<8x1xf32> to vector<8x1x1xf32>
    %241 = arith.fptosi %240 : vector<8x1x1xf32> to vector<8x1x1xi32>
    %c1_i32_43 = arith.constant 1 : i32
    %242 = vector.broadcast %c1_i32_43 : i32 to vector<8x1x1xi32>
    %243 = arith.subi %241, %242 : vector<8x1x1xi32>
    %c0_i32_44 = arith.constant 0 : i32
    %244 = vector.broadcast %c0_i32_44 : i32 to vector<8x1x1xi32>
    %245 = arith.cmpi slt, %243, %244 : vector<8x1x1xi32>
    %c7_i32_45 = arith.constant 7 : i32
    %246 = vector.broadcast %c7_i32_45 : i32 to vector<8x1x1xi32>
    %247 = arith.select %245, %246, %243 : vector<8x1x1xi1>, vector<8x1x1xi32>
    %248 = tpu.iota {dimensions = array<i32: 1>} : vector<8x8x1xi32>
    %249 = vector.broadcast %247 : vector<8x1x1xi32> to vector<8x8x1xi32>
    %250 = arith.cmpi eq, %248, %249 : vector<8x8x1xi32>
    %251 = arith.extui %250 : vector<8x8x1xi1> to vector<8x8x1xi32>
    %252 = arith.sitofp %251 : vector<8x8x1xi32> to vector<8x8x1xf32>
    %253 = vector.broadcast %252 : vector<8x8x1xf32> to vector<8x8x128xf32>
    %254 = arith.mulf %237, %253 : vector<8x8x128xf32>
    %cst_46 = arith.constant dense<0.000000e+00> : vector<8x128xf32>
    %255 = vector.multi_reduction <add>, %254, %cst_46 [1] : vector<8x8x128xf32> to vector<8x128xf32>
    %c0_47 = arith.constant 0 : index
    %c0_48 = arith.constant 0 : index
    %256 = vector.load %arg17[%c0_47, %c0_48] : memref<128x128xbf16, #tpu.memory_space<vmem>>, vector<128x128xbf16>
    %c0_49 = arith.constant 0 : index
    %c0_50 = arith.constant 0 : index
    %257 = vector.load %arg18[%c0_49, %c0_50] : memref<1x128xf32, #tpu.memory_space<vmem>>, vector<1x128xf32>
    %c0_51 = arith.constant 0 : index
    %c0_52 = arith.constant 0 : index
    %258 = vector.load %arg19[%c0_51, %c0_52] : memref<128x128xbf16, #tpu.memory_space<vmem>>, vector<128x128xbf16>
    %c0_53 = arith.constant 0 : index
    %c0_54 = arith.constant 0 : index
    %259 = vector.load %arg20[%c0_53, %c0_54] : memref<1x128xf32, #tpu.memory_space<vmem>>, vector<1x128xf32>
    %c0_55 = arith.constant 0 : index
    %c0_56 = arith.constant 0 : index
    %260 = vector.load %arg21[%c0_55, %c0_56] : memref<1x128xf32, #tpu.memory_space<vmem>>, vector<1x128xf32>
    %261 = arith.truncf %255 : vector<8x128xf32> to vector<8x128xbf16>
    %cst_57 = arith.constant dense<0.000000e+00> : vector<8x128xf32>
    %262 = tpu.matmul %261, %256, %cst_57 {dimension_numbers = #tpu.dot_dimension_numbers<[1], [0], [0], [1], [0, 0, 1, 1], [], []>} : vector<8x128xbf16>, vector<128x128xbf16>, vector<8x128xf32> -> vector<8x128xf32>
    %263 = vector.broadcast %257 : vector<1x128xf32> to vector<8x128xf32>
    %264 = arith.addf %262, %263 : vector<8x128xf32>
    %265 = vector.shape_cast %237 : vector<8x8x128xf32> to vector<64x128xf32>
    %266 = arith.truncf %265 : vector<64x128xf32> to vector<64x128xbf16>
    %cst_58 = arith.constant dense<0.000000e+00> : vector<64x128xf32>
    %267 = tpu.matmul %266, %258, %cst_58 {dimension_numbers = #tpu.dot_dimension_numbers<[1], [0], [0], [1], [0, 0, 1, 1], [], []>} : vector<64x128xbf16>, vector<128x128xbf16>, vector<64x128xf32> -> vector<64x128xf32>
    %268 = vector.broadcast %259 : vector<1x128xf32> to vector<64x128xf32>
    %269 = arith.addf %267, %268 : vector<64x128xf32>
    %270 = vector.shape_cast %269 : vector<64x128xf32> to vector<8x8x128xf32>
    %271 = vector.shape_cast %264 : vector<8x128xf32> to vector<8x1x128xf32>
    %272 = vector.broadcast %271 : vector<8x1x128xf32> to vector<8x8x128xf32>
    %273 = arith.addf %272, %270 : vector<8x8x128xf32>
    %274 = arith.negf %273 : vector<8x8x128xf32>
    %275 = math.exp %274 : vector<8x8x128xf32>
    %cst_59 = arith.constant 1.000000e+00 : f32
    %276 = vector.broadcast %cst_59 : f32 to vector<8x8x128xf32>
    %277 = arith.addf %276, %275 : vector<8x8x128xf32>
    %278 = arith.divf %276, %277 : vector<8x8x128xf32>
    %279 = vector.shape_cast %260 : vector<1x128xf32> to vector<1x1x128xf32>
    %280 = vector.broadcast %279 : vector<1x1x128xf32> to vector<8x8x128xf32>
    %281 = arith.mulf %278, %280 : vector<8x8x128xf32>
    %cst_60 = arith.constant dense<0.000000e+00> : vector<8x8xf32>
    %282 = vector.multi_reduction <add>, %281, %cst_60 [2] : vector<8x8x128xf32> to vector<8x8xf32>
    %283 = vector.shape_cast %282 : vector<8x8xf32> to vector<8x8x1xf32>
    %284 = arith.mulf %283, %238 : vector<8x8x1xf32>
    %285 = vector.broadcast %284 : vector<8x8x1xf32> to vector<8x8x128xf32>
    %286 = arith.mulf %285, %237 : vector<8x8x128xf32>
    %cst_61 = arith.constant dense<0.000000e+00> : vector<8x128xf32>
    %287 = vector.multi_reduction <add>, %286, %cst_61 [1] : vector<8x8x128xf32> to vector<8x128xf32>
    %c0_62 = arith.constant 0 : index
    %c0_63 = arith.constant 0 : index
    %288 = vector.load %arg22[%c0_62, %c0_63] : memref<128x128xbf16, #tpu.memory_space<vmem>>, vector<128x128xbf16>
    %c0_64 = arith.constant 0 : index
    %c0_65 = arith.constant 0 : index
    %289 = vector.load %arg23[%c0_64, %c0_65] : memref<128x128xbf16, #tpu.memory_space<vmem>>, vector<128x128xbf16>
    %c0_66 = arith.constant 0 : index
    %c0_67 = arith.constant 0 : index
    %290 = vector.load %arg24[%c0_66, %c0_67] : memref<1x128xf32, #tpu.memory_space<vmem>>, vector<1x128xf32>
    %c0_68 = arith.constant 0 : index
    %c0_69 = arith.constant 0 : index
    %291 = vector.load %arg25[%c0_68, %c0_69] : memref<128x128xbf16, #tpu.memory_space<vmem>>, vector<128x128xbf16>
    %c0_70 = arith.constant 0 : index
    %c0_71 = arith.constant 0 : index
    %292 = vector.load %arg26[%c0_70, %c0_71] : memref<1x128xf32, #tpu.memory_space<vmem>>, vector<1x128xf32>
    %293 = arith.truncf %287 : vector<8x128xf32> to vector<8x128xbf16>
    %cst_72 = arith.constant dense<0.000000e+00> : vector<8x128xf32>
    %294 = tpu.matmul %293, %288, %cst_72 {dimension_numbers = #tpu.dot_dimension_numbers<[1], [0], [0], [1], [0, 0, 1, 1], [], []>} : vector<8x128xbf16>, vector<128x128xbf16>, vector<8x128xf32> -> vector<8x128xf32>
    %295 = arith.truncf %255 : vector<8x128xf32> to vector<8x128xbf16>
    %cst_73 = arith.constant dense<0.000000e+00> : vector<8x128xf32>
    %296 = tpu.matmul %295, %289, %cst_73 {dimension_numbers = #tpu.dot_dimension_numbers<[1], [0], [0], [1], [0, 0, 1, 1], [], []>} : vector<8x128xbf16>, vector<128x128xbf16>, vector<8x128xf32> -> vector<8x128xf32>
    %297 = arith.addf %294, %296 : vector<8x128xf32>
    %298 = vector.broadcast %290 : vector<1x128xf32> to vector<8x128xf32>
    %299 = arith.addf %297, %298 : vector<8x128xf32>
    %cst_74 = arith.constant 0.000000e+00 : f32
    %300 = vector.broadcast %cst_74 : f32 to vector<8x128xf32>
    %301 = arith.maximumf %299, %300 : vector<8x128xf32>
    %302 = arith.truncf %301 : vector<8x128xf32> to vector<8x128xbf16>
    %cst_75 = arith.constant dense<0.000000e+00> : vector<8x128xf32>
    %303 = tpu.matmul %302, %291, %cst_75 {dimension_numbers = #tpu.dot_dimension_numbers<[1], [0], [0], [1], [0, 0, 1, 1], [], []>} : vector<8x128xbf16>, vector<128x128xbf16>, vector<8x128xf32> -> vector<8x128xf32>
    %304 = vector.broadcast %292 : vector<1x128xf32> to vector<8x128xf32>
    %305 = arith.addf %303, %304 : vector<8x128xf32>
    %c0_76 = arith.constant 0 : index
    %c0_77 = arith.constant 0 : index
    %306 = vector.load %arg27[%c0_76, %c0_77] : memref<8x128xf32, #tpu.memory_space<vmem>>, vector<8x128xf32>
    tpu.vector_store %arg27[%c0_76, %c0_77], %305 {strides = array<i32>} : memref<8x128xf32, #tpu.memory_space<vmem>>, vector<8x128xf32>,
    return
  }
  func.func @transform_0(%arg0: i32) -> (i32, i32, i32) {
    %c0_i32 = arith.constant 0 : i32
    %c0_i32_0 = arith.constant 0 : i32
    %c0_i32_1 = arith.constant 0 : i32
    return %arg0, %c0_i32, %c0_i32_0 : i32, i32, i32
  }
  func.func @transform_1(%arg0: i32) -> (i32, i32, i32) {
    %c0_i32 = arith.constant 0 : i32
    %c0_i32_0 = arith.constant 0 : i32
    %c0_i32_1 = arith.constant 0 : i32
    return %arg0, %c0_i32, %c0_i32_0 : i32, i32, i32
  }
  func.func @transform_2(%arg0: i32) -> (i32, i32, i32) {
    %c0_i32 = arith.constant 0 : i32
    %c0_i32_0 = arith.constant 0 : i32
    %c0_i32_1 = arith.constant 0 : i32
    return %arg0, %c0_i32, %c0_i32_0 : i32, i32, i32
  }
  func.func @transform_3(%arg0: i32) -> (i32, i32, i32) {
    %c0_i32 = arith.constant 0 : i32
    %c0_i32_0 = arith.constant 0 : i32
    %c0_i32_1 = arith.constant 0 : i32
    return %arg0, %c0_i32, %c0_i32_0 : i32, i32, i32
  }
  func.func @transform_4(%arg0: i32) -> (i32, i32, i32) {
    %c0_i32 = arith.constant 0 : i32
    %c0_i32_0 = arith.constant 0 : i32
    %c0_i32_1 = arith.constant 0 : i32
    return %arg0, %c0_i32, %c0_i32_0 : i32, i32, i32
  }
  func.func @transform_5(%arg0: i32) -> (i32, i32) {
    %c0_i32 = arith.constant 0 : i32
    %c0_i32_0 = arith.constant 0 : i32
    %c0_i32_1 = arith.constant 0 : i32
    return %c0_i32, %c0_i32_0 : i32, i32
  }
  func.func @transform_6(%arg0: i32) -> (i32, i32) {
    %c0_i32 = arith.constant 0 : i32
    %c0_i32_0 = arith.constant 0 : i32
    %c0_i32_1 = arith.constant 0 : i32
    return %c0_i32, %c0_i32_0 : i32, i32
  }
  func.func @transform_7(%arg0: i32) -> (i32, i32) {
    %c0_i32 = arith.constant 0 : i32
    %c0_i32_0 = arith.constant 0 : i32
    %c0_i32_1 = arith.constant 0 : i32
    return %c0_i32, %c0_i32_0 : i32, i32
  }
  func.func @transform_8(%arg0: i32) -> (i32, i32) {
    %c0_i32 = arith.constant 0 : i32
    %c0_i32_0 = arith.constant 0 : i32
    %c0_i32_1 = arith.constant 0 : i32
    return %c0_i32, %c0_i32_0 : i32, i32
  }
  func.func @transform_9(%arg0: i32) -> (i32, i32) {
    %c0_i32 = arith.constant 0 : i32
    %c0_i32_0 = arith.constant 0 : i32
    %c0_i32_1 = arith.constant 0 : i32
    return %c0_i32, %c0_i32_0 : i32, i32
  }
  func.func @transform_10(%arg0: i32) -> (i32, i32) {
    %c0_i32 = arith.constant 0 : i32
    %c0_i32_0 = arith.constant 0 : i32
    %c0_i32_1 = arith.constant 0 : i32
    return %c0_i32, %c0_i32_0 : i32, i32
  }
  func.func @transform_11(%arg0: i32) -> (i32, i32) {
    %c0_i32 = arith.constant 0 : i32
    %c0_i32_0 = arith.constant 0 : i32
    %c0_i32_1 = arith.constant 0 : i32
    return %c0_i32, %c0_i32_0 : i32, i32
  }
  func.func @transform_12(%arg0: i32) -> (i32, i32) {
    %c0_i32 = arith.constant 0 : i32
    %c0_i32_0 = arith.constant 0 : i32
    %c0_i32_1 = arith.constant 0 : i32
    return %c0_i32, %c0_i32_0 : i32, i32
  }
  func.func @transform_13(%arg0: i32) -> (i32, i32) {
    %c0_i32 = arith.constant 0 : i32
    %c0_i32_0 = arith.constant 0 : i32
    %c0_i32_1 = arith.constant 0 : i32
    return %c0_i32, %c0_i32_0 : i32, i32
  }
  func.func @transform_14(%arg0: i32) -> (i32, i32) {
    %c0_i32 = arith.constant 0 : i32
    %c0_i32_0 = arith.constant 0 : i32
    %c0_i32_1 = arith.constant 0 : i32
    return %c0_i32, %c0_i32_0 : i32, i32
  }
  func.func @transform_15(%arg0: i32) -> (i32, i32) {
    %c0_i32 = arith.constant 0 : i32
    %c0_i32_0 = arith.constant 0 : i32
    %c0_i32_1 = arith.constant 0 : i32
    return %c0_i32, %c0_i32_0 : i32, i32
  }
  func.func @transform_16(%arg0: i32) -> (i32, i32) {
    %c0_i32 = arith.constant 0 : i32
    %c0_i32_0 = arith.constant 0 : i32
    %c0_i32_1 = arith.constant 0 : i32
    return %c0_i32, %c0_i32_0 : i32, i32
  }
  func.func @transform_17(%arg0: i32) -> (i32, i32) {
    %c0_i32 = arith.constant 0 : i32
    %c0_i32_0 = arith.constant 0 : i32
    %c0_i32_1 = arith.constant 0 : i32
    return %c0_i32, %c0_i32_0 : i32, i32
  }
  func.func @transform_18(%arg0: i32) -> (i32, i32) {
    %c0_i32 = arith.constant 0 : i32
    %c0_i32_0 = arith.constant 0 : i32
    %c0_i32_1 = arith.constant 0 : i32
    return %c0_i32, %c0_i32_0 : i32, i32
  }
  func.func @transform_19(%arg0: i32) -> (i32, i32) {
    %c0_i32 = arith.constant 0 : i32
    %c0_i32_0 = arith.constant 0 : i32
    %c0_i32_1 = arith.constant 0 : i32
    return %c0_i32, %c0_i32_0 : i32, i32
  }
  func.func @transform_20(%arg0: i32) -> (i32, i32) {
    %c0_i32 = arith.constant 0 : i32
    %c0_i32_0 = arith.constant 0 : i32
    %c0_i32_1 = arith.constant 0 : i32
    return %c0_i32, %c0_i32_0 : i32, i32
  }
  func.func @transform_21(%arg0: i32) -> (i32, i32) {
    %c0_i32 = arith.constant 0 : i32
    %c0_i32_0 = arith.constant 0 : i32
    %c0_i32_1 = arith.constant 0 : i32
    return %c0_i32, %c0_i32_0 : i32, i32
  }
  func.func @transform_22(%arg0: i32) -> (i32, i32) {
    %c0_i32 = arith.constant 0 : i32
    %c0_i32_0 = arith.constant 0 : i32
    %c0_i32_1 = arith.constant 0 : i32
    return %c0_i32, %c0_i32_0 : i32, i32
  }
  func.func @transform_23(%arg0: i32) -> (i32, i32) {
    %c0_i32 = arith.constant 0 : i32
    %c0_i32_0 = arith.constant 0 : i32
    %c0_i32_1 = arith.constant 0 : i32
    return %c0_i32, %c0_i32_0 : i32, i32
  }
  func.func @transform_24(%arg0: i32) -> (i32, i32) {
    %c0_i32 = arith.constant 0 : i32
    %c0_i32_0 = arith.constant 0 : i32
    %c0_i32_1 = arith.constant 0 : i32
    return %c0_i32, %c0_i32_0 : i32, i32
  }
  func.func @transform_25(%arg0: i32) -> (i32, i32) {
    %c0_i32 = arith.constant 0 : i32
    %c0_i32_0 = arith.constant 0 : i32
    %c0_i32_1 = arith.constant 0 : i32
    return %c0_i32, %c0_i32_0 : i32, i32
  }
  func.func @transform_26(%arg0: i32) -> (i32, i32) {
    %c0_i32 = arith.constant 0 : i32
    %c0_i32_0 = arith.constant 0 : i32
    return %arg0, %c0_i32 : i32, i32
  }
}

</mosaic_0001>

<bundles_post_ra>
// kernel: tpu_custom_call.1
= control target key start
LH: loop header
LB: loop body
LE: loop exit
PB: predicated region body
PF: predicated region fallthrough
CT: control target
= control target key end

     0   :  { %s9281_s0 = inlined_call_operand.hbm [shape: bf16[8,8,8], index: 0, kind: input, shape index: {}]   ;;  %s9282_s1 = inlined_call_operand.hbm [shape: bf16[8,8,8], index: 1, kind: input, shape index: {}]   ;;  %s9283_s2 = inlined_call_operand.hbm [shape: bf16[8,8,128], index: 2, kind: input, shape index: {}]   ;;  %s9284_s3 = inlined_call_operand.vmem [shape: s32[8,8,1], index: 3, kind: input, shape index: {}]   ;;  %s9285_s4 = inlined_call_operand.vmem [shape: f32[8,8,1], index: 4, kind: input, shape index: {}]   ;;  %s9286_s5 = inlined_call_operand.vmem [shape: bf16[128,128], index: 5, kind: input, shape index: {}]   ;;  %s9287_s6 = inlined_call_operand.vmem [shape: f32[1,128], index: 6, kind: input, shape index: {}]   ;;  %s9288_s7 = inlined_call_operand.vmem [shape: bf16[128,128], index: 7, kind: input, shape index: {}]   ;;  %s9289_s8 = inlined_call_operand.vmem [shape: f32[1,128], index: 8, kind: input, shape index: {}]   ;;  %s9290_s9 = inlined_call_operand.vmem [shape: f32[1,128], index: 9, kind: input, shape index: {}]   ;;  %s9291_s10 = inlined_call_operand.vmem [shape: f32[1,128], index: 10, kind: input, shape index: {}]   ;;  %s9292_s11 = inlined_call_operand.hbm [shape: bf16[128,384], index: 11, kind: input, shape index: {}]   ;;  %s9293_s12 = inlined_call_operand.hbm [shape: bf16[128,384], index: 12, kind: input, shape index: {}]   ;;  %s9294_s13 = inlined_call_operand.vmem [shape: f32[1,384], index: 13, kind: input, shape index: {}]   ;;  %s9295_s14 = inlined_call_operand.hbm [shape: bf16[128,384], index: 14, kind: input, shape index: {}]   ;;  %s9296_s15 = inlined_call_operand.vmem [shape: f32[1,384], index: 15, kind: input, shape index: {}]   ;;  %s9297_s16 = inlined_call_operand.hbm [shape: bf16[128,128], index: 16, kind: input, shape index: {}]   ;;  %s9298_s17 = inlined_call_operand.vmem [shape: f32[1,128], index: 17, kind: input, shape index: {}]   ;;  %s9299_s18 = inlined_call_operand.hbm [shape: bf16[128,128], index: 18, kind: input, shape index: {}]   ;;  %s9300_s19 = inlined_call_operand.vmem [shape: f32[1,128], index: 19, kind: input, shape index: {}]   ;;  %s9301_s20 = inlined_call_operand.vmem [shape: f32[1,128], index: 20, kind: input, shape index: {}]   ;;  %s9302_s21 = inlined_call_operand.hbm [shape: bf16[128,128], index: 21, kind: input, shape index: {}]   ;;  %s9303_s22 = inlined_call_operand.hbm [shape: bf16[128,128], index: 22, kind: input, shape index: {}]   ;;  %s9304_s23 = inlined_call_operand.vmem [shape: f32[1,128], index: 23, kind: input, shape index: {}]   ;;  %s9305_s24 = inlined_call_operand.hbm [shape: bf16[128,128], index: 24, kind: input, shape index: {}]   ;;  %s9306_s25 = inlined_call_operand.vmem [shape: f32[1,128], index: 25, kind: input, shape index: {}]   ;;  %s9307_s26 = inlined_call_operand.hbm [shape: f32[8,128], index: 26, kind: output, shape index: {}]  }
   0x1   :  { %9404 = sst [smem:[#allocation64_spill]] %s9281_s0 }
   0x2   :  { %9405 = sst [smem:[#allocation65_spill]] %s9282_s1 }
   0x3   :  { %9406 = sst [smem:[#allocation66_spill]] %s9283_s2 }
   0x4   :  { %9407 = sst [smem:[#allocation67_spill]] %s9284_s3 }
   0x5   :  { %9408 = sst [smem:[#allocation68_spill]] %s9285_s4 }
   0x6   :  { %9409 = sst [smem:[#allocation69_spill]] %s9286_s5 }
   0x7   :  { %9410 = sst [smem:[#allocation70_spill]] %s9287_s6 }
   0x8   :  { %9411 = sst [smem:[#allocation71_spill]] %s9288_s7 }
   0x9   :  { %9412 = sst [smem:[#allocation72_spill]] %s9289_s8 }
   0xa   :  { %9413 = sst [smem:[#allocation73_spill]] %s9290_s9 }
   0xb   :  { %9414 = sst [smem:[#allocation74_spill]] %s9291_s10 }
   0xc   :  { %31 = vsyncpa [#allocation3], 0 }
   0xd   :  { %32 = vsyncpa [#allocation6], 0 }
   0xe   :  { %33 = vsyncpa [#allocation9], 0 }
   0xf   :  { %34 = vsyncpa [#allocation12], 0 }
  0x10   :  { %35 = vsyncpa [#allocation15], 0 }
  0x11   :  { %36 = vsyncpa [#allocation18], 0 }
  0x12   :  { %37 = vsyncpa [#allocation4], 0  ;;  %s6812_s27 = smov [#allocation5]   ;;  %s6813_s7 = smov [#allocation8]  }
  0x13   :  { %s55_s3 = sshll.u32 %s6812_s27, 4  ;;  %s95_s28 = sshll.u32 %s6813_s7, 4  ;;  %s56_s3 = int_to_ptr.vmem [resolvable:$true] %s55_s3  ;;  %s96_s28 = int_to_ptr.vmem [resolvable:$true] %s95_s28 }
  0x14   :  { %s6566_s8 = scalar_lea.vmem %s56_s3, 512  ;;  %p6571_p1 = scmp.lt.s32.totalorder %s56_s3, %s56_s3 }
  0x15   :  { %p6567_p0 = scmp.ne.s32.totalorder %s56_s3, %s6566_s8  ;;  %p6572_p2 = scmp.lt.s32.totalorder %s6566_s8, %s6566_s8 }
  0x17   :  { %p6573_p3 = por %p6572_p2, %p6571_p1 }
  0x19   :  { %p6574_p4 = pnand %p6573_p3, %p6567_p0 }
  0x1b   :  { %6577 = shalt.err (!%p6574_p4)
}
  0x1c   :  { %s6814_s4 = smov 64   ;;  %s6815_s29 = smov 4  }
  0x1d   :  { %s9415_s30 = sld [smem:[#allocation65_spill]]  ;;  %s6586_s2 = scalar_lea.vmem %s96_s28, 3072 }
  0x1e   :  { %p6587_p5 = scmp.ne.s32.totalorder %s96_s28, %s6586_s2  ;;  %p6591_p6 = scmp.lt.s32.totalorder %s96_s28, %s96_s28 }
  0x1f   :  { %p6592_p7 = scmp.lt.s32.totalorder %s6586_s2, %s6586_s2 }
  0x21   :  { %p6593_p8 = por %p6592_p7, %p6591_p6 }
  0x23   :  { %61 = dma.hbm_to_vmem [thread:$0]  %s9415_s30, 512, %s56_s3, [#allocation6], %s6814_s4, %s6814_s4, %s6815_s29  }
  0x24   :  { %p6594_p9 = pnand %p6593_p8, %p6587_p5 }
  0x26   :  { %6597 = shalt.err (!%p6594_p9)
}
  0x27   :  { %s6816_s5 = smov 192   ;;  %s6817_s10 = smov 12  }
  0x28   :  { %101 = dma.hbm_to_vmem [thread:$0]  %s9292_s11, 3072, %s96_s28, [#allocation9], %s6816_s5, %s6816_s5, %s6817_s10  }
  0x29   :  { %s6818_s27 = smov [#allocation11]   ;;  %s6819_s8 = smov [#allocation14]  }
  0x2a   :  { %s121_s7 = sshll.u32 %s6818_s27, 4  ;;  %s149_s3 = sshll.u32 %s6819_s8, 4  ;;  %s122_s7 = int_to_ptr.vmem [resolvable:$true] %s121_s7  ;;  %s150_s3 = int_to_ptr.vmem [resolvable:$true] %s149_s3 }
  0x2b   :  { %s6606_s0 = scalar_lea.vmem %s122_s7, 3072  ;;  %p6611_p11 = scmp.lt.s32.totalorder %s122_s7, %s122_s7 }
  0x2c   :  { %p6607_p10 = scmp.ne.s32.totalorder %s122_s7, %s6606_s0  ;;  %p6612_p12 = scmp.lt.s32.totalorder %s6606_s0, %s6606_s0 }
  0x2e   :  { %p6613_p13 = por %p6612_p12, %p6611_p11 }
  0x30   :  { %p6614_p0 = pnand %p6613_p13, %p6607_p10 }
  0x32   :  { %6617 = shalt.err (!%p6614_p0)
}
  0x33   :  { %127 = dma.hbm_to_vmem [thread:$0]  %s9295_s14, 3072, %s122_s7, [#allocation12], %s6816_s5, %s6816_s5, %s6817_s10  }
  0x34   :  { %s6626_s11 = scalar_lea.vmem %s150_s3, 1024  ;;  %p6631_p2 = scmp.lt.s32.totalorder %s150_s3, %s150_s3 }
  0x35   :  { %p6627_p1 = scmp.ne.s32.totalorder %s150_s3, %s6626_s11  ;;  %p6632_p3 = scmp.lt.s32.totalorder %s6626_s11, %s6626_s11 }
  0x37   :  { %p6633_p4 = por %p6632_p3, %p6631_p2 }
  0x39   :  { %p6634_p5 = pnand %p6633_p4, %p6627_p1 }
  0x3b   :  { %6637 = shalt.err (!%p6634_p5)
}
  0x3c   :  { %155 = dma.hbm_to_vmem [thread:$0]  %s9299_s18, 1024, %s150_s3, [#allocation15], %s6814_s4, %s6814_s4, %s6815_s29  }
  0x3d   :  { %s6820_s6 = smov [#allocation17]   ;;  %s6821_s27 = smov [#allocation2]  }
  0x3e   :  { %s177_s1 = sshll.u32 %s6820_s6, 4  ;;  %s43_s8 = sshll.u32 %s6821_s27, 4  ;;  %s178_s1 = int_to_ptr.vmem [resolvable:$true] %s177_s1  ;;  %s44_s8 = int_to_ptr.vmem [resolvable:$true] %s43_s8 }
  0x3f   :  { %s6646_s14 = scalar_lea.vmem %s178_s1, 1024  ;;  %p6651_p7 = scmp.lt.s32.totalorder %s178_s1, %s178_s1 }
  0x40   :  { %p6647_p6 = scmp.ne.s32.totalorder %s178_s1, %s6646_s14  ;;  %p6652_p8 = scmp.lt.s32.totalorder %s6646_s14, %s6646_s14 }
  0x42   :  { %p6653_p9 = por %p6652_p8, %p6651_p7 }
  0x44   :  { %p6654_p10 = pnand %p6653_p9, %p6647_p6 }
  0x46   :  { %6657 = shalt.err (!%p6654_p10)
}
  0x47   :  { %183 = dma.hbm_to_vmem [thread:$0]  %s9303_s22, 1024, %s178_s1, [#allocation18], %s6814_s4, %s6814_s4, %s6815_s29  }
  0x48   :  { %s6666_s18 = scalar_lea.vmem %s44_s8, 512  ;;  %p6671_p12 = scmp.lt.s32.totalorder %s44_s8, %s44_s8 }
  0x49   :  { %p6667_p11 = scmp.ne.s32.totalorder %s44_s8, %s6666_s18  ;;  %p6672_p13 = scmp.lt.s32.totalorder %s6666_s18, %s6666_s18 }
  0x4b   :  { %p6673_p0 = por %p6672_p13, %p6671_p12 }
  0x4d   :  { %p6674_p1 = pnand %p6673_p0, %p6667_p11 }
  0x4f   :  { %6677 = shalt.err (!%p6674_p1)
}
  0x50   :  { %s9416_s30 = sld [smem:[#allocation64_spill]]  ;;  %s6822_s11 = smov [#allocation7]  }
  0x51   :  { %s67_s28 = sshll.u32 %s6822_s11, 4  ;;  %s6823_s2 = smov [#allocation10]   ;;  %s68_s28 = int_to_ptr.vmem [resolvable:$true] %s67_s28 }
  0x52   :  { %s107_s6 = sshll.u32 %s6823_s2, 4  ;;  %s6686_s22 = scalar_lea.vmem %s68_s28, 512  ;;  %s108_s6 = int_to_ptr.vmem [resolvable:$true] %s107_s6 }
  0x53   :  { %p6687_p2 = scmp.ne.s32.totalorder %s68_s28, %s6686_s22  ;;  %p6691_p3 = scmp.lt.s32.totalorder %s68_s28, %s68_s28 }
  0x54   :  { %p6692_p4 = scmp.lt.s32.totalorder %s6686_s22, %s6686_s22 }
  0x56   :  { %49 = dma.hbm_to_vmem [thread:$0]  %s9416_s30, 512, %s44_s8, [#allocation3], %s6814_s4, %s6814_s4, %s6815_s29  }
  0x57   :  { %p6693_p5 = por %p6692_p4, %p6691_p3 }
  0x59   :  { %p6694_p6 = pnand %p6693_p5, %p6687_p2 }
  0x5b   :  { %6697 = shalt.err (!%p6694_p6)
}
  0x5c   :  { %s9417_s14 = sld [smem:[#allocation66_spill]]  ;;  %s6706_s8 = scalar_lea.vmem %s108_s6, 3072 }
  0x5d   :  { %p6707_p7 = scmp.ne.s32.totalorder %s108_s6, %s6706_s8  ;;  %p6711_p8 = scmp.lt.s32.totalorder %s108_s6, %s108_s6 }
  0x5e   :  { %p6712_p9 = scmp.lt.s32.totalorder %s6706_s8, %s6706_s8 }
  0x60   :  { %p6713_p10 = por %p6712_p9, %p6711_p8 }
  0x62   :  { %73 = dma.hbm_to_vmem [thread:$0]  %s9417_s14, 512, %s68_s28, [#allocation6], %s6814_s4, %s6814_s4, %s6815_s29  }
  0x63   :  { %p6714_p11 = pnand %p6713_p10, %p6707_p7 }
  0x65   :  { %6717 = shalt.err (!%p6714_p11)
}
  0x66   :  { %113 = dma.hbm_to_vmem [thread:$0]  %s9293_s12, 3072, %s108_s6, [#allocation9], %s6816_s5, %s6816_s5, %s6817_s10  }
  0x67   :  { %s6824_s18 = smov [#allocation13]   ;;  %s6825_s9 = smov [#allocation16]  }
  0x68   :  { %s135_s3 = sshll.u32 %s6824_s18, 4  ;;  %s165_s30 = sshll.u32 %s6825_s9, 4  ;;  %s136_s3 = int_to_ptr.vmem [resolvable:$true] %s135_s3  ;;  %s166_s30 = int_to_ptr.vmem [resolvable:$true] %s165_s30 }
  0x69   :  { %s6726_s11 = scalar_lea.vmem %s136_s3, 1024  ;;  %p6731_p13 = scmp.lt.s32.totalorder %s136_s3, %s136_s3 }
  0x6a   :  { %p6727_p12 = scmp.ne.s32.totalorder %s136_s3, %s6726_s11  ;;  %p6732_p0 = scmp.lt.s32.totalorder %s6726_s11, %s6726_s11 }
  0x6c   :  { %p6733_p1 = por %p6732_p0, %p6731_p13 }
  0x6e   :  { %p6734_p2 = pnand %p6733_p1, %p6727_p12 }
  0x70   :  { %6737 = shalt.err (!%p6734_p2)
}
  0x71   :  { %141 = dma.hbm_to_vmem [thread:$0]  %s9297_s16, 1024, %s136_s3, [#allocation12], %s6814_s4, %s6814_s4, %s6815_s29  }
  0x72   :  { %s6746_s12 = scalar_lea.vmem %s166_s30, 1024  ;;  %p6751_p4 = scmp.lt.s32.totalorder %s166_s30, %s166_s30 }
  0x73   :  { %p6747_p3 = scmp.ne.s32.totalorder %s166_s30, %s6746_s12  ;;  %p6752_p5 = scmp.lt.s32.totalorder %s6746_s12, %s6746_s12 }
  0x75   :  { %p6753_p6 = por %p6752_p5, %p6751_p4 }
  0x77   :  { %p6754_p7 = pnand %p6753_p6, %p6747_p3 }
  0x79   :  { %6757 = shalt.err (!%p6754_p7)
}
  0x7a   :  { %171 = dma.hbm_to_vmem [thread:$0]  %s9302_s21, 1024, %s166_s30, [#allocation15], %s6814_s4, %s6814_s4, %s6815_s29  }
  0x7b   :  { %s6826_s6 = smov [#allocation19]  }
  0x7c   :  { %s191_s22 = sshll.u32 %s6826_s6, 4  ;;  %s192_s22 = int_to_ptr.vmem [resolvable:$true] %s191_s22 }
  0x7d   :  { %s6766_s1 = scalar_lea.vmem %s192_s22, 1024  ;;  %p6771_p9 = scmp.lt.s32.totalorder %s192_s22, %s192_s22 }
  0x7e   :  { %p6767_p8 = scmp.ne.s32.totalorder %s192_s22, %s6766_s1  ;;  %p6772_p10 = scmp.lt.s32.totalorder %s6766_s1, %s6766_s1 }
  0x80   :  { %p6773_p11 = por %p6772_p10, %p6771_p9 }
  0x82   :  { %p6774_p12 = pnand %p6773_p11, %p6767_p8 }
  0x84   :  { %6777 = shalt.err (!%p6774_p12)
}
  0x85   :  { %197 = dma.hbm_to_vmem [thread:$0]  %s9305_s24, 1024, %s192_s22, [#allocation18], %s6814_s4, %s6814_s4, %s6815_s29  }
  0x86   :  { %6798 = dma.done.wait [#allocation3], 512  }
  0x87   :  { %6799 = vsyncadd [#allocation3], 4294966784 }
  0x88   :  { %6800 = dma.done.wait [#allocation6], 1024  }
  0x89   :  { %6801 = vsyncadd [#allocation6], 4294966272 }
  0x8a   :  { %6802 = dma.done.wait [#allocation9], 6144  }
  0x8b   :  { %6803 = vsyncadd [#allocation9], 4294961152 }
  0x8c   :  { %6804 = dma.done.wait [#allocation12], 4096  }
  0x8d   :  { %6805 = vsyncadd [#allocation12], 4294963200 }
  0x8e   :  { %6806 = dma.done.wait [#allocation15], 2048  }
  0x8f   :  { %6807 = vsyncadd [#allocation15], 4294965248 }
  0x90   :  { %6808 = dma.done.wait [#allocation18], 2048  }
  0x91   :  { %6809 = vsyncadd [#allocation18], 4294965248  ;;  %v6827_v0 = vmov 2   ;;  %v9312_v1 = vmov 0   ;;  %s9418_s4 = sld [smem:[#allocation69_spill]]  ;;  %v5320_v4 = vld [vmem:[#allocation5] sm:$0xff]  }
  0x92   :  { %5722 = vset.pattern.permute.xlu1 %v6827_v0  ;;  %5716 = vset.pattern.permute.xlu0 %v9312_v1  ;;  %s9419_s8 = sld [smem:[#allocation71_spill]]  ;;  %v5321_v5 = vunpack.c.l.bf16 %v5320_v4  ;;  %v5322_v6 = vunpack.c.h.bf16 %v5320_v4  ;;  %v6829_v14 = vmov 3   ;;  %v5338_v15 = vld [vmem:[#allocation5 + $0x8] sm:$0xff]   ;;  %v6830_v20 = vmov 4   ;;  %v7083_v22 = vld [vmem:[#allocation7] sm:$0xff]   ;;  %v5340_v26 = vld [vmem:[#allocation5 + $0x18] sm:$0xff]  }
  0x93   :  { %v5325_v18 = vunpack.c.l.bf16 %v5338_v15  ;;  %v5326_v19 = vunpack.c.h.bf16 %v5338_v15  ;;  %9420 = vst [vmem:[#allocation28_spill] sm:$0xff] %v7083_v22  ;;  %5465 = vmatprep.mubr.bf16.mxu0 %v7083_v22  ;;  %v5304_v28 = vld [vmem:[#allocation2] sm:$0xff]   ;;  %v5333_v29 = vunpack.c.l.bf16 %v5340_v26  ;;  %v6831_v30 = vmov 1   ;;  %5489 = vmatprep.mubr.bf16.mxu1 %v7083_v22  ;;  %v5335_v35 = vld [vmem:[#allocation2 + $0x8] sm:$0xff]   ;;  %v5336_v39 = vld [vmem:[#allocation2 + $0x10] sm:$0xff]   ;;  %s9450_s28 = sld [smem:[#allocation72_spill]] }
  0x94   :  { %v7054_v9 = vpack.i.bf16 %v5322_v6, %v5321_v5  ;;  %v5334_v31 = vunpack.c.h.bf16 %v5340_v26  ;;  %v7109_v36 = vld [vmem:[#allocation7 + $0x8] sm:$0xff]   ;;  %v5305_v37 = vunpack.c.l.bf16 %v5304_v28  ;;  %v5306_v38 = vunpack.c.h.bf16 %v5304_v28  ;;  %v7116_v42 = vld [vmem:[#allocation7 + $0x10] sm:$0xff]   ;;  %v7127_v50 = vld [vmem:[#allocation7 + $0x18] sm:$0xff]   ;;  %s9451_s5 = sld [smem:[#allocation70_spill]] }
  0x95   :  { %v7089_v24 = vpack.i.bf16 %v5326_v19, %v5325_v18  ;;  %9421 = vst [vmem:[#allocation29_spill] sm:$0xff] %v7109_v36  ;;  %v6832_v40 = vmov 5   ;;  %9422 = vst [vmem:[#allocation30_spill] sm:$0xff] %v7116_v42  ;;  %v5309_v43 = vunpack.c.l.bf16 %v5335_v35  ;;  %v5310_v44 = vunpack.c.h.bf16 %v5335_v35  ;;  %v5339_v51 = vld [vmem:[#allocation5 + $0x10] sm:$0xff]   ;;  %v5337_v55 = vld [vmem:[#allocation2 + $0x18] sm:$0xff]   ;;  %s9482_s22 = sld [smem:[#allocation74_spill]] }
  0x96   :  { %5724 = vperm.xlu1 %5722, %v7054_v9   ;;  %5718 = vperm.xlu0 %5716, %v7054_v9   ;;  %v7107_v34 = vpack.i.bf16 %v5334_v31, %v5333_v29  ;;  %v7113_v41 = vpack.i.bf16 %v5306_v38, %v5305_v37  ;;  %v5313_v45 = vunpack.c.l.bf16 %v5336_v39  ;;  %v5314_v47 = vunpack.c.h.bf16 %v5336_v39  ;;  %9423 = vst [vmem:[#allocation31_spill] sm:$0xff] %v7127_v50  ;;  %v6296_v60 = vld [vmem:[#allocation10 + $0xac] ss:$12 sps:$4 sm:$0xff]   ;;  %v6294_v61 = vld [vmem:[#allocation10 + $0xa8] ss:$12 sps:$4 sm:$0xff]   ;;  %s9561_s27 = sld [smem:[#allocation73_spill]] }
  0x97   :  { %v6274_v2 = vld [vmem:[%s9418_s4 + $0x38] sm:$0xff]   ;;  %v6276_v7 = vld [vmem:[%s9418_s4 + $0x30] sm:$0xff]   ;;  %v6278_v10 = vld [vmem:[%s9418_s4 + $0x28] sm:$0xff]   ;;  %v7120_v46 = vpack.i.bf16 %v5310_v44, %v5309_v43  ;;  %v6833_v48 = vmov 6   ;;  %v5329_v52 = vunpack.c.l.bf16 %v5339_v51  ;;  %v5330_v53 = vunpack.c.h.bf16 %v5339_v51  ;;  %s9568_s29 = sld [smem:[#allocation67_spill]] }
  0x98   :  { %v6275_v3 = vld [vmem:[%s9419_s8 + $0x38] sm:$0xff]   ;;  %5449 = vmatprep.subr.bf16.mxu0 %v6274_v2  ;;  %v6277_v8 = vld [vmem:[%s9419_s8 + $0x30] sm:$0xff]   ;;  %v6279_v11 = vld [vmem:[%s9419_s8 + $0x28] sm:$0xff]   ;;  %v7124_v49 = vpack.i.bf16 %v5314_v47, %v5313_v45  ;;  %v6834_v56 = vmov 7   ;;  %v5317_v57 = vunpack.c.l.bf16 %v5337_v55  ;;  %v5318_v58 = vunpack.c.h.bf16 %v5337_v55 }
  0x99   :  { %5473 = vmatprep.subr.bf16.mxu1 %v6275_v3  ;;  %5450 = vmatpush3.bf16.msra.mxu0 %v6274_v2  ;;  %v6280_v12 = vld [vmem:[%s9418_s4 + $0x20] sm:$0xff]   ;;  %v6282_v16 = vld [vmem:[%s9418_s4 + $0x18] sm:$0xff]   ;;  %v6284_v21 = vld [vmem:[%s9418_s4 + $0x10] sm:$0xff]   ;;  %v5771_v54 = vpack.i.bf16 %v5330_v53, %v5329_v52 }
  0x9a   :  { %5474 = vmatpush3.bf16.msra.mxu1 %v6275_v3  ;;  %5451 = vmatprep.subr.bf16.mxu0 %v6276_v7  ;;  %v6281_v13 = vld [vmem:[%s9419_s8 + $0x20] sm:$0xff]   ;;  %v6283_v17 = vld [vmem:[%s9419_s8 + $0x18] sm:$0xff]   ;;  %v6285_v23 = vld [vmem:[%s9419_s8 + $0x10] sm:$0xff]   ;;  %v7149_v59 = vpack.i.bf16 %v5318_v58, %v5317_v57 }
  0x9b   :  { %5475 = vmatprep.subr.bf16.mxu1 %v6277_v8  ;;  %5728 = vset.pattern.permute.xlu1 %v6829_v14  ;;  %v6286_v25 = vld [vmem:[%s9418_s4 + $0x8] sm:$0xff]   ;;  %v6288_v32 = vld [vmem:[%s9418_s4] sm:$0xff]   ;;  %v6297_v62 = vld [vmem:[#allocation10 + $0xb0] ss:$12 sps:$4 sm:$0xff]  }
  0x9c   :  { %5730 = vperm.xlu1 %5728, %v7054_v9   ;;  %5824 = vset.pattern.permute.xlu0 %v6829_v14  ;;  %v6287_v27 = vld [vmem:[%s9419_s8 + $0x8] sm:$0xff]   ;;  %v6289_v33 = vld [vmem:[%s9419_s8] sm:$0xff]   ;;  %v6298_v2 = vld [vmem:[#allocation10 + $0x90] ss:$12 sps:$4 sm:$0xff]  }
  0x9d   :  { %5452 = vmatpush3.bf16.msra.mxu0 %v6276_v7  ;;  %5826 = vperm.xlu0 %5824, %v7107_v34   ;;  %v6300_v63 = vld [vmem:[#allocation10 + $0x94] ss:$12 sps:$4 sm:$0xff]   ;;  %v6301_v3 = vld [vmem:[#allocation10 + $0x98] ss:$12 sps:$4 sm:$0xff]   ;;  %v6304_v4 = vld [vmem:[#allocation10 + $0x7c] ss:$12 sps:$4 sm:$0xff]  }
  0x9e   :  { %5476 = vmatpush3.bf16.msra.mxu1 %v6277_v8  ;;  %5453 = vmatprep.subr.bf16.mxu0 %v6278_v10  ;;  %v6302_v5 = vld [vmem:[#allocation10 + $0x78] ss:$12 sps:$4 sm:$0xff]   ;;  %v6305_v6 = vld [vmem:[#allocation10 + $0x80] ss:$12 sps:$4 sm:$0xff]   ;;  %v6325_v29 = vld [vmem:[#allocation10 + $0x8] ss:$12 sps:$4 sm:$0xff]  }
  0x9f   :  { %5477 = vmatprep.subr.bf16.mxu1 %v6279_v11  ;;  %v6308_v7 = vld [vmem:[#allocation10 + $0x64] ss:$12 sps:$4 sm:$0xff]   ;;  %v6306_v8 = vld [vmem:[#allocation10 + $0x60] ss:$12 sps:$4 sm:$0xff]  }
  0xa0   :  { %5734 = vset.pattern.permute.xlu1 %v6830_v20  ;;  %v6324_v28 = vld [vmem:[#allocation10 + $0x4] ss:$12 sps:$4 sm:$0xff]   ;;  %v6328_v31 = vld [vmem:[#allocation8 + $0xac] ss:$12 sps:$4 sm:$0xff]  }
  0xa1   :  { %5454 = vmatpush3.bf16.msra.mxu0 %v6278_v10  ;;  %5736 = vperm.xlu1 %5734, %v7054_v9   ;;  %v6312_v10 = vld [vmem:[#allocation10 + $0x4c] ss:$12 sps:$4 sm:$0xff]  }
  0xa2   :  { %5478 = vmatpush3.bf16.msra.mxu1 %v6279_v11  ;;  %5455 = vmatprep.subr.bf16.mxu0 %v6280_v12  ;;  %v6310_v11 = vld [vmem:[#allocation10 + $0x48] ss:$12 sps:$4 sm:$0xff]  }
  0xa3   :  { %5479 = vmatprep.subr.bf16.mxu1 %v6281_v13  ;;  %5830 = vset.pattern.permute.xlu0 %v9312_v1 }
  0xa4   :  { %5832 = vperm.xlu0 %5830, %v7089_v24  }
  0xa5   :  { %5456 = vmatpush3.bf16.msra.mxu0 %v6280_v12  ;;  %5740 = vset.pattern.permute.xlu1 %v6831_v30  ;;  %v6313_v12 = vld [vmem:[#allocation10 + $0x50] ss:$12 sps:$4 sm:$0xff]  }
  0xa6   :  { %5480 = vmatpush3.bf16.msra.mxu1 %v6281_v13  ;;  %5457 = vmatprep.subr.bf16.mxu0 %v6282_v16  ;;  %v6316_v13 = vld [vmem:[#allocation10 + $0x34] ss:$12 sps:$4 sm:$0xff]  }
  0xa7   :  { %5481 = vmatprep.subr.bf16.mxu1 %v6283_v17  ;;  %5742 = vperm.xlu1 %5740, %v7089_v24  }
  0xa8   :  { %5849 = vperm.xlu0 %5830, %v7113_v41  }
  0xa9   :  { %5458 = vmatpush3.bf16.msra.mxu0 %v6282_v16  ;;  %v6314_v16 = vld [vmem:[#allocation10 + $0x30] ss:$12 sps:$4 sm:$0xff]  }
  0xaa   :  { %5482 = vmatpush3.bf16.msra.mxu1 %v6283_v17  ;;  %5459 = vmatprep.subr.bf16.mxu0 %v6284_v21  ;;  %v6317_v17 = vld [vmem:[#allocation10 + $0x38] ss:$12 sps:$4 sm:$0xff]  }
  0xab   :  { %5483 = vmatprep.subr.bf16.mxu1 %v6285_v23  ;;  %5746 = vset.pattern.permute.xlu1 %v6832_v40 }
  0xac   :  { %5748 = vperm.xlu1 %5746, %v7054_v9   ;;  %5853 = vset.pattern.permute.xlu0 %v6827_v0 }
  0xad   :  { %5460 = vmatpush3.bf16.msra.mxu0 %v6284_v21  ;;  %5855 = vperm.xlu0 %5853, %v7089_v24   ;;  %v6320_v21 = vld [vmem:[#allocation10 + $0x1c] ss:$12 sps:$4 sm:$0xff]  }
  0xae   :  { %5484 = vmatpush3.bf16.msra.mxu1 %v6285_v23  ;;  %5461 = vmatprep.subr.bf16.mxu0 %v6286_v25 }
  0xaf   :  { %5485 = vmatprep.subr.bf16.mxu1 %v6287_v27 }
  0xb0   :  { %5752 = vset.pattern.permute.xlu1 %v6833_v48 }
  0xb1   :  { %5462 = vmatpush3.bf16.msra.mxu0 %v6286_v25  ;;  %5754 = vperm.xlu1 %5752, %v7054_v9   ;;  %v6321_v25 = vld [vmem:[#allocation10 + $0x20] ss:$12 sps:$4 sm:$0xff]  }
  0xb2   :  { %5486 = vmatpush3.bf16.msra.mxu1 %v6287_v27  ;;  %5463 = vmatprep.subr.bf16.mxu0 %v6288_v32  ;;  %v6322_v27 = vld [vmem:[#allocation10] ss:$12 sps:$4 sm:$0xff]  }
  0xb3   :  { %5487 = vmatprep.subr.bf16.mxu1 %v6289_v33  ;;  %5872 = vperm.xlu0 %5853, %v7113_v41  }
  0xb5   :  { %5464 = vmatpush3.bf16.msra.mxu0 %v6288_v32  ;;  %5758 = vset.pattern.permute.xlu1 %v6829_v14 }
  0xb6   :  { %5488 = vmatpush3.bf16.msra.mxu1 %v6289_v33  ;;  %5760 = vperm.xlu1 %5758, %v7089_v24  }
  0xb7   :  { %5876 = vset.pattern.permute.xlu0 %v6834_v56  ;;  %2102 = vmatprep.subr.bf16.mxu0 %v6296_v60 }
  0xb8   :  { %5466 = vmatmul.mubr.bf16.vlgmr.msra.gmra.mxu0 %v7109_v36  ;;  %5878 = vperm.xlu0 %5876, %v7054_v9  }
  0xb9   :  { %5490 = vmatmul.mubr.bf16.vlgmr.msra.gmra.mxu1 %v7109_v36  ;;  %5469 = vmatprep.mubr.bf16.mxu0 %v7116_v42 }
  0xba   :  { %5493 = vmatprep.mubr.bf16.mxu1 %v7116_v42  ;;  %5764 = vset.pattern.permute.xlu1 %v6830_v20 }
  0xbb   :  { %5766 = vperm.xlu1 %5764, %v7089_v24   ;;  %2103 = vmatpush1.bf16.msra.mxu0 %v6294_v61  ;;  %v698_v61 = vlaneseq }
  0xbc   :  { %5895 = vperm.xlu0 %5876, %v7107_v34   ;;  %5497 = vmatprep.subr.bf16.mxu1 %v6297_v62 }
  0xbd   :  { %5498 = vmatpush3.bf16.msra.mxu1 %v6297_v62  ;;  %2104 = vmatprep.subr.bf16.mxu0 %v6300_v63 }
  0xbe   :  { %5499 = vmatprep.subr.bf16.mxu1 %v6301_v3 }
  0xbf   :  { %5770 = vset.pattern.permute.xlu1 %v9312_v1  ;;  %2105 = vmatpush1.bf16.msra.mxu0 %v6298_v2 }
  0xc0   :  { %5470 = vmatmul.mubr.bf16.gmra.mxu0 %v7127_v50  ;;  %5772 = vperm.xlu1 %5770, %v5771_v54  }
  0xc1   :  { %5494 = vmatmul.mubr.bf16.gmra.mxu1 %v7127_v50  ;;  %2134 = vmatprep.mubr.bf16.mxu0 %v9312_v1 }
  0xc2   :  { %5899 = vset.pattern.permute.xlu0 %v6831_v30  ;;  %5500 = vmatpush3.bf16.msra.mxu1 %v6301_v3 }
  0xc3   :  { %5901 = vperm.xlu0 %5899, %v7054_v9   ;;  %2106 = vmatprep.subr.bf16.mxu0 %v6304_v4  ;;  %v6309_v9 = vld [vmem:[#allocation10 + $0x68] ss:$12 sps:$4 sm:$0xff]  }
  0xc4   :  { %5776 = vset.pattern.permute.xlu1 %v6832_v40  ;;  %5501 = vmatprep.subr.bf16.mxu1 %v6305_v6 }
  0xc5   :  { %5778 = vperm.xlu1 %5776, %v7089_v24   ;;  %2107 = vmatpush1.bf16.msra.mxu0 %v6302_v5 }
  0xc6   :  { %5502 = vmatpush3.bf16.msra.mxu1 %v6305_v6  ;;  %2108 = vmatprep.subr.bf16.mxu0 %v6308_v7 }
  0xc7   :  { %5906 = vperm.xlu0 %5899, %v5771_v54   ;;  %5503 = vmatprep.subr.bf16.mxu1 %v6309_v9 }
  0xc9   :  { %5782 = vset.pattern.permute.xlu1 %v6827_v0  ;;  %2109 = vmatpush1.bf16.msra.mxu0 %v6306_v8 }
  0xca   :  { %5784 = vperm.xlu1 %5782, %v5771_v54   ;;  %5504 = vmatpush3.bf16.msra.mxu1 %v6309_v9 }
  0xcb   :  { %5923 = vperm.xlu0 %5899, %v7120_v46   ;;  %2110 = vmatprep.subr.bf16.mxu0 %v6312_v10 }
  0xcc   :  { %5505 = vmatprep.subr.bf16.mxu1 %v6313_v12 }
  0xcd   :  { %2111 = vmatpush1.bf16.msra.mxu0 %v6310_v11 }
  0xce   :  { %5788 = vset.pattern.permute.xlu1 %v6829_v14  ;;  %5506 = vmatpush3.bf16.msra.mxu1 %v6313_v12 }
  0xcf   :  { %5790 = vperm.xlu1 %5788, %v5771_v54   ;;  %5927 = vset.pattern.permute.xlu0 %v6833_v48 }
  0xd0   :  { %5929 = vperm.xlu0 %5927, %v7089_v24   ;;  %2112 = vmatprep.subr.bf16.mxu0 %v6316_v13 }
  0xd1   :  { %2113 = vmatpush1.bf16.msra.mxu0 %v6314_v16  ;;  %5507 = vmatprep.subr.bf16.mxu1 %v6317_v17 }
  0xd2   :  { %5508 = vmatpush3.bf16.msra.mxu1 %v6317_v17  ;;  %2114 = vmatprep.subr.bf16.mxu0 %v6320_v21 }
  0xd3   :  { %5794 = vset.pattern.permute.xlu1 %v6834_v56  ;;  %5509 = vmatprep.subr.bf16.mxu1 %v6321_v25 }
  0xd4   :  { %5796 = vperm.xlu1 %5794, %v7089_v24   ;;  %5946 = vperm.xlu0 %5927, %v7113_v41   ;;  %v6318_v24 = vld [vmem:[#allocation10 + $0x18] ss:$12 sps:$4 sm:$0xff]  }
  0xd5   :  { %2115 = vmatpush1.bf16.msra.mxu0 %v6318_v24 }
  0xd6   :  { %5510 = vmatpush3.bf16.msra.mxu1 %v6321_v25  ;;  %2116 = vmatprep.subr.bf16.mxu0 %v6324_v28 }
  0xd7   :  { %5511 = vmatprep.subr.bf16.mxu1 %v6325_v29 }
  0xd8   :  { %5800 = vset.pattern.permute.xlu1 %v9312_v1  ;;  %5950 = vset.pattern.permute.xlu0 %v6830_v20 }
  0xd9   :  { %5802 = vperm.xlu1 %5800, %v7107_v34   ;;  %5952 = vperm.xlu0 %5950, %v5771_v54  }
  0xda   :  { %2117 = vmatpush1.bf16.msra.mxu0 %v6322_v27  ;;  %5512 = vmatpush3.bf16.msra.mxu1 %v6325_v29 }
  0xdb   :  { %2368 = vmatprep.subr.bf16.mxu0 %v6328_v31 }
  0xdd   :  { %5806 = vset.pattern.permute.xlu1 %v6831_v30  ;;  %5969 = vperm.xlu0 %5950, %v7120_v46  }
  0xde   :  { %5808 = vperm.xlu1 %5806, %v7107_v34  }
  0xe1   :  { %5973 = vset.pattern.permute.xlu0 %v6832_v40 }
  0xe2   :  { %5812 = vset.pattern.permute.xlu1 %v6827_v0  ;;  %5975 = vperm.xlu0 %5973, %v5771_v54  }
  0xe3   :  { %5814 = vperm.xlu1 %5812, %v7107_v34  }
  0xe6   :  { %5992 = vperm.xlu0 %5973, %v7120_v46  }
  0xe7   :  { %5818 = vset.pattern.permute.xlu1 %v6833_v48 }
  0xe8   :  { %5820 = vperm.xlu1 %5818, %v5771_v54  }
  0xea   :  { %6008 = vset.pattern.permute.xlu0 %v6829_v14 }
  0xeb   :  { %6010 = vperm.xlu0 %6008, %v7124_v49  }
  0xec   :  { %5836 = vset.pattern.permute.xlu1 %v6834_v56 }
  0xed   :  { %5838 = vperm.xlu1 %5836, %v5771_v54  }
  0xef   :  { %6026 = vset.pattern.permute.xlu0 %v9312_v1 }
  0xf0   :  { %6028 = vperm.xlu0 %6026, %v7149_v59  }
  0xf1   :  { %5842 = vset.pattern.permute.xlu1 %v6830_v20 }
  0xf2   :  { %5844 = vperm.xlu1 %5842, %v7107_v34  }
  0xf4   :  { %6044 = vset.pattern.permute.xlu0 %v6827_v0 }
  0xf5   :  { %6046 = vperm.xlu0 %6044, %v7149_v59  }
  0xf6   :  { %5859 = vset.pattern.permute.xlu1 %v6831_v30 }
  0xf7   :  { %5861 = vperm.xlu1 %5859, %v7113_v41  }
  0xf9   :  { %6062 = vset.pattern.permute.xlu0 %v6834_v56 }
  0xfa   :  { %6064 = vperm.xlu0 %6062, %v7124_v49  }
  0xfb   :  { %5865 = vset.pattern.permute.xlu1 %v6832_v40 }
  0xfc   :  { %5867 = vperm.xlu1 %5865, %v7107_v34  }
  0xfe   :  { %6080 = vset.pattern.permute.xlu0 %v6833_v48 }
  0xff   :  { %6082 = vperm.xlu0 %6080, %v7149_v59  }
 0x100   :  { %5882 = vset.pattern.permute.xlu1 %v6833_v48 }
 0x101   :  { %5884 = vperm.xlu1 %5882, %v7107_v34  }
 0x103   :  { %6098 = vset.pattern.permute.xlu0 %v9312_v1 }
 0x105   :  { %5888 = vset.pattern.permute.xlu1 %v6829_v14 }
 0x106   :  { %5890 = vperm.xlu1 %5888, %v7113_v41  }
 0x10a   :  { %5910 = vset.pattern.permute.xlu1 %v6830_v20 }
 0x10b   :  { %5912 = vperm.xlu1 %5910, %v7113_v41  }
 0x10f   :  { %5916 = vset.pattern.permute.xlu1 %v9312_v1 }
 0x110   :  { %5918 = vperm.xlu1 %5916, %v7120_v46  }
 0x111   :  { %v7198_v15 = vpop.permute.xlu1 %5724  ;;  %v7210_v23 = vpop.permute.xlu0 %5718 }
 0x112   :  { %9424 = vst [vmem:[#allocation32_spill] sm:$0xff] %v7198_v15  ;;  %9427 = vst [vmem:[#allocation35_spill] sm:$0xff] %v7210_v23 }
 0x114   :  { %5933 = vset.pattern.permute.xlu1 %v6832_v40 }
 0x115   :  { %5935 = vperm.xlu1 %5933, %v7113_v41  }
 0x117   :  { %v7202_v18 = vpop.permute.xlu1 %5730 }
 0x118   :  { %9425 = vst [vmem:[#allocation33_spill] sm:$0xff] %v7202_v18  ;;  %v7216_v32 = vpop.permute.xlu0 %5826 }
 0x119   :  { %5939 = vset.pattern.permute.xlu1 %v6827_v0  ;;  %9428 = vst [vmem:[#allocation36_spill] sm:$0xff] %v7216_v32 }
 0x11a   :  { %5941 = vperm.xlu1 %5939, %v7120_v46  }
 0x11c   :  { %v7206_v19 = vpop.permute.xlu1 %5736 }
 0x11d   :  { %9426 = vst [vmem:[#allocation34_spill] sm:$0xff] %v7206_v19 }
 0x11e   :  { %5956 = vset.pattern.permute.xlu1 %v6829_v14 }
 0x11f   :  { %5958 = vperm.xlu1 %5956, %v7120_v46   ;;  %v7222_v34 = vpop.permute.xlu0 %5832 }
 0x122   :  { %v7212_v26 = vpop.permute.xlu1 %5742 }
 0x123   :  { %5962 = vset.pattern.permute.xlu1 %v6834_v56  ;;  %v7228_v37 = vpop.permute.xlu0 %5849  ;;  %v9456_v32 = vunpack.i.l.bf16 %v7212_v26 }
 0x124   :  { %5964 = vperm.xlu1 %5962, %v7113_v41  }
 0x127   :  { %v7218_v33 = vpop.permute.xlu1 %5748 }
 0x128   :  { %9429 = vst [vmem:[#allocation37_spill] sm:$0xff] %v7218_v33  ;;  %5979 = vset.pattern.permute.xlu1 %v9312_v1  ;;  %v7234_v39 = vpop.permute.xlu0 %5855  ;;  %v9460_v33 = vunpack.i.h.bf16 %v7222_v34 }
 0x129   :  { %5981 = vperm.xlu1 %5979, %v7124_v49  }
 0x12c   :  { %v7224_v35 = vpop.permute.xlu1 %5754 }
 0x12d   :  { %9430 = vst [vmem:[#allocation38_spill] sm:$0xff] %v7224_v35  ;;  %5985 = vset.pattern.permute.xlu1 %v6831_v30 }
 0x12e   :  { %5987 = vperm.xlu1 %5985, %v7124_v49   ;;  %v7239_v43 = vpop.permute.xlu0 %5872 }
 0x131   :  { %v7230_v38 = vpop.permute.xlu1 %5760 }
 0x132   :  { %5996 = vset.pattern.permute.xlu1 %v6827_v0 }
 0x133   :  { %5998 = vperm.xlu1 %5996, %v7124_v49   ;;  %v7245_v45 = vpop.permute.xlu0 %5878 }
 0x134   :  { %9431 = vst [vmem:[#allocation39_spill] sm:$0xff] %v7245_v45 }
 0x136   :  { %v7236_v41 = vpop.permute.xlu1 %5766 }
 0x137   :  { %6002 = vset.pattern.permute.xlu1 %v6833_v48  ;;  %v7250_v47 = vpop.permute.xlu0 %5895  ;;  %v9464_v23 = vunpack.i.h.bf16 %v7236_v41 }
 0x138   :  { %6004 = vperm.xlu1 %6002, %v7120_v46   ;;  %9432 = vst [vmem:[#allocation40_spill] sm:$0xff] %v7250_v47 }
 0x13b   :  { %v7242_v44 = vpop.permute.xlu1 %5772 }
 0x13c   :  { %6014 = vset.pattern.permute.xlu1 %v6834_v56 }
 0x13d   :  { %6016 = vperm.xlu1 %6014, %v7120_v46   ;;  %v7264_v46 = vld [vmem:[#allocation8 + $0xb0] ss:$12 sps:$4 sm:$0xff]  }
 0x13e   :  { %v7256_v52 = vpop.permute.xlu0 %5901  ;;  %9434 = vst [vmem:[#allocation42_spill] sm:$0xff] %v7264_v46  ;;  %5521 = vmatprep.subr.bf16.mxu1 %v7264_v46  ;;  %v9455_v46 = vunpack.i.l.bf16 %v7222_v34 }
 0x13f   :  { %9433 = vst [vmem:[#allocation41_spill] sm:$0xff] %v7256_v52 }
 0x140   :  { %v7248_v0 = vpop.permute.xlu1 %5778 }
 0x141   :  { %6020 = vset.pattern.permute.xlu1 %v6830_v20  ;;  %v9462_v15 = vunpack.i.l.bf16 %v7248_v0 }
 0x142   :  { %6022 = vperm.xlu1 %6020, %v7124_v49   ;;  %v7260_v53 = vpop.permute.xlu0 %5906 }
 0x145   :  { %v7254_v51 = vpop.permute.xlu1 %5784 }
 0x146   :  { %6032 = vset.pattern.permute.xlu1 %v6831_v30  ;;  %v7269_v55 = vpop.permute.xlu0 %5923 }
 0x147   :  { %6034 = vperm.xlu1 %6032, %v7149_v59   ;;  %v5925_v28 = vunpack.i.l.bf16 %v7269_v55 }
 0x14a   :  { %v7262_v54 = vpop.permute.xlu1 %5790 }
 0x14b   :  { %6038 = vset.pattern.permute.xlu1 %v6832_v40  ;;  %v7275_v30 = vpop.permute.xlu0 %5929 }
 0x14c   :  { %6040 = vperm.xlu1 %6038, %v7124_v49  }
 0x14f   :  { %v7271_v57 = vpop.permute.xlu1 %5796  ;;  %v7281_v60 = vpop.permute.xlu0 %5946 }
 0x150   :  { %6050 = vset.pattern.permute.xlu1 %v6833_v48  ;;  %v7287_v48 = vshrl.u32 %v698_v61, 7  ;;  %v7416_v61 = vld [vmem:[%s9451_s5] ss:$0 sm:$0xff] }
 0x151   :  { %6052 = vperm.xlu1 %6050, %v7124_v49  }
 0x152   :  { %9437 = vst [vmem:[#allocation45_spill] sm:$0xff] %v7287_v48  ;;  %v7299_v2 = vsub.s32 0, %v7287_v48  ;;  %v7305_v3 = vsub.s32 4, %v7287_v48  ;;  %v7308_v4 = vsub.s32 2, %v7287_v48  ;;  %v7311_v5 = vsub.s32 5, %v7287_v48 }
 0x153   :  { %v7317_v6 = vsub.s32 7, %v7287_v48 }
 0x154   :  { %v7277_v58 = vpop.permute.xlu1 %5802  ;;  %v7289_v49 = vpop.permute.xlu0 %5952  ;;  %9440 = vst [vmem:[#allocation48_spill] sm:$0xff] %v7299_v2  ;;  %9442 = vst [vmem:[#allocation50_spill] sm:$0xff] %v7305_v3 }
 0x155   :  { %9435 = vst [vmem:[#allocation43_spill] sm:$0xff] %v7277_v58  ;;  %6056 = vset.pattern.permute.xlu1 %v6829_v14  ;;  %v7296_v14 = vsub.s32 1, %v7287_v48  ;;  %9443 = vst [vmem:[#allocation51_spill] sm:$0xff] %v7311_v5 }
 0x156   :  { %6058 = vperm.xlu1 %6056, %v7149_v59   ;;  %9445 = vst [vmem:[#allocation53_spill] sm:$0xff] %v7317_v6 }
 0x157   :  { %9439 = vst [vmem:[#allocation47_spill] sm:$0xff] %v7296_v14 }
 0x158   :  { %v7323_v11 = vpop.permute.xlu0 %5969 }
 0x159   :  { %v7283_v62 = vpop.permute.xlu1 %5808 }
 0x15a   :  { %9436 = vst [vmem:[#allocation44_spill] sm:$0xff] %v7283_v62  ;;  %6068 = vset.pattern.permute.xlu1 %v6830_v20  ;;  %v7302_v20 = vsub.s32 3, %v7287_v48 }
 0x15b   :  { %6070 = vperm.xlu1 %6068, %v7149_v59  }
 0x15c   :  { %9441 = vst [vmem:[#allocation49_spill] sm:$0xff] %v7302_v20 }
 0x15d   :  { %v7355_v9 = vpop.permute.xlu0 %5975 }
 0x15e   :  { %v7291_v63 = vpop.permute.xlu1 %5814 }
 0x15f   :  { %9438 = vst [vmem:[#allocation46_spill] sm:$0xff] %v7291_v63  ;;  %6074 = vset.pattern.permute.xlu1 %v6832_v40  ;;  %v7314_v40 = vsub.s32 6, %v7287_v48 }
 0x160   :  { %6076 = vperm.xlu1 %6074, %v7149_v59  }
 0x161   :  { %9444 = vst [vmem:[#allocation52_spill] sm:$0xff] %v7314_v40  ;;  %v7374_v24 = vpop.permute.xlu0 %5992 }
 0x162   :  { %9447 = vst [vmem:[#allocation55_spill] sm:$0xff] %v7374_v24 }
 0x163   :  { %v7329_v21 = vpop.permute.xlu1 %5820 }
 0x164   :  { %6086 = vset.pattern.permute.xlu1 %v6834_v56 }
 0x165   :  { %6088 = vperm.xlu1 %6086, %v7149_v59   ;;  %v7407_v59 = vld [vmem:[%s9450_s28] ss:$0 sm:$0xff]  ;;  %s6838_s28 = smov [#allocation20]  }
 0x166   :  { %v7394_v29 = vpop.permute.xlu0 %6010  ;;  %s5044_s2 = sshll.u32 %s6838_s28, 4  ;;  %s5045_s2 = int_to_ptr.vmem [resolvable:$true] %s5044_s2 }
 0x167   :  { %9449 = vst [vmem:[#allocation57_spill] sm:$0xff] %v7394_v29  ;;  %p6783_p0 = scmp.lt.s32.totalorder %s5045_s2, %s5045_s2 }
 0x168   :  { %v7353_v8 = vpop.permute.xlu1 %5838 }
 0x169   :  { %9446 = vst [vmem:[#allocation54_spill] sm:$0xff] %v7353_v8  ;;  %6092 = vset.pattern.permute.xlu1 %v9312_v1  ;;  %v9458_v8 = vunpack.i.l.bf16 %v7236_v41 }
 0x16b   :  { %v7426_v16 = vpop.permute.xlu0 %6028 }
 0x16c   :  { %9452 = vst [vmem:[#allocation58_spill] sm:$0xff] %v7426_v16 }
 0x16d   :  { %v7378_v56 = vpop.permute.xlu1 %5844 }
 0x16e   :  { %9448 = vst [vmem:[#allocation56_spill] sm:$0xff] %v7378_v56 }
 0x172   :  { %v7402_v13 = vpop.permute.xlu1 %5861 }
 0x177   :  { %v7441_v36 = vpop.permute.xlu1 %5867 }
 0x178   :  { %v5467_v7 = vpop.f32.mrf.mxu0  ;;  %9453 = vst [vmem:[#allocation59_spill] sm:$0xff] %v7441_v36 }
 0x179   :  { %v7422_v31 = vadd.f32 %v5467_v7, %v7416_v61  ;;  %v5491_v17 = vpop.f32.mrf.mxu1 }
 0x17a   :  { %v636_v50 = vadd.f32 %v5491_v17, %v7407_v59  ;;  %v508_v42 = vpop.f32.mrf.mxu0 }
 0x17b   :  { %v781_v7 = vrot.slane %v7422_v31, %v7296_v14  ;;  %v7435_v25 = vadd.f32 %v7416_v61, %v508_v42  ;;  %v627_v10 = vpop.f32.mrf.mxu1 }
 0x17c   :  { %v7444_v17 = vadd.f32 %v7407_v59, %v627_v10  ;;  %v5468_v27 = vpop.f32.mrf.mxu0  ;;  %v1363_v1 = vrot.slane %v636_v50, %v7299_v2  ;;  %v1435_v22 = vrot.slane %v636_v50, %v7296_v14  ;;  %v1515_v42 = vrot.slane %v636_v50, %v7308_v4  ;;  %v7475_v35 = vpop.permute.xlu1 %5884 }
 0x17d   :  { %v7449_v16 = vmul.f32 %v5925_v28, %v781_v7  ;;  %v7454_v48 = vadd.f32 %v5468_v27, %v7416_v61  ;;  %v5492_v47 = vpop.f32.mrf.mxu1  ;;  %v1595_v62 = vrot.slane %v636_v50, %v7302_v20  ;;  %v1675_v28 = vrot.slane %v636_v50, %v7305_v3  ;;  %9459 = vst [vmem:[#allocation61_spill] sm:$0xff] %v7475_v35 }
 0x17e   :  { %9454 = vst [vmem:[#allocation60_spill] sm:$0xff] %v7444_v17  ;;  %v639_v10 = vadd.f32 %v5492_v47, %v7407_v59  ;;  %v1386_v56 = vmul.f32 %v9455_v46, %v1363_v1  ;;  %v1458_v63 = vmul.f32 %v9456_v32, %v1435_v22  ;;  %v1755_v7 = vrot.slane %v636_v50, %v7311_v5  ;;  %v511_v34 = vpop.f32.mrf.mxu0 }
 0x17f   :  { %v1835_v29 = vrot.slane %v636_v50, %v7314_v40  ;;  %v1915_v27 = vrot.slane %v636_v50, %v7317_v6  ;;  %v630_v12 = vpop.f32.mrf.mxu1  ;;  %v9457_v32 = vunpack.i.l.bf16 %v7230_v38  ;;  %v1698_v45 = vmul.f32 %v9458_v8, %v1675_v28 }
 0x180   :  { %v1367_v36 = vrot.slane %v639_v10, %v7299_v2  ;;  %v1439_v47 = vrot.slane %v639_v10, %v7296_v14  ;;  %v1466_v58 = vadd.f32 %v1458_v63, %v1386_v56  ;;  %v1519_v1 = vrot.slane %v639_v10, %v7308_v4 }
 0x181   :  { %v1599_v22 = vrot.slane %v639_v10, %v7302_v20  ;;  %v1618_v46 = vmul.f32 %v9457_v32, %v1595_v62  ;;  %v1679_v24 = vrot.slane %v639_v10, %v7305_v3  ;;  %v5495_v50 = vpop.f32.mrf.mxu1  ;;  %v9461_v63 = vunpack.i.h.bf16 %v7212_v26 }
 0x182   :  { %v1387_v19 = vmul.f32 %v9460_v33, %v1367_v36  ;;  %v1759_v18 = vrot.slane %v639_v10, %v7311_v5  ;;  %v1778_v52 = vmul.f32 %v9462_v15, %v1755_v7  ;;  %v9463_v62 = vunpack.i.h.bf16 %v7230_v38 }
 0x183   :  { %v1459_v56 = vmul.f32 %v9461_v63, %v1439_v47  ;;  %v1699_v8 = vmul.f32 %v9464_v23, %v1679_v24  ;;  %v1839_v28 = vrot.slane %v639_v10, %v7314_v40  ;;  %v1919_v17 = vrot.slane %v639_v10, %v7317_v6 }
 0x184   :  { %v1619_v32 = vmul.f32 %v9463_v62, %v1599_v22  ;;  %v9465_v26 = vunpack.i.h.bf16 %v7248_v0  ;;  %v9466_v47 = vunpack.i.l.bf16 %v7271_v57  ;;  %v9467_v15 = vunpack.i.l.bf16 %v7234_v39  ;;  %v643_v0 = vpop.f32.mrf.mxu1 }
 0x185   :  { %v1467_v36 = vadd.f32 %v1459_v56, %v1387_v19  ;;  %v9468_v38 = vunpack.i.h.bf16 %v7271_v57  ;;  %v9469_v23 = vunpack.i.h.bf16 %v7275_v30  ;;  %v9470_v24 = vunpack.i.h.bf16 %v7234_v39 }
 0x186   :  { %v1779_v33 = vmul.f32 %v9465_v26, %v1759_v18  ;;  %v1938_v63 = vmul.f32 %v9466_v47, %v1915_v27  ;;  %v1538_v7 = vmul.f32 %v9467_v15, %v1515_v42  ;;  %v9471_v19 = vunpack.i.l.bf16 %v7275_v30 }
 0x187   :  { %v1939_v22 = vmul.f32 %v9468_v38, %v1919_v17  ;;  %v1859_v41 = vmul.f32 %v9469_v23, %v1839_v28  ;;  %v1539_v10 = vmul.f32 %v9470_v24, %v1519_v1  ;;  %v7505_v62 = vadd.f32 %v7416_v61, %v511_v34  ;;  %v5891_v17 = vpop.permute.xlu1 %5890  ;;  %v5496_v28 = vpop.f32.mrf.mxu1 }
 0x188   :  { %v1858_v56 = vmul.f32 %v9471_v19, %v1835_v29  ;;  %v1546_v18 = vadd.f32 %v1538_v7, %v1466_v58  ;;  %v7508_v27 = vadd.f32 %v7407_v59, %v630_v12  ;;  %v7513_v39 = vadd.f32 %v5495_v50, %v7407_v59 }
 0x189   :  { %v1547_v42 = vadd.f32 %v1539_v10, %v1467_v36  ;;  %v1173_v30 = vrot.slane %v7435_v25, %v7314_v40  ;;  %v1177_v58 = vrot.slane %v7505_v62, %v7314_v40  ;;  %v7520_v1 = vadd.f32 %v7407_v59, %v643_v0 }
 0x18a   :  { %v1626_v29 = vadd.f32 %v1618_v46, %v1546_v18  ;;  %v701_v12 = vrot.slane %v7435_v25, %v7299_v2  ;;  %v9472_v36 = vunpack.i.l.bf16 %v7281_v60  ;;  %v705_v50 = vrot.slane %v7505_v62, %v7299_v2 }
 0x18b   :  { %v1627_v34 = vadd.f32 %v1619_v32, %v1547_v42  ;;  %v773_v46 = vrot.slane %v7435_v25, %v7296_v14  ;;  %v9474_v15 = vunpack.i.h.bf16 %v7281_v60  ;;  %v777_v38 = vrot.slane %v7505_v62, %v7296_v14  ;;  %v5913_v19 = vpop.permute.xlu1 %5912 }
 0x18c   :  { %v7526_v26 = vmul.f32 %v9472_v36, %v1173_v30  ;;  %v1706_v47 = vadd.f32 %v1698_v45, %v1626_v29  ;;  %v853_v32 = vrot.slane %v7435_v25, %v7308_v4  ;;  %v857_v24 = vrot.slane %v7505_v62, %v7308_v4 }
 0x18d   :  { %v7534_v7 = vmul.f32 %v9474_v15, %v1177_v58  ;;  %v1707_v23 = vadd.f32 %v1699_v8, %v1627_v34  ;;  %v933_v10 = vrot.slane %v7435_v25, %v7302_v20  ;;  %v937_v45 = vrot.slane %v7505_v62, %v7302_v20 }
 0x18e   :  { %9473 = vst [vmem:[#allocation62_spill] sm:$0xff] %v7526_v26  ;;  %v1786_v60 = vadd.f32 %v1778_v52, %v1706_v47  ;;  %v5893_v0 = vunpack.i.h.bf16 %v5891_v17  ;;  %v5892_v18 = vunpack.i.l.bf16 %v5891_v17  ;;  %v9476_v42 = vunpack.i.l.bf16 %v7228_v37 }
 0x18f   :  { %9475 = vst [vmem:[#allocation63_spill] sm:$0xff] %v7534_v7  ;;  %v1787_v29 = vadd.f32 %v1779_v33, %v1707_v23  ;;  %v9477_v58 = vunpack.i.h.bf16 %v7228_v37  ;;  %v9478_v34 = vunpack.i.l.bf16 %v7402_v13  ;;  %v9479_v15 = vunpack.i.h.bf16 %v7402_v13  ;;  %v7561_v37 = vld [vmem:[%s9482_s22] ss:$0 sm:$0xff]  ;;  %s9572_s22 = sld [smem:[#allocation68_spill]] }
 0x190   :  { %v730_v30 = vmul.f32 %v9476_v42, %v701_v12  ;;  %v1866_v7 = vadd.f32 %v1858_v56, %v1786_v60  ;;  %v963_v26 = vmul.f32 %v5893_v0, %v937_v45  ;;  %v9480_v52 = vunpack.i.l.bf16 %v7239_v43 }
 0x191   :  { %v731_v8 = vmul.f32 %v9477_v58, %v705_v50  ;;  %v802_v36 = vmul.f32 %v9478_v34, %v773_v46  ;;  %v803_v57 = vmul.f32 %v9479_v15, %v777_v38  ;;  %v9481_v17 = vunpack.i.h.bf16 %v7239_v43 }
 0x192   :  { %v882_v47 = vmul.f32 %v9480_v52, %v853_v32  ;;  %v1867_v33 = vadd.f32 %v1859_v41, %v1787_v29  ;;  %v962_v46 = vmul.f32 %v5892_v18, %v933_v10  ;;  %v1946_v13 = vadd.f32 %v1938_v63, %v1866_v7  ;;  %v7570_v32 = vpop.permute.xlu1 %5918 }
 0x193   :  { %v883_v35 = vmul.f32 %v9481_v17, %v857_v24  ;;  %v810_v12 = vadd.f32 %v802_v36, %v730_v30  ;;  %v811_v50 = vadd.f32 %v803_v57, %v731_v8  ;;  %v7564_v38 = vadd.f32 %v5496_v28, %v7407_v59  ;;  %v646_v57 = vpop.f32.mrf.mxu1 }
 0x194   :  { %v1371_v56 = vrot.slane %v7520_v1, %v7299_v2  ;;  %v1443_v43 = vrot.slane %v7520_v1, %v7296_v14  ;;  %v1947_v23 = vadd.f32 %v1939_v22, %v1867_v33  ;;  %v1523_v41 = vrot.slane %v7520_v1, %v7308_v4 }
 0x195   :  { %v890_v24 = vadd.f32 %v882_v47, %v810_v12  ;;  %v891_v45 = vadd.f32 %v883_v35, %v811_v50  ;;  %v1960_v63 = vadd.f32 %v7561_v37, %v1946_v13  ;;  %v9483_v28 = vunpack.i.l.bf16 %v7242_v44 }
 0x196   :  { %v1603_v10 = vrot.slane %v7520_v1, %v7302_v20  ;;  %v1683_v60 = vrot.slane %v7520_v1, %v7305_v3  ;;  %v1961_v0 = vadd.f32 %v7561_v37, %v1947_v23  ;;  %v9484_v35 = vunpack.i.l.bf16 %v7254_v51  ;;  %v5936_v33 = vpop.permute.xlu1 %5935 }
 0x197   :  { %v1388_v7 = vmul.f32 %v9483_v28, %v1371_v56  ;;  %v970_v22 = vadd.f32 %v962_v46, %v890_v24  ;;  %v971_v18 = vadd.f32 %v963_v26, %v891_v45  ;;  %v9485_v30 = vunpack.i.l.bf16 %v7262_v54 }
 0x198   :  { %v1540_v42 = vmul.f32 %v9484_v35, %v1523_v41  ;;  %v9486_v58 = vunpack.i.l.bf16 %v7260_v53  ;;  %v9487_v34 = vunpack.i.l.bf16 %v7289_v49  ;;  %v7591_v15 = vadd.f32 %v7407_v59, %v646_v57 }
 0x199   :  { %v1620_v29 = vmul.f32 %v9485_v30, %v1603_v10  ;;  %v7593_v52 = vpack.c.bf16 %v1961_v0, %v1960_v63  ;;  %v1013_v26 = vrot.slane %v7435_v25, %v7305_v3  ;;  %v1017_v47 = vrot.slane %v7505_v62, %v7305_v3 }
 0x19a   :  { %v1460_v8 = vmul.f32 %v9486_v58, %v1443_v43  ;;  %v1700_v36 = vmul.f32 %v9487_v34, %v1683_v60  ;;  %v5915_v17 = vunpack.i.h.bf16 %v5913_v19  ;;  %v5914_v50 = vunpack.i.l.bf16 %v5913_v19 }
 0x19b   :  { %v1025_v46 = vrot.slane %v7454_v48, %v7305_v3  ;;  %v9488_v13 = vrot.slane %v7422_v31, %v7305_v3  ;;  %v9489_v59 = vunpack.i.l.bf16 %v7323_v11  ;;  %v1375_v23 = vrot.slane %v7591_v15, %v7299_v2 }
 0x19c   :  { %v1468_v12 = vadd.f32 %v1460_v8, %v1388_v7  ;;  %v1043_v43 = vmul.f32 %v5915_v17, %v1017_v47  ;;  %v1447_v24 = vrot.slane %v7591_v15, %v7296_v14  ;;  %v1527_v19 = vrot.slane %v7591_v15, %v7308_v4 }
 0x19d   :  { %v7606_v56 = vmul.f32 %v9489_v59, %v9488_v13  ;;  %v1042_v41 = vmul.f32 %v5914_v50, %v1013_v26  ;;  %v9490_v57 = vunpack.i.h.bf16 %v7323_v11  ;;  %v1607_v28 = vrot.slane %v7591_v15, %v7302_v20  ;;  %v5942_v26 = vpop.permute.xlu1 %5941 }
 0x19e   :  { %v1548_v45 = vadd.f32 %v1540_v42, %v1468_v12  ;;  %v1051_v7 = vadd.f32 %v1043_v43, %v971_v18  ;;  %v9491_v10 = vunpack.i.h.bf16 %v7242_v44  ;;  %v9492_v0 = vunpack.i.h.bf16 %v7254_v51 }
 0x19f   :  { %v7616_v63 = vmul.f32 %v9490_v57, %v1025_v46  ;;  %v1687_v30 = vrot.slane %v7591_v15, %v7305_v3  ;;  %v1050_v42 = vadd.f32 %v1042_v41, %v970_v22  ;;  %v9493_v8 = vunpack.i.h.bf16 %v7262_v54 }
 0x1a0   :  { %v1389_v60 = vmul.f32 %v9491_v10, %v1375_v23  ;;  %v1541_v35 = vmul.f32 %v9492_v0, %v1527_v19  ;;  %v1628_v58 = vadd.f32 %v1620_v29, %v1548_v45  ;;  %v1763_v34 = vrot.slane %v7520_v1, %v7311_v5 }
 0x1a1   :  { %v1621_v11 = vmul.f32 %v9493_v8, %v1607_v28  ;;  %v1767_v18 = vrot.slane %v7591_v15, %v7311_v5  ;;  %v1843_v44 = vrot.slane %v7520_v1, %v7314_v40  ;;  %v1847_v51 = vrot.slane %v7591_v15, %v7314_v40  ;;  %v7658_v0 = vpop.permute.xlu1 %5958 }
 0x1a2   :  { %v9494_v47 = vunpack.i.h.bf16 %v7260_v53  ;;  %v1708_v22 = vadd.f32 %v1700_v36, %v1628_v58  ;;  %v9495_v54 = vunpack.i.h.bf16 %v7289_v49  ;;  %v9496_v12 = vunpack.i.l.bf16 %v7355_v9 }
 0x1a3   :  { %v713_v46 = vrot.slane %v7454_v48, %v7299_v2  ;;  %v9497_v13 = vunpack.i.l.bf16 %v7329_v21  ;;  %v9498_v43 = vunpack.i.h.bf16 %v7329_v21  ;;  %v9499_v19 = vunpack.i.h.bf16 %v7355_v9 }
 0x1a4   :  { %v1461_v29 = vmul.f32 %v9494_v47, %v1447_v24  ;;  %v1701_v17 = vmul.f32 %v9495_v54, %v1687_v30  ;;  %v1780_v50 = vmul.f32 %v9496_v12, %v1763_v34  ;;  %v785_v49 = vrot.slane %v7454_v48, %v7296_v14 }
 0x1a5   :  { %v1860_v59 = vmul.f32 %v9497_v13, %v1843_v44  ;;  %v1861_v23 = vmul.f32 %v9498_v43, %v1847_v51  ;;  %v1781_v53 = vmul.f32 %v9499_v19, %v1767_v18  ;;  %v5921_v45 = vunpack.i.h.bf16 %v7570_v32 }
 0x1a6   :  { %v1469_v24 = vadd.f32 %v1461_v29, %v1389_v60  ;;  %v1788_v36 = vadd.f32 %v1780_v50, %v1708_v22  ;;  %v5920_v41 = vunpack.i.l.bf16 %v7570_v32  ;;  %v1093_v28 = vrot.slane %v7435_v25, %v7311_v5 }
 0x1a7   :  { %v1097_v21 = vrot.slane %v7505_v62, %v7311_v5  ;;  %v5938_v10 = vunpack.i.h.bf16 %v5936_v33  ;;  %v733_v60 = vmul.f32 %v5921_v45, %v713_v46  ;;  %v9500_v30 = vrot.slane %v7422_v31, %v7299_v2 }
 0x1a8   :  { %v1549_v57 = vadd.f32 %v1541_v35, %v1469_v24  ;;  %v7660_v9 = vadd.f32 %v1860_v59, %v1788_v36  ;;  %v9501_v8 = vunpack.i.h.bf16 %v7269_v55  ;;  %v5937_v18 = vunpack.i.l.bf16 %v5936_v33  ;;  %v7680_v59 = vpop.permute.xlu1 %5964  ;;  %v9503_v24 = vld [vmem:[#allocation35_spill] sm:$0xff] }
 0x1a9   :  { %v732_v58 = vmul.f32 %v5920_v41, %v9500_v30  ;;  %v1123_v34 = vmul.f32 %v5938_v10, %v1097_v21  ;;  %v861_v44 = vrot.slane %v7422_v31, %v7308_v4  ;;  %v865_v29 = vrot.slane %v7454_v48, %v7308_v4 }
 0x1aa   :  { %v805_v32 = vmul.f32 %v9501_v8, %v785_v49  ;;  %v1629_v35 = vadd.f32 %v1621_v11, %v1549_v57  ;;  %v5944_v22 = vunpack.i.h.bf16 %v5942_v26  ;;  %v1122_v12 = vmul.f32 %v5937_v18, %v1093_v28  ;;  %v9502_v11 = vld [vmem:[#allocation60_spill] sm:$0xff]  ;;  %v9506_v57 = vld [vmem:[#allocation41_spill] sm:$0xff] }
 0x1ab   :  { %v812_v51 = vadd.f32 %v7449_v16, %v732_v58  ;;  %v7672_v50 = vadd.f32 %v1123_v34, %v1051_v7  ;;  %v5943_v46 = vunpack.i.l.bf16 %v5942_v26  ;;  %v1355_v13 = vrot.slane %v9502_v11, %v7299_v2 }
 0x1ac   :  { %v813_v47 = vadd.f32 %v805_v32, %v733_v60  ;;  %v1709_v54 = vadd.f32 %v1701_v17, %v1629_v35  ;;  %v885_v55 = vmul.f32 %v5944_v22, %v865_v29  ;;  %v1359_v33 = vrot.slane %v7508_v27, %v7299_v2  ;;  %v7712_v29 = vpop.permute.xlu1 %5981 }
 0x1ad   :  { %v1427_v16 = vrot.slane %v9502_v11, %v7296_v14  ;;  %v7682_v19 = vadd.f32 %v1122_v12, %v1050_v42  ;;  %v884_v17 = vmul.f32 %v5943_v46, %v861_v44  ;;  %v1431_v7 = vrot.slane %v7508_v27, %v7296_v14  ;;  %v9512_v12 = vld [vmem:[#allocation33_spill] sm:$0xff] }
 0x1ae   :  { %v1789_v43 = vadd.f32 %v1781_v53, %v1709_v54  ;;  %v7686_v26 = vadd.f32 %v885_v55, %v813_v47  ;;  %v9504_v36 = vunpack.i.l.bf16 %v9503_v24  ;;  %v9505_v45 = vunpack.i.h.bf16 %v9503_v24 }
 0x1af   :  { %v9507_v28 = vunpack.i.l.bf16 %v9506_v57  ;;  %v892_v53 = vadd.f32 %v884_v17, %v812_v51  ;;  %v9508_v42 = vunpack.i.h.bf16 %v9506_v57  ;;  %v1507_v30 = vrot.slane %v9502_v11, %v7308_v4  ;;  %v9515_v17 = vld [vmem:[#allocation34_spill] sm:$0xff]  ;;  %v9518_v57 = vld [vmem:[#allocation37_spill] sm:$0xff] }
 0x1b0   :  { %v1384_v49 = vmul.f32 %v9504_v36, %v1355_v13  ;;  %v1385_v41 = vmul.f32 %v9505_v45, %v1359_v33  ;;  %v7694_v10 = vadd.f32 %v1861_v23, %v1789_v43  ;;  %v1511_v8 = vrot.slane %v7508_v27, %v7308_v4  ;;  %v9509_v23 = vld [vmem:[#allocation32_spill] sm:$0xff] }
 0x1b1   :  { %v1456_v21 = vmul.f32 %v9507_v28, %v1427_v16  ;;  %v1457_v60 = vmul.f32 %v9508_v42, %v1431_v7  ;;  %v1587_v32 = vrot.slane %v9502_v11, %v7302_v20  ;;  %v1591_v35 = vrot.slane %v7508_v27, %v7302_v20 }
 0x1b2   :  { %v9510_v18 = vunpack.i.l.bf16 %v9509_v23  ;;  %v1667_v51 = vrot.slane %v9502_v11, %v7305_v3  ;;  %v1671_v47 = vrot.slane %v7508_v27, %v7305_v3  ;;  %v9511_v22 = vunpack.i.h.bf16 %v9509_v23 }
 0x1b3   :  { %v1464_v58 = vadd.f32 %v1456_v21, %v1384_v49  ;;  %v1465_v34 = vadd.f32 %v1457_v60, %v1385_v41  ;;  %v9513_v46 = vunpack.i.l.bf16 %v9512_v12  ;;  %v9514_v13 = vunpack.i.h.bf16 %v9512_v12  ;;  %v7746_v12 = vpop.permute.xlu1 %5987 }
 0x1b4   :  { %v1536_v44 = vmul.f32 %v9510_v18, %v1507_v30  ;;  %v1537_v54 = vmul.f32 %v9511_v22, %v1511_v8  ;;  %v1747_v16 = vrot.slane %v9502_v11, %v7311_v5  ;;  %v9516_v7 = vunpack.i.l.bf16 %v9515_v17  ;;  %v5471_v30 = vpop.f32.mrf.mxu0  ;;  %v9521_v18 = vld [vmem:[#allocation38_spill] sm:$0xff] }
 0x1b5   :  { %v1616_v55 = vmul.f32 %v9513_v46, %v1587_v32  ;;  %v1617_v33 = vmul.f32 %v9514_v13, %v1591_v35  ;;  %v9517_v36 = vunpack.i.h.bf16 %v9515_v17  ;;  %v1751_v45 = vrot.slane %v7508_v27, %v7311_v5 }
 0x1b6   :  { %v1544_v43 = vadd.f32 %v1536_v44, %v1464_v58  ;;  %v1696_v24 = vmul.f32 %v9516_v7, %v1667_v51  ;;  %v1545_v41 = vadd.f32 %v1537_v54, %v1465_v34  ;;  %v9519_v28 = vunpack.i.l.bf16 %v9518_v57 }
 0x1b7   :  { %v1697_v49 = vmul.f32 %v9517_v36, %v1671_v47  ;;  %v1827_v42 = vrot.slane %v9502_v11, %v7314_v40  ;;  %v1831_v60 = vrot.slane %v7508_v27, %v7314_v40  ;;  %v9520_v8 = vunpack.i.h.bf16 %v9518_v57 }
 0x1b8   :  { %v1776_v21 = vmul.f32 %v9519_v28, %v1747_v16  ;;  %v1624_v58 = vadd.f32 %v1616_v55, %v1544_v43  ;;  %v1907_v35 = vrot.slane %v9502_v11, %v7317_v6  ;;  %v1911_v34 = vrot.slane %v7508_v27, %v7317_v6  ;;  %v9524_v55 = vld [vmem:[#allocation39_spill] sm:$0xff] }
 0x1b9   :  { %v1777_v32 = vmul.f32 %v9520_v8, %v1751_v45  ;;  %v1625_v23 = vadd.f32 %v1617_v33, %v1545_v41  ;;  %v9522_v44 = vunpack.i.l.bf16 %v9521_v18  ;;  %v9523_v47 = vunpack.i.h.bf16 %v9521_v18  ;;  %v524_v45 = vpop.f32.mrf.mxu0 }
 0x1ba   :  { %v941_v54 = vrot.slane %v7422_v31, %v7302_v20  ;;  %v1704_v46 = vadd.f32 %v1696_v24, %v1624_v58  ;;  %v9525_v13 = vunpack.i.l.bf16 %v9524_v55  ;;  %v9526_v11 = vunpack.i.h.bf16 %v9524_v55 }
 0x1bb   :  { %v1856_v51 = vmul.f32 %v9522_v44, %v1827_v42  ;;  %v1857_v22 = vmul.f32 %v9523_v47, %v1831_v60  ;;  %v945_v27 = vrot.slane %v7454_v48, %v7302_v20  ;;  %v1705_v33 = vadd.f32 %v1697_v49, %v1625_v23  ;;  %v9530_v44 = vld [vmem:[#allocation55_spill] sm:$0xff] }
 0x1bc   :  { %v1936_v16 = vmul.f32 %v9525_v13, %v1907_v35  ;;  %v1937_v43 = vmul.f32 %v9526_v11, %v1911_v34  ;;  %v5961_v17 = vunpack.i.h.bf16 %v7658_v0  ;;  %v5960_v7 = vunpack.i.l.bf16 %v7658_v0 }
 0x1bd   :  { %v7757_v36 = vadd.f32 %v5471_v30, %v7416_v61  ;;  %v1784_v41 = vadd.f32 %v1776_v21, %v1704_v46  ;;  %v1923_v24 = vrot.slane %v7520_v1, %v7317_v6  ;;  %v1927_v57 = vrot.slane %v7591_v15, %v7317_v6  ;;  %v9527_v30 = vld [vmem:[#allocation54_spill] sm:$0xff]  ;;  %v7774_v15 = vpop.permute.xlu1 %5998 }
 0x1be   :  { %v7764_v28 = vadd.f32 %v7416_v61, %v524_v45  ;;  %v1785_v42 = vadd.f32 %v1777_v32, %v1705_v33  ;;  %v965_v49 = vmul.f32 %v5961_v17, %v945_v27  ;;  %v964_v60 = vmul.f32 %v5960_v7, %v941_v54 }
 0x1bf   :  { %v1101_v0 = vrot.slane %v7422_v31, %v7311_v5  ;;  %v1864_v58 = vadd.f32 %v1856_v51, %v1784_v41  ;;  %v9528_v8 = vunpack.i.l.bf16 %v9527_v30  ;;  %v9529_v21 = vunpack.i.h.bf16 %v9527_v30  ;;  %v6331_v30 = vld [vmem:[#allocation8 + $0x94] ss:$12 sps:$4 sm:$0xff]  }
 0x1c0   :  { %v1105_v1 = vrot.slane %v7454_v48, %v7311_v5  ;;  %v1865_v23 = vadd.f32 %v1857_v22, %v1785_v42  ;;  %v972_v18 = vadd.f32 %v964_v60, %v892_v53  ;;  %v973_v32 = vadd.f32 %v965_v49, %v7686_v26 }
 0x1c1   :  { %v1940_v35 = vmul.f32 %v9528_v8, %v1923_v24  ;;  %v1941_v34 = vmul.f32 %v9529_v21, %v1927_v57  ;;  %v9531_v47 = vunpack.i.l.bf16 %v9530_v44  ;;  %v1944_v46 = vadd.f32 %v1936_v16, %v1864_v58  ;;  %v7799_v41 = vpop.permute.xlu1 %6004  ;;  %v6326_v24 = vld [vmem:[#allocation8 + $0xa8] ss:$12 sps:$4 sm:$0xff]  }
 0x1c2   :  { %v9532_v13 = vunpack.i.h.bf16 %v9530_v44  ;;  %v1945_v27 = vadd.f32 %v1937_v43, %v1865_v23  ;;  %v1052_v33 = vadd.f32 %v7606_v56, %v972_v18  ;;  %v1053_v17 = vadd.f32 %v7616_v63, %v973_v32  ;;  %v9533_v56 = vld [vmem:[#allocation43_spill] sm:$0xff] }
 0x1c3   :  { %v1124_v54 = vmul.f32 %v9531_v47, %v1101_v0  ;;  %v1948_v51 = vadd.f32 %v1940_v35, %v7660_v9  ;;  %v1949_v55 = vadd.f32 %v1941_v34, %v7694_v10  ;;  %v1379_v53 = vrot.slane %v7513_v39, %v7299_v2  ;;  %v9536_v34 = vld [vmem:[#allocation44_spill] sm:$0xff] }
 0x1c4   :  { %v1125_v11 = vmul.f32 %v9532_v13, %v1105_v1  ;;  %v1958_v26 = vadd.f32 %v7561_v37, %v1944_v46  ;;  %v1383_v9 = vrot.slane %v7564_v38, %v7299_v2  ;;  %v1959_v10 = vadd.f32 %v7561_v37, %v1945_v27 }
 0x1c5   :  { %v1962_v22 = vadd.f32 %v7561_v37, %v1948_v51  ;;  %v1963_v16 = vadd.f32 %v7561_v37, %v1949_v55  ;;  %v7793_v7 = vadd.f32 %v1124_v54, %v1052_v33  ;;  %v9534_v63 = vunpack.i.l.bf16 %v9533_v56  ;;  %v9539_v54 = vld [vmem:[#allocation46_spill] sm:$0xff] }
 0x1c6   :  { %v7795_v43 = vadd.f32 %v1125_v11, %v1053_v17  ;;  %v9535_v42 = vunpack.i.h.bf16 %v9533_v56  ;;  %v1451_v60 = vrot.slane %v7513_v39, %v7296_v14  ;;  %v1455_v0 = vrot.slane %v7564_v38, %v7296_v14  ;;  %v9542_v11 = vld [vmem:[#allocation36_spill] sm:$0xff]  ;;  %v7834_v56 = vpop.permute.xlu1 %6016 }
 0x1c7   :  { %v1390_v45 = vmul.f32 %v9534_v63, %v1379_v53  ;;  %v7801_v57 = vpack.c.bf16 %v1963_v16, %v1962_v22  ;;  %v1970_v58 = vpack.c.bf16 %v1959_v10, %v1958_v26  ;;  %v1531_v8 = vrot.slane %v7513_v39, %v7308_v4  ;;  %v6329_v53 = vld [vmem:[#allocation8 + $0x90] ss:$12 sps:$4 sm:$0xff]  }
 0x1c8   :  { %v1391_v49 = vmul.f32 %v9535_v42, %v1383_v9  ;;  %v1535_v35 = vrot.slane %v7564_v38, %v7308_v4  ;;  %v1611_v21 = vrot.slane %v7513_v39, %v7302_v20  ;;  %v9537_v1 = vunpack.i.l.bf16 %v9536_v34  ;;  %v6334_v42 = vld [vmem:[#allocation8 + $0x7c] ss:$12 sps:$4 sm:$0xff]  }
 0x1c9   :  { %v9538_v18 = vunpack.i.h.bf16 %v9536_v34  ;;  %v1615_v44 = vrot.slane %v7564_v38, %v7302_v20  ;;  %v1691_v47 = vrot.slane %v7513_v39, %v7305_v3  ;;  %2135 = vmatmul.mubr.bf16.vlgmr.msra.gmra.mxu0 %v1970_v58  ;;  %5513 = vmatprep.mubr.bf16.mxu1 %v1970_v58  ;;  %v9540_v46 = vunpack.i.l.bf16 %v9539_v54  ;;  %v6342_v34 = vld [vmem:[#allocation8 + $0x98] ss:$12 sps:$4 sm:$0xff]  }
 0x1ca   :  { %v1462_v23 = vmul.f32 %v9537_v1, %v1451_v60  ;;  %v9541_v55 = vunpack.i.h.bf16 %v9539_v54  ;;  %v9543_v27 = vunpack.i.l.bf16 %v9542_v11  ;;  %v5967_v17 = vunpack.i.h.bf16 %v7680_v59  ;;  %5514 = vmatmul.mubr.bf16.vlgmr.msra.gmra.mxu1 %v7593_v52  ;;  %2369 = vmatpush1.bf16.msra.mxu0 %v6326_v24 }
 0x1cb   :  { %v1463_v32 = vmul.f32 %v9538_v18, %v1455_v0  ;;  %v1542_v51 = vmul.f32 %v9540_v46, %v1531_v8  ;;  %v9544_v16 = vunpack.i.h.bf16 %v9542_v11  ;;  %v5966_v10 = vunpack.i.l.bf16 %v7680_v59  ;;  %2370 = vmatprep.subr.bf16.mxu0 %v6331_v30  ;;  %v9546_v0 = vld [vmem:[#allocation56_spill] sm:$0xff]  ;;  %5517 = vmatprep.mubr.bf16.mxu1 %v7801_v57  ;;  %v9549_v18 = vld [vmem:[#allocation59_spill] sm:$0xff]  ;;  %v9551_v46 = vld [vmem:[#allocation42_spill] sm:$0xff] }
 0x1cc   :  { %v1543_v13 = vmul.f32 %v9541_v55, %v1535_v35  ;;  %v1622_v33 = vmul.f32 %v9543_v27, %v1611_v21  ;;  %v1470_v26 = vadd.f32 %v1462_v23, %v1390_v45  ;;  %v9545_v63 = vmov 0   ;;  %5522 = vmatpush3.bf16.msra.mxu1 %v9551_v46 }
 0x1cd   :  { %v1471_v22 = vadd.f32 %v1463_v32, %v1391_v49  ;;  %v1623_v9 = vmul.f32 %v9544_v16, %v1615_v44  ;;  %2144 = vmatprep.mubr.bf16.mxu0 %v9545_v63  ;;  %v1695_v60 = vrot.slane %v7564_v38, %v7305_v3  ;;  %v9547_v58 = vunpack.i.l.bf16 %v9546_v0  ;;  %v5472_v49 = vpop.f32.mrf.mxu0  ;;  %5523 = vmatprep.subr.bf16.mxu1 %v6342_v34 }
 0x1ce   :  { %v1771_v45 = vrot.slane %v7513_v39, %v7311_v5  ;;  %v5984_v8 = vunpack.i.h.bf16 %v7712_v29  ;;  %v1550_v59 = vadd.f32 %v1542_v51, %v1470_v26  ;;  %v1775_v30 = vrot.slane %v7564_v38, %v7311_v5  ;;  %2371 = vmatpush1.bf16.msra.mxu0 %v6329_v53  ;;  %v6332_v51 = vld [vmem:[#allocation8 + $0x78] ss:$12 sps:$4 sm:$0xff]   ;;  %v9553_v26 = vld [vmem:[#allocation61_spill] sm:$0xff] }
 0x1cf   :  { %v1702_v24 = vmul.f32 %v9547_v58, %v1691_v47  ;;  %v1551_v35 = vadd.f32 %v1543_v13, %v1471_v22  ;;  %v1851_v21 = vrot.slane %v7513_v39, %v7314_v40  ;;  %v9548_v1 = vunpack.i.h.bf16 %v9546_v0  ;;  %2372 = vmatprep.subr.bf16.mxu0 %v6334_v42  ;;  %v6337_v53 = vld [vmem:[#allocation8 + $0x64] ss:$12 sps:$4 sm:$0xff]  }
 0x1d0   :  { %v9550_v32 = vunpack.i.l.bf16 %v9549_v18  ;;  %v1855_v47 = vrot.slane %v7564_v38, %v7314_v40  ;;  %v1931_v54 = vrot.slane %v7513_v39, %v7317_v6  ;;  %v1630_v55 = vadd.f32 %v1622_v33, %v1550_v59  ;;  %v9556_v39 = vld [vmem:[#allocation40_spill] sm:$0xff]  ;;  %v7870_v59 = vpop.permute.xlu1 %6022  ;;  %5524 = vmatpush3.bf16.msra.mxu1 %v6342_v34 }
 0x1d1   :  { %v1703_v23 = vmul.f32 %v9548_v1, %v1695_v60  ;;  %v1631_v13 = vadd.f32 %v1623_v9, %v1551_v35  ;;  %v9552_v11 = vunpack.i.h.bf16 %v9549_v18  ;;  %v9554_v22 = vunpack.i.l.bf16 %v9553_v26  ;;  %v527_v9 = vpop.f32.mrf.mxu0  ;;  %2145 = vmatmul.mubr.bf16.gmra.mxu0 %v7593_v52 }
 0x1d2   :  { %v1782_v44 = vmul.f32 %v9550_v32, %v1771_v45  ;;  %v9555_v60 = vunpack.i.h.bf16 %v9553_v26  ;;  %v1935_v58 = vrot.slane %v7564_v38, %v7317_v6  ;;  %v9557_v45 = vunpack.i.l.bf16 %v9556_v39  ;;  %2373 = vmatpush1.bf16.msra.mxu0 %v6332_v51  ;;  %2154 = vmatprep.mubr.bf16.mxu0 %v9545_v63 }
 0x1d3   :  { %v1783_v27 = vmul.f32 %v9552_v11, %v1775_v30  ;;  %v1862_v16 = vmul.f32 %v9554_v22, %v1851_v21  ;;  %v1253_v33 = vrot.slane %v7435_v25, %v7317_v6  ;;  %v1710_v35 = vadd.f32 %v1702_v24, %v1630_v55  ;;  %v9558_v21 = vld [vmem:[#allocation62_spill] sm:$0xff]  ;;  %v9560_v25 = vld [vmem:[#allocation63_spill] sm:$0xff]  ;;  %2374 = vmatprep.subr.bf16.mxu0 %v6337_v53  ;;  %v6339_v53 = vld [vmem:[#allocation8 + $0x48] ss:$12 sps:$4 sm:$0xff]  }
 0x1d4   :  { %v1863_v0 = vmul.f32 %v9555_v60, %v1855_v47  ;;  %v1942_v1 = vmul.f32 %v9557_v45, %v1931_v54  ;;  %v1711_v30 = vadd.f32 %v1703_v23, %v1631_v13  ;;  %v1257_v42 = vrot.slane %v7505_v62, %v7317_v6  ;;  %v6346_v24 = vld [vmem:[#allocation8 + $0x80] ss:$12 sps:$4 sm:$0xff]   ;;  %v7900_v26 = vpop.permute.xlu1 %6034  ;;  %v6350_v45 = vld [vmem:[#allocation8 + $0x68] ss:$12 sps:$4 sm:$0xff]  }
 0x1d5   :  { %v1210_v18 = vadd.f32 %v9558_v21, %v7682_v19  ;;  %v9559_v38 = vunpack.i.h.bf16 %v9556_v39  ;;  %v1211_v47 = vadd.f32 %v9560_v25, %v7672_v50  ;;  %v1282_v54 = vmul.f32 %v5966_v10, %v1253_v33  ;;  %v6335_v13 = vld [vmem:[#allocation8 + $0x60] ss:$12 sps:$4 sm:$0xff]   ;;  %5525 = vmatprep.subr.bf16.mxu1 %v6346_v24 }
 0x1d6   :  { %v7882_v46 = vadd.f32 %v5472_v49, %v7416_v61  ;;  %v1790_v23 = vadd.f32 %v1782_v44, %v1710_v35  ;;  %v1791_v55 = vadd.f32 %v1783_v27, %v1711_v30  ;;  %v1283_v62 = vmul.f32 %v5967_v17, %v1257_v42  ;;  %v6341_v10 = vld [vmem:[#allocation8 + $0x4c] ss:$12 sps:$4 sm:$0xff]   ;;  %v7896_v17 = vld [vmem:[%s9561_s27] ss:$0 sm:$0xff]  ;;  %2375 = vmatpush1.bf16.msra.mxu0 %v6335_v13  ;;  %v6349_v13 = vld [vmem:[#allocation8 + $0x1c] ss:$12 sps:$4 sm:$0xff]  }
 0x1d7   :  { %v1943_v32 = vmul.f32 %v9559_v38, %v1935_v58  ;;  %v7885_v19 = vadd.f32 %v7416_v61, %v527_v9  ;;  %v1290_v52 = vadd.f32 %v1282_v54, %v1210_v18  ;;  %v717_v11 = vrot.slane %v7764_v28, %v7299_v2  ;;  %2376 = vmatprep.subr.bf16.mxu0 %v6341_v10  ;;  %v6345_v30 = vld [vmem:[#allocation8 + $0x34] ss:$12 sps:$4 sm:$0xff]  }
 0x1d8   :  { %v5983_v50 = vunpack.i.l.bf16 %v7712_v29  ;;  %v789_v49 = vrot.slane %v7764_v28, %v7296_v14  ;;  %v1870_v61 = vadd.f32 %v1862_v16, %v1790_v23  ;;  %v1871_v44 = vadd.f32 %v1863_v0, %v1791_v55  ;;  %5526 = vmatpush3.bf16.msra.mxu1 %v6346_v24  ;;  %v6354_v55 = vld [vmem:[#allocation8 + $0x50] ss:$12 sps:$4 sm:$0xff]  }
 0x1d9   :  { %v1291_v51 = vadd.f32 %v1283_v62, %v1211_v47  ;;  %v721_v27 = vrot.slane %v7885_v19, %v7299_v2  ;;  %v793_v60 = vrot.slane %v7885_v19, %v7296_v14  ;;  %v5990_v58 = vunpack.i.h.bf16 %v7746_v12  ;;  %2155 = vmatmul.mubr.bf16.gmra.mxu0 %v7801_v57  ;;  %5527 = vmatprep.subr.bf16.mxu1 %v6350_v45  ;;  %v7921_v47 = vpop.permute.xlu1 %6040  ;;  %v7927_v62 = vpop.permute.xlu0 %6046 }
 0x1da   :  { %v734_v22 = vmul.f32 %v5983_v50, %v717_v11  ;;  %v5989_v39 = vunpack.i.l.bf16 %v7746_v12  ;;  %v1950_v33 = vadd.f32 %v1942_v1, %v1870_v61  ;;  %v1951_v16 = vadd.f32 %v1943_v32, %v1871_v44  ;;  %2377 = vmatpush1.bf16.msra.mxu0 %v6339_v53  ;;  %2164 = vmatprep.mubr.bf16.mxu0 %v9545_v63 }
 0x1db   :  { %v735_v0 = vmul.f32 %v5984_v8, %v721_v27  ;;  %v1304_v34 = vadd.f32 %v7896_v17, %v1290_v52  ;;  %v807_v9 = vmul.f32 %v5990_v58, %v793_v60  ;;  %v1305_v42 = vadd.f32 %v7896_v17, %v1291_v51  ;;  %2378 = vmatprep.subr.bf16.mxu0 %v6345_v30 }
 0x1dc   :  { %v806_v35 = vmul.f32 %v5989_v39, %v789_v49  ;;  %v869_v12 = vrot.slane %v7764_v28, %v7308_v4  ;;  %v1964_v21 = vadd.f32 %v7561_v37, %v1950_v33  ;;  %v1965_v1 = vadd.f32 %v7561_v37, %v1951_v16  ;;  %v6343_v37 = vld [vmem:[#allocation8 + $0x30] ss:$12 sps:$4 sm:$0xff]   ;;  %5528 = vmatpush3.bf16.msra.mxu1 %v6350_v45  ;;  %v6347_v16 = vld [vmem:[#allocation8 + $0x18] ss:$12 sps:$4 sm:$0xff]  }
 0x1dd   :  { %v873_v29 = vrot.slane %v7885_v19, %v7308_v4  ;;  %v6001_v8 = vunpack.i.h.bf16 %v7774_v15  ;;  %v815_v38 = vadd.f32 %v807_v9, %v735_v0  ;;  %v7918_v32 = vpack.c.bf16 %v1305_v42, %v1304_v34  ;;  %v9562_v49 = vld [vmem:[#allocation57_spill] sm:$0xff]  ;;  %5529 = vmatprep.subr.bf16.mxu1 %v6354_v55  ;;  %v7949_v34 = vpop.permute.xlu1 %6052  ;;  %v6355_v42 = vld [vmem:[#allocation8 + $0x38] ss:$12 sps:$4 sm:$0xff]  }
 0x1de   :  { %v814_v18 = vadd.f32 %v806_v35, %v734_v22  ;;  %v6000_v25 = vunpack.i.l.bf16 %v7774_v15  ;;  %v1973_v54 = vpack.c.bf16 %v1965_v1, %v1964_v21  ;;  %v949_v23 = vrot.slane %v7764_v28, %v7302_v20  ;;  %2379 = vmatpush1.bf16.msra.mxu0 %v6343_v37  ;;  %v6353_v35 = vld [vmem:[#allocation8 + $0x4] ss:$12 sps:$4 sm:$0xff]  }
 0x1df   :  { %v887_v24 = vmul.f32 %v6001_v8, %v873_v29  ;;  %v6007_v57 = vunpack.i.h.bf16 %v7799_v41  ;;  %v953_v52 = vrot.slane %v7885_v19, %v7302_v20  ;;  %v1181_v11 = vrot.slane %v7422_v31, %v7314_v40  ;;  %2380 = vmatprep.subr.bf16.mxu0 %v6349_v13  ;;  %v6356_v13 = vld [vmem:[#allocation8 + $0x20] ss:$12 sps:$4 sm:$0xff]  }
 0x1e0   :  { %v886_v15 = vmul.f32 %v6000_v25, %v869_v12  ;;  %v1185_v50 = vrot.slane %v7454_v48, %v7314_v40  ;;  %5518 = vmatmul.mubr.bf16.gmra.mxu1 %v1973_v54  ;;  %v9563_v61 = vunpack.i.l.bf16 %v9562_v49  ;;  %v6006_v51 = vunpack.i.l.bf16 %v7799_v41 }
 0x1e1   :  { %v895_v10 = vadd.f32 %v887_v24, %v815_v38  ;;  %v1261_v27 = vrot.slane %v7422_v31, %v7317_v6  ;;  %5537 = vmatprep.mubr.bf16.mxu1 %v7918_v32  ;;  %v9564_v60 = vunpack.i.h.bf16 %v9562_v49  ;;  %v6019_v33 = vunpack.i.h.bf16 %v7834_v56  ;;  %2165 = vmatmul.mubr.bf16.gmra.mxu0 %v1973_v54  ;;  %v6360_v49 = vld [vmem:[#allocation11 + $0xac] ss:$12 sps:$4 sm:$0xff]  }
 0x1e2   :  { %v966_v44 = vmul.f32 %v9563_v61, %v949_v23  ;;  %v894_v22 = vadd.f32 %v886_v15, %v814_v18  ;;  %v1205_v39 = vmul.f32 %v6007_v57, %v1185_v50  ;;  %v1204_v0 = vmul.f32 %v6006_v51, %v1181_v11  ;;  %v6065_v18 = vpop.permute.xlu0 %6064  ;;  %5530 = vmatpush3.bf16.msra.mxu1 %v6354_v55 }
 0x1e3   :  { %v967_v58 = vmul.f32 %v9564_v60, %v953_v52  ;;  %v1265_v41 = vrot.slane %v7454_v48, %v7317_v6  ;;  %v6018_v53 = vunpack.i.l.bf16 %v7834_v56  ;;  %v725_v31 = vrot.slane %v7757_v36, %v7299_v2  ;;  %v9565_v56 = vld [vmem:[#allocation58_spill] sm:$0xff]  ;;  %2381 = vmatpush1.bf16.msra.mxu0 %v6347_v16  ;;  %2400 = vmatprep.mubr.bf16.mxu0 %v9545_v63 }
 0x1e4   :  { %v974_v45 = vadd.f32 %v966_v44, %v894_v22  ;;  %v1213_v30 = vadd.f32 %v1205_v39, %v7795_v43  ;;  %v729_v12 = vrot.slane %v7882_v46, %v7299_v2  ;;  %v1212_v21 = vadd.f32 %v1204_v0, %v7793_v7  ;;  %v6351_v7 = vld [vmem:[#allocation8] ss:$12 sps:$4 sm:$0xff]   ;;  %2382 = vmatprep.subr.bf16.mxu0 %v6353_v35  ;;  %v6357_v39 = vld [vmem:[#allocation8 + $0x8] ss:$12 sps:$4 sm:$0xff]  }
 0x1e5   :  { %v975_v9 = vadd.f32 %v967_v58, %v895_v10  ;;  %v1285_v48 = vmul.f32 %v6019_v33, %v1265_v41  ;;  %v1284_v1 = vmul.f32 %v6018_v53, %v1261_v27  ;;  %v9566_v29 = vunpack.i.l.bf16 %v9565_v56  ;;  %5531 = vmatprep.subr.bf16.mxu1 %v6355_v42  ;;  %v7972_v10 = vpop.permute.xlu1 %6058 }
 0x1e6   :  { %v9567_v38 = vunpack.i.h.bf16 %v9565_v56  ;;  %v1029_v43 = vrot.slane %v7764_v28, %v7305_v3  ;;  %v1033_v37 = vrot.slane %v7885_v19, %v7305_v3  ;;  %v6025_v24 = vunpack.i.h.bf16 %v7870_v59  ;;  %5532 = vmatpush3.bf16.msra.mxu1 %v6355_v42  ;;  %v6083_v41 = vpop.permute.xlu0 %6082 }
 0x1e7   :  { %v736_v8 = vmul.f32 %v9566_v29, %v725_v31  ;;  %v1292_v23 = vadd.f32 %v1284_v1, %v1212_v21  ;;  %v1293_v57 = vadd.f32 %v1285_v48, %v1213_v30  ;;  %v6024_v54 = vunpack.i.l.bf16 %v7870_v59  ;;  %2383 = vmatpush1.bf16.msra.mxu0 %v6351_v7  ;;  %5533 = vmatprep.subr.bf16.mxu1 %v6356_v13  ;;  %v6358_v30 = vld [vmem:[#allocation11 + $0xa8] ss:$12 sps:$4 sm:$0xff]  }
 0x1e8   :  { %v737_v25 = vmul.f32 %v9567_v38, %v729_v12  ;;  %v877_v55 = vrot.slane %v7757_v36, %v7308_v4  ;;  %v1047_v15 = vmul.f32 %v6025_v24, %v1033_v37  ;;  %v881_v52 = vrot.slane %v7882_v46, %v7308_v4  ;;  %2690 = vmatprep.subr.bf16.mxu0 %v6360_v49  ;;  %v6363_v48 = vld [vmem:[#allocation11 + $0x94] ss:$12 sps:$4 sm:$0xff]   ;;  %v6382_v24 = vld [vmem:[#allocation11 + $0xb0] ss:$12 sps:$4 sm:$0xff]  }
 0x1e9   :  { %v6049_v11 = vunpack.i.h.bf16 %v7927_v62  ;;  %v6048_v50 = vunpack.i.l.bf16 %v7927_v62  ;;  %v1046_v61 = vmul.f32 %v6024_v54, %v1029_v43  ;;  %v797_v59 = vrot.slane %v7757_v36, %v7296_v14  ;;  %v7990_v21 = vpop.permute.xlu1 %6070 }
 0x1ea   :  { %v801_v44 = vrot.slane %v7882_v46, %v7296_v14  ;;  %v6037_v51 = vunpack.i.h.bf16 %v7900_v26  ;;  %v1055_v27 = vadd.f32 %v1047_v15, %v975_v9  ;;  %v6036_v58 = vunpack.i.l.bf16 %v7900_v26  ;;  %2401 = vmatmul.mubr.bf16.vlgmr.msra.gmra.mxu0 %v7918_v32  ;;  %5534 = vmatpush3.bf16.msra.mxu1 %v6356_v13 }
 0x1eb   :  { %v889_v22 = vmul.f32 %v6049_v11, %v881_v52  ;;  %v888_v60 = vmul.f32 %v6048_v50, %v877_v55  ;;  %v1054_v62 = vadd.f32 %v1046_v61, %v974_v45  ;;  %v1269_v16 = vrot.slane %v7764_v28, %v7317_v6  ;;  %5535 = vmatprep.subr.bf16.mxu1 %v6357_v39  ;;  %v6366_v50 = vld [vmem:[#allocation11 + $0x7c] ss:$12 sps:$4 sm:$0xff]  }
 0x1ec   :  { %v809_v33 = vmul.f32 %v6037_v51, %v801_v44  ;;  %v6067_v0 = vunpack.i.h.bf16 %v6065_v18  ;;  %v808_v53 = vmul.f32 %v6036_v58, %v797_v59  ;;  %v1273_v31 = vrot.slane %v7885_v19, %v7317_v6  ;;  %2410 = vmatprep.mubr.bf16.mxu0 %v9545_v63  ;;  %2691 = vmatpush1.bf16.msra.mxu0 %v6358_v30 }
 0x1ed   :  { %v6066_v35 = vunpack.i.l.bf16 %v6065_v18  ;;  %v1306_v9 = vadd.f32 %v7896_v17, %v1292_v23  ;;  %v1307_v42 = vadd.f32 %v7896_v17, %v1293_v57  ;;  %v1197_v45 = vrot.slane %v7757_v36, %v7314_v40  ;;  %v6361_v57 = vld [vmem:[#allocation11 + $0x90] ss:$12 sps:$4 sm:$0xff]   ;;  %2692 = vmatprep.subr.bf16.mxu0 %v6363_v48  ;;  %v6077_v49 = vpop.permute.xlu1 %6076 }
 0x1ee   :  { %v817_v26 = vadd.f32 %v809_v33, %v737_v25  ;;  %v1201_v12 = vrot.slane %v7882_v46, %v7314_v40  ;;  %v816_v1 = vadd.f32 %v808_v53, %v736_v8  ;;  %v1287_v56 = vmul.f32 %v6067_v0, %v1273_v31  ;;  %5536 = vmatpush3.bf16.msra.mxu1 %v6357_v39  ;;  %v6364_v33 = vld [vmem:[#allocation11 + $0x78] ss:$12 sps:$4 sm:$0xff]  }
 0x1ef   :  { %v1286_v29 = vmul.f32 %v6066_v35, %v1269_v16  ;;  %v6085_v18 = vunpack.i.h.bf16 %v6083_v41  ;;  %v1967_v38 = vpack.c.bf16 %v1307_v42, %v1306_v9  ;;  %v6084_v25 = vunpack.i.l.bf16 %v6083_v41  ;;  %5545 = vmatprep.subr.bf16.mxu1 %v6382_v24  ;;  %v6369_v31 = vld [vmem:[#allocation11 + $0x64] ss:$12 sps:$4 sm:$0xff]  }
 0x1f0   :  { %v1109_v43 = vrot.slane %v7764_v28, %v7311_v5  ;;  %v1113_v37 = vrot.slane %v7885_v19, %v7311_v5  ;;  %v6043_v32 = vunpack.i.h.bf16 %v7921_v47  ;;  %v6042_v8 = vunpack.i.l.bf16 %v7921_v47  ;;  %2693 = vmatpush1.bf16.msra.mxu0 %v6361_v57 }
 0x1f1   :  { %v7998_v7 = vmul.f32 %v6085_v18, %v1201_v12  ;;  %v1189_v23 = vrot.slane %v7764_v28, %v7314_v40  ;;  %v8004_v13 = vmul.f32 %v6084_v25, %v1197_v45  ;;  %v1193_v54 = vrot.slane %v7885_v19, %v7314_v40  ;;  %5538 = vmatmul.mubr.bf16.vlgmr.msra.gmra.mxu1 %v1967_v38  ;;  %v6089_v18 = vpop.permute.xlu1 %6088 }
 0x1f2   :  { %v6055_v55 = vunpack.i.h.bf16 %v7949_v34  ;;  %v6054_v15 = vunpack.i.l.bf16 %v7949_v34  ;;  %v1127_v52 = vmul.f32 %v6043_v32, %v1113_v37  ;;  %v1126_v11 = vmul.f32 %v6042_v8, %v1109_v43  ;;  %2411 = vmatmul.mubr.bf16.gmra.mxu0 %v1967_v38  ;;  %2694 = vmatprep.subr.bf16.mxu0 %v6366_v50  ;;  %v6372_v37 = vld [vmem:[#allocation11 + $0x4c] ss:$12 sps:$4 sm:$0xff]  }
 0x1f3   :  { %v957_v47 = vrot.slane %v7757_v36, %v7302_v20  ;;  %v961_v28 = vrot.slane %v7882_v46, %v7302_v20  ;;  %v6061_v19 = vunpack.i.h.bf16 %v7972_v10  ;;  %v6060_v44 = vunpack.i.l.bf16 %v7972_v10  ;;  %2420 = vmatprep.mubr.bf16.mxu0 %v9545_v63  ;;  %5546 = vmatpush3.bf16.msra.mxu1 %v6382_v24 }
 0x1f4   :  { %v1207_v61 = vmul.f32 %v6055_v55, %v1193_v54  ;;  %v1206_v59 = vmul.f32 %v6054_v15, %v1189_v23  ;;  %v1134_v34 = vadd.f32 %v1126_v11, %v1054_v62  ;;  %v1135_v51 = vadd.f32 %v1127_v52, %v1055_v27  ;;  %2695 = vmatpush1.bf16.msra.mxu0 %v6364_v33  ;;  %v6370_v55 = vld [vmem:[#allocation11 + $0x48] ss:$12 sps:$4 sm:$0xff]   ;;  %v6384_v11 = vld [vmem:[#allocation11 + $0x80] ss:$12 sps:$4 sm:$0xff]  }
 0x1f5   :  { %v896_v58 = vadd.f32 %v888_v60, %v816_v1  ;;  %v897_v39 = vadd.f32 %v889_v22, %v817_v26  ;;  %v969_v16 = vmul.f32 %v6061_v19, %v961_v28  ;;  %v968_v0 = vmul.f32 %v6060_v44, %v957_v47  ;;  %v6383_v22 = vld [vmem:[#allocation11 + $0x98] ss:$12 sps:$4 sm:$0xff]   ;;  %v6367_v1 = vld [vmem:[#allocation11 + $0x60] ss:$12 sps:$4 sm:$0xff]   ;;  %2696 = vmatprep.subr.bf16.mxu0 %v6369_v31  ;;  %v8046_v15 = vld [vmem:[%s9568_s29 + $0x10] sm:$0xff] }
 0x1f6   :  { %v1037_v41 = vrot.slane %v7757_v36, %v7305_v3  ;;  %v1041_v53 = vrot.slane %v7882_v46, %v7305_v3  ;;  %v1214_v35 = vadd.f32 %v1206_v59, %v1134_v34  ;;  %v1215_v10 = vadd.f32 %v1207_v61, %v1135_v51  ;;  %5547 = vmatprep.subr.bf16.mxu1 %v6383_v22  ;;  %v6375_v61 = vld [vmem:[#allocation11 + $0x34] ss:$12 sps:$4 sm:$0xff]   ;;  %v8053_v59 = vld [vmem:[%s9568_s29 + $0x18] sm:$0xff] }
 0x1f7   :  { %v6073_v62 = vunpack.i.h.bf16 %v7990_v21  ;;  %v6072_v27 = vunpack.i.l.bf16 %v7990_v21  ;;  %v976_v60 = vadd.f32 %v968_v0, %v896_v58  ;;  %v977_v9 = vadd.f32 %v969_v16, %v897_v39  ;;  %v6373_v39 = vld [vmem:[#allocation11 + $0x30] ss:$12 sps:$4 sm:$0xff]   ;;  %5548 = vmatpush3.bf16.msra.mxu1 %v6383_v22  ;;  %v8066_v0 = vld [vmem:[%s9568_s29 + $0x20] sm:$0xff] }
 0x1f8   :  { %v1117_v30 = vrot.slane %v7757_v36, %v7311_v5  ;;  %v1121_v26 = vrot.slane %v7882_v46, %v7311_v5  ;;  %v1294_v42 = vadd.f32 %v1286_v29, %v1214_v35  ;;  %v1295_v45 = vadd.f32 %v1287_v56, %v1215_v10  ;;  %v8034_v56 = vld [vmem:[%s9568_s29] sm:$0xff]  ;;  %v8039_v29 = vld [vmem:[%s9568_s29 + $0x8] sm:$0xff]  ;;  %2697 = vmatpush1.bf16.msra.mxu0 %v6367_v1 }
 0x1f9   :  { %v1049_v12 = vmul.f32 %v6073_v62, %v1041_v53  ;;  %v1048_v48 = vmul.f32 %v6072_v27, %v1037_v41  ;;  %v6079_v21 = vunpack.i.h.bf16 %v6077_v49  ;;  %v6078_v38 = vunpack.i.l.bf16 %v6077_v49  ;;  %2698 = vmatprep.subr.bf16.mxu0 %v6372_v37  ;;  %5549 = vmatprep.subr.bf16.mxu1 %v6384_v11  ;;  %v6385_v41 = vld [vmem:[#allocation11 + $0x68] ss:$12 sps:$4 sm:$0xff]  }
 0x1fa   :  { %v1277_v25 = vrot.slane %v7757_v36, %v7317_v6  ;;  %v1281_v43 = vrot.slane %v7882_v46, %v7317_v6  ;;  %v1308_v23 = vadd.f32 %v7896_v17, %v1294_v42  ;;  %v1309_v36 = vadd.f32 %v7896_v17, %v1295_v45  ;;  %v6378_v31 = vld [vmem:[#allocation11 + $0x1c] ss:$12 sps:$4 sm:$0xff]   ;;  %v6381_v42 = vld [vmem:[#allocation11 + $0x4] ss:$12 sps:$4 sm:$0xff]  }
 0x1fb   :  { %v1056_v32 = vadd.f32 %v1048_v48, %v976_v60  ;;  %v1057_v8 = vadd.f32 %v1049_v12, %v977_v9  ;;  %v1129_v46 = vmul.f32 %v6079_v21, %v1121_v26  ;;  %v1128_v57 = vmul.f32 %v6078_v38, %v1117_v30  ;;  %v8074_v10 = vld [vmem:[%s9568_s29 + $0x28] sm:$0xff]  ;;  %5550 = vmatpush3.bf16.msra.mxu1 %v6384_v11  ;;  %v6376_v9 = vld [vmem:[#allocation11 + $0x18] ss:$12 sps:$4 sm:$0xff]   ;;  %v6386_v45 = vld [vmem:[#allocation11 + $0x50] ss:$12 sps:$4 sm:$0xff]  }
 0x1fc   :  { %v6091_v24 = vunpack.i.h.bf16 %v6089_v18  ;;  %v6090_v54 = vunpack.i.l.bf16 %v6089_v18  ;;  %v1968_v52 = vpack.c.bf16 %v1309_v36, %v1308_v23  ;;  %vm2996_vm0 = vcmp.eq.s32.totalorder %v8034_v56, 0  ;;  %2699 = vmatpush1.bf16.msra.mxu0 %v6370_v55  ;;  %5551 = vmatprep.subr.bf16.mxu1 %v6385_v41  ;;  %v8096_v48 = vld [vmem:[%s9568_s29 + $0x30] sm:$0xff]  ;;  %v6387_v23 = vld [vmem:[#allocation11 + $0x38] ss:$12 sps:$4 sm:$0xff]   ;;  %v9569_v36 = vld [vmem:[#allocation28_spill] sm:$0xff] }
 0x1fd   :  { %vm2997_vm1 = vcmp.eq.s32.totalorder %v8039_v29, 0  ;;  %v1136_v47 = vadd.f32 %v1128_v57, %v1056_v32  ;;  %v1137_v28 = vadd.f32 %v1129_v46, %v1057_v8  ;;  %v9366_v19 = vmov 0.0   ;;  %2700 = vmatprep.subr.bf16.mxu0 %v6375_v61 }
 0x1fe   :  { %v1289_v50 = vmul.f32 %v6091_v24, %v1281_v43  ;;  %v1288_v49 = vmul.f32 %v6090_v54, %v1277_v25  ;;  %2421 = vmatmul.mubr.bf16.gmra.mxu0 %v1968_v52  ;;  %5541 = vmatprep.mubr.bf16.mxu1 %v1968_v52  ;;  %v5170_v44 = vsel %vm2996_vm0, 1.0, %v9366_v19  ;;  %v5171_v34 = vsel %vm2997_vm1, 1.0, %v9366_v19  ;;  %v8109_v25 = vld [vmem:[%s9568_s29 + $0x38] sm:$0xff]  ;;  %v6379_v43 = vld [vmem:[#allocation11] ss:$12 sps:$4 sm:$0xff]  }
 0x1ff   :  { %vm2998_vm2 = vcmp.eq.s32.totalorder %v8046_v15, 0  ;;  %vm3102_vm3 = vcmp.eq.s32.totalorder %v8046_v15, 1  ;;  %v1216_v51 = vadd.f32 %v8004_v13, %v1136_v47  ;;  %v1217_v58 = vadd.f32 %v7998_v7, %v1137_v28  ;;  %2430 = vmatprep.mubr.bf16.mxu0 %v9545_v63  ;;  %5552 = vmatpush3.bf16.msra.mxu1 %v6385_v41  ;;  %v6388_v28 = vld [vmem:[#allocation11 + $0x20] ss:$12 sps:$4 sm:$0xff]   ;;  %v6389_v41 = vld [vmem:[#allocation11 + $0x8] ss:$12 sps:$4 sm:$0xff]  }
 0x200   :  { %v6093_v33 = vpack.i.bf16 %v5171_v34, %v5170_v44  ;;  %v5172_v16 = vsel %vm2998_vm2, 1.0, %v9366_v19  ;;  %v5180_v53 = vsel %vm3102_vm3, 1.0, %v9366_v19  ;;  %vm2999_vm4 = vcmp.eq.s32.totalorder %v8053_v59, 0  ;;  %2701 = vmatpush1.bf16.msra.mxu0 %v6373_v39  ;;  %5553 = vmatprep.subr.bf16.mxu1 %v6386_v45 }
 0x201   :  { %vm3103_vm5 = vcmp.eq.s32.totalorder %v8053_v59, 1  ;;  %v1296_v7 = vadd.f32 %v1288_v49, %v1216_v51  ;;  %v1297_v13 = vadd.f32 %v1289_v50, %v1217_v58  ;;  %v6104_v35 = vpack.i.bf16 %v5180_v53, %v5172_v16  ;;  %2702 = vmatprep.subr.bf16.mxu0 %v6378_v31 }
 0x202   :  { %6094 = vperm.xlu1 %6092, %v6093_v33   ;;  %vm3000_vm6 = vcmp.eq.s32.totalorder %v8066_v0, 0  ;;  %vm3100_vm7 = vcmp.eq.s32.totalorder %v8034_v56, 1  ;;  %v5173_v22 = vsel %vm2999_vm4, 1.0, %v9366_v19  ;;  %v5181_v60 = vsel %vm3103_vm5, 1.0, %v9366_v19 }
 0x203   :  { %v1310_v62 = vadd.f32 %v7896_v17, %v1296_v7  ;;  %v1311_v27 = vadd.f32 %v7896_v17, %v1297_v13  ;;  %vm3104_vm8 = vcmp.eq.s32.totalorder %v8066_v0, 1  ;;  %vm3101_vm9 = vcmp.eq.s32.totalorder %v8039_v29, 1  ;;  %5554 = vmatpush3.bf16.msra.mxu1 %v6386_v45 }
 0x204   :  { %v5178_v30 = vsel %vm3100_vm7, 1.0, %v9366_v19  ;;  %vm3105_vm10 = vcmp.eq.s32.totalorder %v8074_v10, 1  ;;  %v5179_v17 = vsel %vm3101_vm9, 1.0, %v9366_v19  ;;  %vm3215_vm11 = vcmp.eq.s32.totalorder %v8053_v59, 2  ;;  %2703 = vmatpush1.bf16.msra.mxu0 %v6376_v9  ;;  %5555 = vmatprep.subr.bf16.mxu1 %v6387_v23 }
 0x205   :  { %v1969_v26 = vpack.c.bf16 %v1311_v27, %v1310_v62  ;;  %v5174_v12 = vsel %vm3000_vm6, 1.0, %v9366_v19  ;;  %vm3212_vm12 = vcmp.eq.s32.totalorder %v8034_v56, 2  ;;  %vm3213_vm13 = vcmp.eq.s32.totalorder %v8039_v29, 2  ;;  %2704 = vmatprep.subr.bf16.mxu0 %v6381_v42 }
 0x206   :  { %6105 = vperm.xlu1 %6092, %v6104_v35   ;;  %v6109_v1 = vpack.i.bf16 %v5181_v60, %v5173_v22  ;;  %v5182_v18 = vsel %vm3104_vm8, 1.0, %v9366_v19  ;;  %v6099_v21 = vpack.i.bf16 %v5179_v17, %v5178_v30  ;;  %v8104_v38 = vsel %vm3105_vm10, 1.0, %v9366_v19  ;;  %v9570_v17 = vld [vmem:[#allocation29_spill] sm:$0xff] }
 0x207   :  { %2431 = vmatmul.mubr.bf16.gmra.mxu0 %v1969_v26  ;;  %5542 = vmatmul.mubr.bf16.gmra.mxu1 %v1969_v26  ;;  %v5189_v37 = vsel %vm3215_vm11, 1.0, %v9366_v19  ;;  %v5186_v32 = vsel %vm3212_vm12, 1.0, %v9366_v19  ;;  %v5187_v8 = vsel %vm3213_vm13, 1.0, %v9366_v19  ;;  %vm3001_vm14 = vcmp.eq.s32.totalorder %v8074_v10, 0 }
 0x208   :  { %2722 = vmatprep.mubr.bf16.mxu0 %v9545_v63  ;;  %vm3002_vm15 = vcmp.eq.s32.totalorder %v8096_v48, 0  ;;  %vm3214_vm0 = vcmp.eq.s32.totalorder %v8046_v15, 2  ;;  %5561 = vmatprep.mubr.bf16.mxu1 %v9569_v36  ;;  %v6119_v46 = vpack.i.bf16 %v5182_v18, %v5174_v12  ;;  %vm3106_vm1 = vcmp.eq.s32.totalorder %v8096_v48, 1 }
 0x209   :  { %vm3003_vm2 = vcmp.eq.s32.totalorder %v8109_v25, 0  ;;  %6100 = vperm.xlu0 %6098, %v6099_v21   ;;  %v6129_v57 = vpack.i.bf16 %v5189_v37, %v8104_v38  ;;  %v6114_v24 = vpack.i.bf16 %v5187_v8, %v5186_v32  ;;  %v5175_v54 = vsel %vm3001_vm14, 1.0, %v9366_v19  ;;  %2705 = vmatpush1.bf16.msra.mxu0 %v6379_v43 }
 0x20a   :  { %6110 = vperm.xlu1 %6092, %v6109_v1   ;;  %v5188_v55 = vsel %vm3214_vm0, 1.0, %v9366_v19  ;;  %v5176_v52 = vsel %vm3002_vm15, 1.0, %v9366_v19  ;;  %vm3107_vm3 = vcmp.eq.s32.totalorder %v8109_v25, 1  ;;  %vm3324_vm4 = vcmp.eq.s32.totalorder %v8034_v56, 3  ;;  %5569 = vmatprep.subr.bf16.mxu0 %v9366_v19 }
 0x20b   :  { %vm3325_vm5 = vcmp.eq.s32.totalorder %v8039_v29, 3  ;;  %v5184_v11 = vsel %vm3106_vm1, 1.0, %v9366_v19  ;;  %v8132_v47 = vsel %vm3003_vm2, 1.0, %v9366_v19  ;;  %vm3436_vm6 = vcmp.eq.s32.totalorder %v8034_v56, 4  ;;  %5556 = vmatpush3.bf16.msra.mxu1 %v6387_v23 }
 0x20c   :  { %vm3437_vm7 = vcmp.eq.s32.totalorder %v8039_v29, 4  ;;  %v6124_v50 = vpack.i.bf16 %v5175_v54, %v5188_v55  ;;  %vm3216_vm8 = vcmp.eq.s32.totalorder %v8066_v0, 2  ;;  %vm3326_vm9 = vcmp.eq.s32.totalorder %v8046_v15, 3  ;;  %5557 = vmatprep.subr.bf16.mxu1 %v6388_v28 }
 0x20d   :  { %vm3219_vm10 = vcmp.eq.s32.totalorder %v8109_v25, 2  ;;  %v5185_v49 = vsel %vm3107_vm3, 1.0, %v9366_v19  ;;  %v5194_v61 = vsel %vm3324_vm4, 1.0, %v9366_v19  ;;  %v5195_v44 = vsel %vm3325_vm5, 1.0, %v9366_v19  ;;  %6115 = vperm.xlu0 %6098, %v6114_v24  }
 0x20e   :  { %6120 = vperm.xlu1 %6092, %v6119_v46   ;;  %vm3438_vm11 = vcmp.eq.s32.totalorder %v8046_v15, 4  ;;  %v8155_v34 = vsel %vm3436_vm6, 1.0, %v9366_v19  ;;  %v8160_v51 = vsel %vm3437_vm7, 1.0, %v9366_v19  ;;  %vm3217_vm12 = vcmp.eq.s32.totalorder %v8074_v10, 2 }
 0x20f   :  { %2723 = vmatmul.mubr.bf16.vlgmr.msra.gmra.mxu0 %v9569_v36  ;;  %vm3327_vm13 = vcmp.eq.s32.totalorder %v8053_v59, 3  ;;  %v5190_v58 = vsel %vm3216_vm8, 1.0, %v9366_v19  ;;  %v5196_v39 = vsel %vm3326_vm9, 1.0, %v9366_v19  ;;  %v8173_v33 = vsel %vm3219_vm10, 1.0, %v9366_v19  ;;  %5558 = vmatpush3.bf16.msra.mxu1 %v6388_v28 }
 0x210   :  { %2732 = vmatprep.mubr.bf16.mxu0 %v9545_v63  ;;  %v8176_v16 = vsel %vm3438_vm11, 1.0, %v9366_v19  ;;  %v8179_v53 = vsel %vm3217_vm12, 1.0, %v9366_v19  ;;  %v8182_v7 = vsel %vm3327_vm13, 1.0, %v9366_v19  ;;  %vm3548_vm14 = vcmp.eq.s32.totalorder %v8034_v56, 5  ;;  %5559 = vmatprep.subr.bf16.mxu1 %v6389_v41 }
 0x211   :  { %vm3549_vm15 = vcmp.eq.s32.totalorder %v8039_v29, 5  ;;  %v6139_v13 = vpack.i.bf16 %v5184_v11, %v5176_v52  ;;  %vm3218_vm0 = vcmp.eq.s32.totalorder %v8096_v48, 2  ;;  %vm3328_vm1 = vcmp.eq.s32.totalorder %v8066_v0, 3  ;;  %6125 = vperm.xlu0 %6098, %v6124_v50   ;;  %v3884_v50 = vld [vmem:[%s9572_s22] sm:$0xff] }
 0x212   :  { %6130 = vperm.xlu1 %6092, %v6129_v57   ;;  %v6149_v31 = vpack.i.bf16 %v5185_v49, %v8132_v47  ;;  %v6134_v35 = vpack.i.bf16 %v5195_v44, %v5194_v61  ;;  %v6159_v62 = vpack.i.bf16 %v8160_v51, %v8155_v34  ;;  %v6144_v27 = vpack.i.bf16 %v5196_v39, %v5190_v58  ;;  %v9571_v57 = vld [vmem:[#allocation30_spill] sm:$0xff] }
 0x213   :  { %v6169_v22 = vpack.i.bf16 %v8173_v33, %v8176_v16  ;;  %v6154_v60 = vpack.i.bf16 %v8182_v7, %v8179_v53  ;;  %v8196_v9 = vsel %vm3548_vm14, 1.0, %v9366_v19  ;;  %v8199_v30 = vsel %vm3549_vm15, 1.0, %v9366_v19  ;;  %5560 = vmatpush3.bf16.msra.mxu1 %v6389_v41  ;;  %v3887_v44 = vld [vmem:[%s9572_s22 + $0x18] sm:$0xff]  ;;  %v9573_v41 = vld [vmem:[#allocation31_spill] sm:$0xff] }
 0x214   :  { %v8202_v26 = vsel %vm3218_vm0, 1.0, %v9366_v19  ;;  %v8205_v42 = vsel %vm3328_vm1, 1.0, %v9366_v19  ;;  %vm3331_vm2 = vcmp.eq.s32.totalorder %v8109_v25, 3  ;;  %vm3550_vm3 = vcmp.eq.s32.totalorder %v8046_v15, 5 }
 0x215   :  { %vm3329_vm4 = vcmp.eq.s32.totalorder %v8074_v10, 3  ;;  %vm3439_vm5 = vcmp.eq.s32.totalorder %v8053_v59, 4  ;;  %vm3660_vm6 = vcmp.eq.s32.totalorder %v8034_v56, 6  ;;  %vm3661_vm7 = vcmp.eq.s32.totalorder %v8039_v29, 6  ;;  %6135 = vperm.xlu0 %6098, %v6134_v35  }
 0x216   :  { %6140 = vperm.xlu1 %6092, %v6139_v13   ;;  %v6179_v45 = vpack.i.bf16 %v8199_v30, %v8196_v9  ;;  %vm3330_vm8 = vcmp.eq.s32.totalorder %v8096_v48, 3  ;;  %vm3440_vm9 = vcmp.eq.s32.totalorder %v8066_v0, 4  ;;  %vm3443_vm10 = vcmp.eq.s32.totalorder %v8109_v25, 4  ;;  %5562 = vmatmul.mubr.bf16.vlgmr.msra.gmra.mxu1 %v9570_v17  ;;  %v3886_v9 = vld [vmem:[%s9572_s22 + $0x10] sm:$0xff]  ;;  %v3888_v30 = vld [vmem:[%s9572_s22 + $0x20] sm:$0xff] }
 0x217   :  { %2733 = vmatmul.mubr.bf16.gmra.mxu0 %v9570_v17  ;;  %v6164_v12 = vpack.i.bf16 %v8205_v42, %v8202_v26  ;;  %v8225_v1 = vsel %vm3331_vm2, 1.0, %v9366_v19  ;;  %v8230_v18 = vsel %vm3550_vm3, 1.0, %v9366_v19  ;;  %vm3662_vm11 = vcmp.eq.s32.totalorder %v8046_v15, 6  ;;  %5565 = vmatprep.mubr.bf16.mxu1 %v9571_v57  ;;  %v3890_v42 = vld [vmem:[%s9572_s22 + $0x30] sm:$0xff] }
 0x218   :  { %2742 = vmatprep.mubr.bf16.mxu0 %v9545_v63  ;;  %v8234_v21 = vsel %vm3329_vm4, 1.0, %v9366_v19  ;;  %v8237_v38 = vsel %vm3439_vm5, 1.0, %v9366_v19  ;;  %v8240_v43 = vsel %vm3660_vm6, 1.0, %v9366_v19  ;;  %v8243_v37 = vsel %vm3661_vm7, 1.0, %v9366_v19 }
 0x219   :  { %v8246_v32 = vsel %vm3330_vm8, 1.0, %v9366_v19  ;;  %v8249_v8 = vsel %vm3440_vm9, 1.0, %v9366_v19  ;;  %v8252_v23 = vsel %vm3443_vm10, 1.0, %v9366_v19  ;;  %v8255_v36 = vsel %vm3662_vm11, 1.0, %v9366_v19  ;;  %6145 = vperm.xlu0 %6098, %v6144_v27  }
 0x21a   :  { %6150 = vperm.xlu1 %6092, %v6149_v31   ;;  %v6189_v46 = vpack.i.bf16 %v8225_v1, %v8230_v18  ;;  %vm3441_vm12 = vcmp.eq.s32.totalorder %v8074_v10, 4  ;;  %vm3551_vm13 = vcmp.eq.s32.totalorder %v8053_v59, 5  ;;  %vm3772_vm14 = vcmp.eq.s32.totalorder %v8034_v56, 7  ;;  %v3889_v1 = vld [vmem:[%s9572_s22 + $0x28] sm:$0xff] }
 0x21b   :  { %v6174_v24 = vpack.i.bf16 %v8237_v38, %v8234_v21  ;;  %v6199_v54 = vpack.i.bf16 %v8243_v37, %v8240_v43  ;;  %vm3773_vm15 = vcmp.eq.s32.totalorder %v8039_v29, 7  ;;  %vm3442_vm0 = vcmp.eq.s32.totalorder %v8096_v48, 4 }
 0x21c   :  { %v6184_v55 = vpack.i.bf16 %v8249_v8, %v8246_v32  ;;  %v6209_v52 = vpack.i.bf16 %v8252_v23, %v8255_v36  ;;  %vm3552_vm1 = vcmp.eq.s32.totalorder %v8066_v0, 5  ;;  %vm3555_vm2 = vcmp.eq.s32.totalorder %v8109_v25, 5 }
 0x21d   :  { %v8278_v56 = vsel %vm3441_vm12, 1.0, %v9366_v19  ;;  %v8281_v29 = vsel %vm3551_vm13, 1.0, %v9366_v19  ;;  %v8284_v11 = vsel %vm3772_vm14, 1.0, %v9366_v19  ;;  %vm3774_vm3 = vcmp.eq.s32.totalorder %v8046_v15, 7  ;;  %6155 = vperm.xlu0 %6098, %v6154_v60   ;;  %v3885_v15 = vld [vmem:[%s9572_s22 + $0x8] sm:$0xff] }
 0x21e   :  { %6160 = vperm.xlu1 %6092, %v6159_v62   ;;  %v8289_v47 = vsel %vm3773_vm15, 1.0, %v9366_v19  ;;  %v8292_v28 = vsel %vm3442_vm0, 1.0, %v9366_v19  ;;  %vm3553_vm4 = vcmp.eq.s32.totalorder %v8074_v10, 5  ;;  %vm3663_vm5 = vcmp.eq.s32.totalorder %v8053_v59, 6  ;;  %5566 = vmatmul.mubr.bf16.gmra.mxu1 %v9573_v41 }
 0x21f   :  { %2743 = vmatmul.mubr.bf16.gmra.mxu0 %v9571_v57  ;;  %v8310_v49 = vsel %vm3555_vm2, 1.0, %v9366_v19  ;;  %vm3666_vm6 = vcmp.eq.s32.totalorder %v8096_v48, 6  ;;  %vm3776_vm7 = vcmp.eq.s32.totalorder %v8066_v0, 7  ;;  %v8315_v61 = vsel %vm3774_vm3, 1.0, %v9366_v19 }
 0x220   :  { %2752 = vmatprep.mubr.bf16.mxu0 %v9545_v63  ;;  %v8305_v63 = vsel %vm3552_vm1, 1.0, %v9366_v19  ;;  %vm3554_vm8 = vcmp.eq.s32.totalorder %v8096_v48, 5  ;;  %vm3664_vm9 = vcmp.eq.s32.totalorder %v8066_v0, 6  ;;  %vm3892_vm10 = vcmask 7168   ;;  %v3891_v0 = vld [vmem:[%s9572_s22 + $0x38] sm:$0xff] }
 0x221   :  { %v8326_v34 = vsel %vm3553_vm4, 1.0, %v9366_v19  ;;  %v8329_v51 = vsel %vm3663_vm5, 1.0, %v9366_v19  ;;  %v3893_v58 = vsel %vm3892_vm10, %v3884_v50, 0.0  ;;  %v3900_v39 = vsel %vm3892_vm10, %v3885_v15, 0.0  ;;  %6165 = vperm.xlu0 %6098, %v6164_v12  }
 0x222   :  { %6170 = vperm.xlu1 %6092, %v6169_v22   ;;  %v8335_v53 = vsel %vm3666_vm6, 1.0, %v9366_v19  ;;  %v8338_v7 = vsel %vm3776_vm7, 1.0, %v9366_v19  ;;  %v3894_v33 = vrot.slane %v3893_v58, 4  ;;  %v3901_v16 = vrot.slane %v3900_v39, 4 }
 0x223   :  { %v6194_v13 = vpack.i.bf16 %v8281_v29, %v8278_v56  ;;  %v8345_v31 = vsel %vm3554_vm8, 1.0, %v9366_v19  ;;  %v8350_v35 = vsel %vm3664_vm9, 1.0, %v9366_v19  ;;  %v3914_v62 = vsel %vm3892_vm10, %v3887_v44, 0.0 }
 0x224   :  { %v6219_v27 = vpack.i.bf16 %v8289_v47, %v8284_v11  ;;  %v6204_v22 = vpack.i.bf16 %v8305_v63, %v8292_v28  ;;  %v3895_v60 = vadd.f32 %v3894_v33, %v3893_v58  ;;  %v3902_v26 = vadd.f32 %v3901_v16, %v3900_v39 }
 0x225   :  { %v6229_v17 = vpack.i.bf16 %v8310_v49, %v8315_v61  ;;  %v6214_v12 = vpack.i.bf16 %v8329_v51, %v8326_v34  ;;  %v3915_v38 = vrot.slane %v3914_v62, 4  ;;  %6175 = vperm.xlu0 %6098, %v6174_v24   ;;  %v6224_v57 = vpack.i.bf16 %v8350_v35, %v8345_v31 }
 0x226   :  { %6180 = vperm.xlu1 %6092, %v6179_v45   ;;  %v3896_v56 = vrot.slane %v3895_v60, 2  ;;  %v3903_v29 = vrot.slane %v3902_v26, 2  ;;  %vm3665_vm11 = vcmp.eq.s32.totalorder %v8074_v10, 6  ;;  %vm3775_vm12 = vcmp.eq.s32.totalorder %v8053_v59, 7 }
 0x227   :  { %2753 = vmatmul.mubr.bf16.gmra.mxu0 %v9573_v41  ;;  %v3916_v45 = vadd.f32 %v3915_v38, %v3914_v62  ;;  %v3935_v24 = vsel %vm3892_vm10, %v3890_v42, 0.0  ;;  %v3942_v50 = vsel %vm3892_vm10, %v3891_v0, 0.0  ;;  %v8389_v41 = vsel %vm3665_vm11, 1.0, %v9366_v19 }
 0x228   :  { %v3897_v15 = vadd.f32 %v3896_v56, %v3895_v60  ;;  %v3904_v44 = vadd.f32 %v3903_v29, %v3902_v26  ;;  %v3936_v58 = vrot.slane %v3935_v24, 4  ;;  %v3943_v39 = vrot.slane %v3942_v50, 4 }
 0x229   :  { %v3917_v33 = vrot.slane %v3916_v45, 2  ;;  %v3907_v16 = vsel %vm3892_vm10, %v3886_v9, 0.0  ;;  %v3921_v62 = vsel %vm3892_vm10, %v3888_v30, 0.0  ;;  %6185 = vperm.xlu0 %6098, %v6184_v55   ;;  %v8402_v18 = vsel %vm3775_vm12, 1.0, %v9366_v19 }
 0x22a   :  { %6190 = vperm.xlu1 %6092, %v6189_v46   ;;  %v3898_v60 = vrot.slane %v3897_v15, 1  ;;  %v3905_v26 = vrot.slane %v3904_v44, 1  ;;  %v3937_v42 = vadd.f32 %v3936_v58, %v3935_v24  ;;  %v3944_v0 = vadd.f32 %v3943_v39, %v3942_v50 }
 0x22b   :  { %v3918_v46 = vadd.f32 %v3917_v33, %v3916_v45  ;;  %v3908_v38 = vrot.slane %v3907_v16, 4  ;;  %v3922_v56 = vrot.slane %v3921_v62, 4  ;;  %vm3667_vm13 = vcmp.eq.s32.totalorder %v8109_v25, 6 }
 0x22c   :  { %v3899_v29 = vadd.f32 %v3898_v60, %v3897_v15  ;;  %v3906_v9 = vadd.f32 %v3905_v26, %v3904_v44  ;;  %v3938_v32 = vrot.slane %v3937_v42, 2  ;;  %v3945_v8 = vrot.slane %v3944_v0, 2 }
 0x22d   :  { %v3919_v55 = vrot.slane %v3918_v46, 1  ;;  %vm3777_vm14 = vcmp.eq.s32.totalorder %v8074_v10, 7  ;;  %v3909_v30 = vadd.f32 %v3908_v38, %v3907_v16  ;;  %v3923_v59 = vadd.f32 %v3922_v56, %v3921_v62  ;;  %6195 = vperm.xlu0 %6098, %v6194_v13  }
 0x22e   :  { %6200 = vperm.xlu1 %6092, %v6199_v54   ;;  %v3928_v24 = vsel %vm3892_vm10, %v3889_v1, 0.0  ;;  %v5673_v45 = vtrunc.f32 %v3899_v29  ;;  %v5675_v50 = vtrunc.f32 %v3906_v9  ;;  %v3939_v15 = vadd.f32 %v3938_v32, %v3937_v42 }
 0x22f   :  { %v3946_v44 = vadd.f32 %v3945_v8, %v3944_v0  ;;  %v3920_v58 = vadd.f32 %v3919_v55, %v3918_v46  ;;  %v3910_v39 = vrot.slane %v3909_v30, 2  ;;  %v3924_v33 = vrot.slane %v3923_v59, 2 }
 0x230   :  { %v3929_v60 = vrot.slane %v3928_v24, 4  ;;  %v5674_v26 = vcvt.f32.s32 %v5673_v45  ;;  %v5676_v21 = vcvt.f32.s32 %v5675_v50  ;;  %vm3779_vm15 = vcmp.eq.s32.totalorder %v8109_v25, 7 }
 0x231   :  { %v3940_v43 = vrot.slane %v3939_v15, 1  ;;  %v3947_v37 = vrot.slane %v3946_v44, 1  ;;  %v5679_v54 = vtrunc.f32 %v3920_v58  ;;  %v3911_v13 = vadd.f32 %v3910_v39, %v3909_v30  ;;  %6205 = vperm.xlu0 %6098, %v6204_v22   ;;  %v9574_v22 = vld [vmem:[#allocation45_spill] sm:$0xff] }
 0x232   :  { %6210 = vperm.xlu1 %6092, %v6209_v52   ;;  %v3925_v16 = vadd.f32 %v3924_v33, %v3923_v59  ;;  %v3930_v62 = vadd.f32 %v3929_v60, %v3928_v24  ;;  %v5234_v42 = vadd.s32 4294967295, %v5674_v26  ;;  %v5235_v0 = vadd.s32 4294967295, %v5676_v21 }
 0x233   :  { %v3941_v1 = vadd.f32 %v3940_v43, %v3939_v15  ;;  %v3948_v46 = vadd.f32 %v3947_v37, %v3946_v44  ;;  %v5680_v38 = vcvt.f32.s32 %v5679_v54  ;;  %v3912_v56 = vrot.slane %v3911_v13, 1 }
 0x234   :  { %v3926_v29 = vrot.slane %v3925_v16, 1  ;;  %v3931_v9 = vrot.slane %v3930_v62, 2  ;;  %vm3965_vm0 = vcmp.lt.s32.totalorder %v5234_v42, 0  ;;  %vm3966_vm1 = vcmp.lt.s32.totalorder %v5235_v0, 0 }
 0x235   :  { %v5685_v23 = vtrunc.f32 %v3941_v1  ;;  %v5687_v36 = vtrunc.f32 %v3948_v46  ;;  %v3973_v52 = vsel %vm3965_vm0, 7, %v5234_v42  ;;  %v3974_v32 = vsel %vm3966_vm1, 7, %v5235_v0  ;;  %6215 = vperm.xlu0 %6098, %v6214_v12  }
 0x236   :  { %6220 = vperm.xlu1 %6092, %v6219_v27   ;;  %v5237_v28 = vadd.s32 4294967295, %v5680_v38  ;;  %v3913_v63 = vadd.f32 %v3912_v56, %v3911_v13  ;;  %vm3983_vm2 = vcmp.eq.s32.totalorder %v9574_v22, %v3973_v52  ;;  %v6234_v21 = vpack.i.bf16 %v8402_v18, %v8389_v41 }
 0x237   :  { %v5686_v8 = vcvt.f32.s32 %v5685_v23  ;;  %v5688_v55 = vcvt.f32.s32 %v5687_v36  ;;  %vm3984_vm3 = vcmp.eq.s32.totalorder %v9574_v22, %v3974_v32  ;;  %v5225_v11 = vsel %vm3667_vm13, 1.0, %v9366_v19 }
 0x238   :  { %vm3968_vm4 = vcmp.lt.s32.totalorder %v5237_v28, 0  ;;  %v5677_v47 = vtrunc.f32 %v3913_v63  ;;  %v5231_v34 = vsel %vm3777_vm14, 1.0, %v9366_v19  ;;  %v5242_v41 = vsel %vm3983_vm2, 1.0, %v9366_v19 }
 0x239   :  { %v3976_v27 = vsel %vm3968_vm4, 7, %v5237_v28  ;;  %v5240_v51 = vadd.s32 4294967295, %v5686_v8  ;;  %v5241_v12 = vadd.s32 4294967295, %v5688_v55  ;;  %v3927_v30 = vadd.f32 %v3926_v29, %v3925_v16  ;;  %6225 = vperm.xlu0 %6098, %v6224_v57  }
 0x23a   :  { %6230 = vperm.xlu1 %6092, %v6229_v17   ;;  %v5678_v18 = vcvt.f32.s32 %v5677_v47  ;;  %v3932_v59 = vadd.f32 %v3931_v9, %v3930_v62  ;;  %v5243_v24 = vsel %vm3984_vm3, 1.0, %v9366_v19  ;;  %vm3986_vm5 = vcmp.eq.s32.totalorder %v9574_v22, %v3976_v27 }
 0x23b   :  { %vm3971_vm6 = vcmp.lt.s32.totalorder %v5240_v51, 0  ;;  %vm3972_vm7 = vcmp.lt.s32.totalorder %v5241_v12, 0  ;;  %v5233_v10 = vsel %vm3779_vm15, 1.0, %v9366_v19  ;;  %vm3778_vm8 = vcmp.eq.s32.totalorder %v8096_v48, 7 }
 0x23c   :  { %v3979_v49 = vsel %vm3971_vm6, 7, %v5240_v51  ;;  %v5236_v61 = vadd.s32 4294967295, %v5678_v18  ;;  %v3980_v17 = vsel %vm3972_vm7, 7, %v5241_v12  ;;  %v3933_v45 = vrot.slane %v3932_v59, 1 }
 0x23d   :  { %v5681_v50 = vtrunc.f32 %v3927_v30  ;;  %v9575_v31 = vpack.i.bf16 %v8338_v7, %v8335_v53  ;;  %v6249_v35 = vpack.i.bf16 %v5243_v24, %v5242_v41  ;;  %v5245_v57 = vsel %vm3986_vm5, 1.0, %v9366_v19  ;;  %6235 = vperm.xlu0 %6098, %v6234_v21  }
 0x23e   :  { %v6244_v15 = vpack.i.bf16 %v5231_v34, %v5225_v11  ;;  %vm3967_vm9 = vcmp.lt.s32.totalorder %v5236_v61, 0  ;;  %vm3989_vm10 = vcmp.eq.s32.totalorder %v9574_v22, %v3979_v49  ;;  %v3934_v44 = vadd.f32 %v3933_v45, %v3932_v59  ;;  %v6391_v49 = vld [vmem:[#allocation14 + $0x30] sm:$0xff]  }
 0x23f   :  { %6240 = vperm.xlu1 %6092, %v9575_v31   ;;  %v3975_v25 = vsel %vm3967_vm9, 7, %v5236_v61  ;;  %v5682_v58 = vcvt.f32.s32 %v5681_v50  ;;  %vm3990_vm11 = vcmp.eq.s32.totalorder %v9574_v22, %v3980_v17  ;;  %v5232_v48 = vsel %vm3778_vm8, 1.0, %v9366_v19  ;;  %v6392_v31 = vld [vmem:[#allocation14 + $0x28] sm:$0xff]  }
 0x240   :  { %vm3985_vm12 = vcmp.eq.s32.totalorder %v9574_v22, %v3975_v25  ;;  %v5683_v7 = vtrunc.f32 %v3934_v44  ;;  %v6259_v33 = vpack.i.bf16 %v5245_v57, %v5233_v10  ;;  %v5248_v60 = vsel %vm3989_vm10, 1.0, %v9366_v19  ;;  %v6390_v10 = vld [vmem:[#allocation14 + $0x38] sm:$0xff]   ;;  %v6393_v44 = vld [vmem:[#allocation14 + $0x20] sm:$0xff]  }
 0x241   :  { %v5244_v53 = vsel %vm3985_vm12, 1.0, %v9366_v19  ;;  %v5238_v39 = vadd.s32 4294967295, %v5682_v58  ;;  %6245 = vperm.xlu0 %6098, %v6244_v15   ;;  %v5249_v26 = vsel %vm3990_vm11, 1.0, %v9366_v19  ;;  %5589 = vmatprep.subr.bf16.mxu1 %v6390_v10  ;;  %v6398_v58 = vld [vmem:[#allocation13 + $0x38] sm:$0xff]   ;;  %vm6836_vm1 = vmmov 0  }
 0x242   :  { %v6254_v43 = vpack.i.bf16 %v5244_v53, %v5232_v48  ;;  %v5684_v37 = vcvt.f32.s32 %v5683_v7  ;;  %v6269_v16 = vpack.i.bf16 %v5249_v26, %v5248_v60  ;;  %5590 = vmatpush3.bf16.msra.mxu1 %v6390_v10  ;;  %5570 = vmatpush3.bf16.msra.mxu0 %v6398_v58  ;;  %v6399_v7 = vld [vmem:[#allocation13 + $0x30] sm:$0xff]   ;;  %vm4168_vm2 = vcmask 1041409  }
 0x243   :  { %6250 = vperm.xlu1 %6092, %v6249_v35   ;;  %vm3969_vm13 = vcmp.lt.s32.totalorder %v5238_v39, 0  ;;  %5591 = vmatprep.subr.bf16.mxu1 %v6391_v49  ;;  %vm4170_vm3 = vcmask 1042434   ;;  %vm4172_vm4 = vcmask 1043459   ;;  %vm4174_vm5 = vcmask 1044484  }
 0x244   :  { %v3977_v54 = vsel %vm3969_vm13, 7, %v5238_v39  ;;  %v5239_v13 = vadd.s32 4294967295, %v5684_v37  ;;  %5571 = vmatprep.subr.bf16.mxu0 %v9366_v19  ;;  %vm4176_vm6 = vcmask 1045509   ;;  %vm4178_vm7 = vcmask 1046534  }
 0x245   :  { %vm3987_vm14 = vcmp.eq.s32.totalorder %v9574_v22, %v3977_v54  ;;  %6255 = vperm.xlu0 %6098, %v6254_v43   ;;  %v6395_v54 = vld [vmem:[#allocation14 + $0x10] sm:$0xff]   ;;  %vm4180_vm8 = vcmask 1047559  }
 0x246   :  { %vm3970_vm15 = vcmp.lt.s32.totalorder %v5239_v13, 0  ;;  %v5246_v42 = vsel %vm3987_vm14, 1.0, %v9366_v19  ;;  %5592 = vmatpush3.bf16.msra.mxu1 %v6391_v49  ;;  %5572 = vmatpush3.bf16.msra.mxu0 %v6399_v7 }
 0x247   :  { %6260 = vperm.xlu1 %6092, %v6259_v33   ;;  %v3978_v62 = vsel %vm3970_vm15, 7, %v5239_v13  ;;  %5593 = vmatprep.subr.bf16.mxu1 %v6392_v31  ;;  %v6394_v33 = vld [vmem:[#allocation14 + $0x18] sm:$0xff]  }
 0x248   :  { %vm3988_vm0 = vcmp.eq.s32.totalorder %v9574_v22, %v3978_v62  ;;  %5573 = vmatprep.subr.bf16.mxu0 %v9366_v19  ;;  %v382_v62 = vld [vmem:[%s9294_s13] sm:$0x7] }
 0x249   :  { %v5247_v0 = vsel %vm3988_vm0, 1.0, %v9366_v19  ;;  %v8563_v19 = vrot.slane %v382_v62, %v7299_v2 }
 0x24a   :  { %v6264_v1 = vpack.i.bf16 %v5247_v0, %v5246_v42  ;;  %5594 = vmatpush3.bf16.msra.mxu1 %v6392_v31 }
 0x24b   :  { %6270 = vperm.xlu1 %6092, %v6269_v16   ;;  %5595 = vmatprep.subr.bf16.mxu1 %v6393_v44 }
 0x24c   :  { %6265 = vperm.xlu0 %6098, %v6264_v1   ;;  %v8551_v1 = vld [vmem:[%s9296_s15] sm:$0x7] }
 0x24d   :  { %v8567_v22 = vrot.slane %v8551_v1, %v7299_v2 }
 0x24e   :  { %5596 = vmatpush3.bf16.msra.mxu1 %v6393_v44  ;;  %v6396_v44 = vld [vmem:[#allocation14 + $0x8] sm:$0xff]  }
 0x24f   :  { %5597 = vmatprep.subr.bf16.mxu1 %v6394_v33 }
 0x252   :  { %5598 = vmatpush3.bf16.msra.mxu1 %v6394_v33 }
 0x253   :  { %5599 = vmatprep.subr.bf16.mxu1 %v6395_v54 }
 0x256   :  { %5600 = vmatpush3.bf16.msra.mxu1 %v6395_v54 }
 0x257   :  { %5601 = vmatprep.subr.bf16.mxu1 %v6396_v44 }
 0x25a   :  { %5602 = vmatpush3.bf16.msra.mxu1 %v6396_v44 }
 0x27d   :  { %v8499_v18 = vpop.permute.xlu1 %6094 }
 0x281   :  { %v8511_v45 = vpop.permute.xlu1 %6105 }
 0x282   :  { %9577 = vst [vmem:[#allocation35_spill] sm:$0xff] %v8511_v45 }
 0x284   :  { %v8534_v43 = vpop.permute.xlu0 %6100 }
 0x285   :  { %v8519_v15 = vpop.permute.xlu1 %6110 }
 0x286   :  { %9579 = vst [vmem:[#allocation32_spill] sm:$0xff] %v8519_v15  ;;  %v6403_v15 = vld [vmem:[#allocation13 + $0x10] sm:$0xff]  }
 0x288   :  { %v8555_v49 = vpop.permute.xlu0 %6115 }
 0x289   :  { %v8461_v46 = vpop.f32.mrf.mxu0  ;;  %v8532_v26 = vpop.permute.xlu1 %6120 }
 0x28a   :  { %v8489_v47 = vpop.f32.mrf.mxu1 }
 0x28b   :  { %v8463_v38 = vpop.f32.mrf.mxu0 }
 0x28c   :  { %v8493_v51 = vpop.f32.mrf.mxu1  ;;  %v8579_v3 = vpop.permute.xlu0 %6125 }
 0x28d   :  { %v8465_v56 = vpop.f32.mrf.mxu0  ;;  %v8553_v10 = vpop.permute.xlu1 %6130 }
 0x28e   :  { %v8501_v30 = vpop.f32.mrf.mxu1 }
 0x28f   :  { %v8467_v29 = vpop.f32.mrf.mxu0  ;;  %9576 = vst [vmem:[#allocation60_spill] sm:$0xff] %v8501_v30 }
 0x290   :  { %v8507_v61 = vpop.f32.mrf.mxu1 }
 0x291   :  { %v8469_v9 = vpop.f32.mrf.mxu0 }
 0x293   :  { %v8471_v23 = vpop.f32.mrf.mxu0 }
 0x295   :  { %v8473_v36 = vpop.f32.mrf.mxu0 }
 0x297   :  { %v8475_v52 = vpop.f32.mrf.mxu0 }
 0x299   :  { %v8477_v32 = vpop.f32.mrf.mxu0 }
 0x29b   :  { %v8479_v28 = vpop.f32.mrf.mxu0 }
 0x29d   :  { %v8481_v63 = vpop.f32.mrf.mxu0 }
 0x29f   :  { %v8483_v21 = vpop.f32.mrf.mxu0 }
 0x2a0   :  { %v8515_v35 = vpop.f32.mrf.mxu1 }
 0x2a1   :  { %v8485_v8 = vpop.f32.mrf.mxu0  ;;  %9578 = vst [vmem:[#allocation41_spill] sm:$0xff] %v8515_v35  ;;  %v6401_v35 = vld [vmem:[#allocation13 + $0x20] sm:$0xff]  }
 0x2a2   :  { %v8523_v48 = vpop.f32.mrf.mxu1 }
 0x2a3   :  { %v2168_v55 = vpop.f32.mrf.mxu0  ;;  %9580 = vst [vmem:[#allocation33_spill] sm:$0xff] %v8523_v48 }
 0x2a4   :  { %v8530_v60 = vpop.f32.mrf.mxu1 }
 0x2a5   :  { %v8487_v11 = vpop.f32.mrf.mxu0  ;;  %9581 = vst [vmem:[#allocation34_spill] sm:$0xff] %v8530_v60 }
 0x2a6   :  { %v8539_v13 = vpop.f32.mrf.mxu1 }
 0x2a7   :  { %v8491_v27 = vpop.f32.mrf.mxu0  ;;  %9582 = vst [vmem:[#allocation37_spill] sm:$0xff] %v8539_v13  ;;  %v8619_v13 = vpop.permute.xlu0 %6135 }
 0x2aa   :  { %v2402_v34 = vpop.f32.mrf.mxu0 }
 0x2ab   :  { %v2403_v7 = vadd.f32 %v2402_v34, %v8461_v46  ;;  %v8577_v34 = vpop.permute.xlu1 %6140 }
 0x2ac   :  { %v8495_v12 = vpop.f32.mrf.mxu0  ;;  %9583 = vst [vmem:[#allocation38_spill] sm:$0xff] %v8577_v34  ;;  %v9620_v34 = vunpack.i.l.bf16 %v8579_v3 }
 0x2ad   :  { %v2522_v5 = vadd.f32 %v8563_v19, %v2403_v7  ;;  %v6400_v7 = vld [vmem:[#allocation13 + $0x28] sm:$0xff]  }
 0x2ae   :  { %v8497_v41 = vpop.f32.mrf.mxu0  ;;  %5574 = vmatpush3.bf16.msra.mxu0 %v6400_v7  ;;  %v8615_v7 = vrot.slane %v382_v62, %v7308_v4 }
 0x2af   :  { %v2407_v46 = vadd.f32 %v8497_v41, %v8465_v56  ;;  %v8588_v56 = vld [vmem:[#allocation7 + $0x8] sm:$0xff]   ;;  %v8600_v41 = vld [vmem:[#allocation7 + $0x18] sm:$0xff]  }
 0x2b0   :  { %v8503_v59 = vpop.f32.mrf.mxu0  ;;  %9586 = vst [vmem:[#allocation55_spill] sm:$0xff] %v8588_v56  ;;  %9588 = vst [vmem:[#allocation44_spill] sm:$0xff] %v8600_v41 }
 0x2b1   :  { %v8546_v42 = vpop.f32.mrf.mxu1 }
 0x2b2   :  { %v8505_v24 = vpop.f32.mrf.mxu0 }
 0x2b3   :  { %v8569_v33 = vpop.f32.mrf.mxu1 }
 0x2b4   :  { %v8509_v17 = vpop.f32.mrf.mxu0 }
 0x2b5   :  { %v8582_v2 = vpop.f32.mrf.mxu1 }
 0x2b6   :  { %v8513_v50 = vpop.f32.mrf.mxu0  ;;  %9584 = vst [vmem:[#allocation39_spill] sm:$0xff] %v8582_v2  ;;  %v2525_v2 = vadd.f32 %v8563_v19, %v2407_v46  ;;  %v8608_v46 = vrot.slane %v8551_v1, %v7296_v14 }
 0x2b7   :  { %v8604_v48 = vpop.f32.mrf.mxu1 }
 0x2b8   :  { %v8517_v57 = vpop.f32.mrf.mxu0 }
 0x2be   :  { %v8521_v25 = vpop.f32.mrf.mxu0 }
 0x2c0   :  { %v8525_v53 = vpop.f32.mrf.mxu0 }
 0x2c2   :  { %v8528_v39 = vpop.f32.mrf.mxu0 }
 0x2c4   :  { %v8536_v37 = vpop.f32.mrf.mxu0 }
 0x2c7   :  { %v8541_v16 = vpop.f32.mrf.mxu0 }
 0x2c9   :  { %v2434_v0 = vpop.f32.mrf.mxu0 }
 0x2ca   :  { %v8557_v31 = vadd.f32 %v2434_v0, %v2168_v55  ;;  %v6397_v0 = vld [vmem:[#allocation14] sm:$0xff]  }
 0x2cb   :  { %v8559_v58 = vpop.f32.mrf.mxu0  ;;  %5603 = vmatprep.subr.bf16.mxu1 %v6397_v0 }
 0x2cc   :  { %5604 = vmatpush3.bf16.msra.mxu1 %v6397_v0 }
 0x2cd   :  { %v2438_v6 = vpop.f32.mrf.mxu0 }
 0x2ce   :  { %v8572_v55 = vadd.f32 %v2438_v6, %v8491_v27  ;;  %v8584_v6 = vld [vmem:[#allocation7] sm:$0xff]  }
 0x2cf   :  { %v2724_v40 = vpop.f32.mrf.mxu0  ;;  %9585 = vst [vmem:[#allocation54_spill] sm:$0xff] %v8584_v6  ;;  %v2405_v6 = vadd.f32 %v8495_v12, %v8463_v38 }
 0x2d0   :  { %v2725_v20 = vadd.f32 %v2724_v40, %v8567_v22  ;;  %v8592_v40 = vld [vmem:[#allocation7 + $0x10] sm:$0xff]  }
 0x2d1   :  { %v2726_v54 = vpop.f32.mrf.mxu0  ;;  %9587 = vst [vmem:[#allocation43_spill] sm:$0xff] %v8592_v40  ;;  %v8638_v40 = vrot.slane %v8551_v1, %v7308_v4 }
 0x2d2   :  { %v2828_v60 = vadd.f32 %v2725_v20, %v2522_v5  ;;  %v2413_v20 = vadd.f32 %v8505_v24, %v8469_v9  ;;  %v9589_v24 = vmov 0.0   ;;  %v2727_v0 = vadd.f32 %v2726_v54, %v8608_v46 }
 0x2d3   :  { %v2728_v44 = vpop.f32.mrf.mxu0  ;;  %5575 = vmatprep.subr.bf16.mxu0 %v9589_v24  ;;  %5633 = vmatprep.subr.bf16.mxu1 %v9589_v24 }
 0x2d4   :  { %v5154_v5 = vmul.f32 -1.442695, %v2828_v60  ;;  %v2729_v27 = vadd.f32 %v2728_v44, %v8567_v22  ;;  %v8612_v60 = vrot.slane %v382_v62, %v7296_v14  ;;  %v8617_v44 = vpop.permute.xlu1 %6150  ;;  %v8627_v14 = vpop.f32.mrf.mxu1  ;;  %v2528_v30 = vadd.f32 %v8563_v19, %v2413_v20  ;;  %5576 = vmatpush3.bf16.msra.mxu0 %v6401_v35  ;;  %5585 = vmatprep.mubr.msk.bf16.mxu0 %vm6836_vm1, %v9589_v24 }
 0x2d5   :  { %v2730_v9 = vpop.f32.mrf.mxu0  ;;  %9590 = vst [vmem:[#allocation46_spill] sm:$0xff] %v8617_v44  ;;  %5577 = vmatprep.subr.bf16.mxu0 %v9589_v24 }
 0x2d6   :  { %6434 = vpow2.f32 %v5154_v5  ;;  %v2829_v56 = vadd.f32 %v2729_v27, %v2525_v2  ;;  %v2417_v5 = vadd.f32 %v8513_v50, %v8473_v36  ;;  %v2409_v36 = vadd.f32 %v8503_v59, %v8467_v29  ;;  %v8649_v1 = vpop.f32.mrf.mxu1  ;;  %v8654_v29 = vpop.permute.xlu0 %6145 }
 0x2d7   :  { %v2734_v62 = vpop.f32.mrf.mxu0 }
 0x2d8   :  { %v5155_v2 = vmul.f32 -1.442695, %v2829_v56  ;;  %v2735_v27 = vadd.f32 %v2734_v62, %v8567_v22  ;;  %v2523_v56 = vadd.f32 %v8612_v60, %v2405_v6  ;;  %v2423_v62 = vadd.f32 %v8521_v25, %v8477_v32  ;;  %v8652_v45 = vpop.permute.xlu1 %6160 }
 0x2d9   :  { %v2736_v41 = vpop.f32.mrf.mxu0  ;;  %v2531_v38 = vadd.f32 %v8563_v19, %v2417_v5  ;;  %v2526_v20 = vadd.f32 %v8612_v60, %v2409_v36  ;;  %v8669_v36 = vpop.f32.mrf.mxu1 }
 0x2da   :  { %6436 = vpow2.f32 %v5155_v2  ;;  %v2830_v35 = vadd.f32 %v2735_v27, %v2528_v30  ;;  %v2731_v30 = vadd.f32 %v2730_v9, %v8608_v46  ;;  %v6402_v2 = vld [vmem:[#allocation13 + $0x18] sm:$0xff]   ;;  %v2884_v32 = vadd.f32 %v2727_v0, %v2523_v56 }
 0x2db   :  { %v2738_v12 = vpop.f32.mrf.mxu0  ;;  %5578 = vmatpush3.bf16.msra.mxu0 %v6402_v2  ;;  %v2415_v9 = vadd.f32 %v8509_v17, %v8471_v23  ;;  %v2737_v27 = vadd.f32 %v2736_v41, %v8608_v46  ;;  %v2419_v0 = vadd.f32 %v8517_v57, %v8475_v52  ;;  %v2433_v52 = vadd.f32 %v8541_v16, %v8485_v8  ;;  %v8690_v57 = vpop.f32.mrf.mxu1 }
 0x2dc   :  { %v5156_v59 = vmul.f32 -1.442695, %v2830_v35  ;;  %v2739_v6 = vadd.f32 %v2738_v12, %v8567_v22  ;;  %v2534_v12 = vadd.f32 %v8563_v19, %v2423_v62  ;;  %5579 = vmatprep.subr.bf16.mxu0 %v9589_v24  ;;  %v5162_v62 = vmul.f32 -1.442695, %v2884_v32  ;;  %v8681_v35 = vpop.permute.xlu1 %6170 }
 0x2dd   :  { %v2740_v25 = vpop.f32.mrf.mxu0  ;;  %v8696_v17 = vpop.f32.mrf.mxu1  ;;  %v2532_v8 = vadd.f32 %v8612_v60, %v2419_v0  ;;  %v2425_v16 = vadd.f32 %v8525_v53, %v8479_v28 }
 0x2de   :  { %6438 = vpow2.f32 %v5156_v59  ;;  %v2831_v54 = vadd.f32 %v2739_v6, %v2531_v38  ;;  %v2427_v38 = vadd.f32 %v8528_v39, %v8481_v63  ;;  %v2885_v59 = vadd.f32 %v2731_v30, %v2526_v20  ;;  %v8683_v63 = vpop.permute.xlu0 %6155  ;;  %v6404_v20 = vld [vmem:[#allocation13 + $0x8] sm:$0xff]  }
 0x2df   :  { %v2744_v56 = vpop.f32.mrf.mxu0  ;;  %5580 = vmatpush3.bf16.msra.mxu0 %v6403_v15  ;;  %v2529_v30 = vadd.f32 %v8612_v60, %v2415_v9  ;;  %v2741_v9 = vadd.f32 %v2740_v25, %v8608_v46  ;;  %v2437_v25 = vadd.f32 %v8559_v58, %v8487_v11 }
 0x2e0   :  { %v5157_v6 = vmul.f32 -1.442695, %v2831_v54  ;;  %v2745_v2 = vadd.f32 %v2744_v56, %v8567_v22  ;;  %5581 = vmatprep.subr.bf16.mxu0 %v9589_v24  ;;  %v5163_v15 = vmul.f32 -1.442695, %v2885_v59  ;;  %v6405_v59 = vld [vmem:[#allocation13] sm:$0xff]   ;;  %v8707_v0 = vpop.permute.xlu1 %6180 }
 0x2e1   :  { %v2746_v50 = vpop.f32.mrf.mxu0  ;;  %v2886_v23 = vadd.f32 %v2737_v27, %v2529_v30  ;;  %v2540_v27 = vadd.f32 %v8563_v19, %v2433_v52  ;;  %v2887_v30 = vadd.f32 %v2741_v9, %v2532_v8 }
 0x2e2   :  { %6440 = vpow2.f32 %v5157_v6  ;;  %v2832_v39 = vadd.f32 %v2745_v2, %v2534_v12  ;;  %v2537_v6 = vadd.f32 %v8563_v19, %v2427_v38  ;;  %v2429_v38 = vadd.f32 %v8536_v37, %v8483_v21  ;;  %v8709_v28 = vpop.permute.xlu0 %6165 }
 0x2e3   :  { %v6435_v54 = vpop.eup %6434  ;;  %v2748_v56 = vpop.f32.mrf.mxu0  ;;  %6442 = vpow2.f32 %v5162_v62  ;;  %5582 = vmatpush3.bf16.msra.mxu0 %v6404_v20  ;;  %v2747_v21 = vadd.f32 %v2746_v50, %v8608_v46  ;;  %v5164_v20 = vmul.f32 -1.442695, %v2886_v23  ;;  %v2541_v50 = vadd.f32 %v8612_v60, %v8557_v31 }
 0x2e4   :  { %v2860_v12 = vadd.f32 1.0, %v6435_v54  ;;  %v5158_v2 = vmul.f32 -1.442695, %v2832_v39  ;;  %v2749_v32 = vadd.f32 %v2748_v56, %v8567_v22  ;;  %5583 = vmatprep.subr.bf16.mxu0 %v9589_v24  ;;  %v2535_v56 = vadd.f32 %v8612_v60, %v2425_v16 }
 0x2e5   :  { %v2750_v41 = vpop.f32.mrf.mxu0 }
 0x2e6   :  { %6444 = vrcp.f32 %v2860_v12  ;;  %v2833_v39 = vadd.f32 %v2749_v32, %v2537_v6  ;;  %v2751_v11 = vadd.f32 %v2750_v41, %v8608_v46  ;;  %v2797_v32 = vpop.f32.mrf.mxu1  ;;  %v2538_v6 = vadd.f32 %v8612_v60, %v2429_v38 }
 0x2e7   :  { %v6437_v62 = vpop.eup %6436  ;;  %6446 = vpow2.f32 %v5158_v2  ;;  %v2754_v54 = vpop.f32.mrf.mxu0  ;;  %5584 = vmatpush3.bf16.msra.mxu0 %v6405_v59  ;;  %v2888_v8 = vadd.f32 %v2747_v21, %v2535_v56  ;;  %v5165_v59 = vmul.f32 -1.442695, %v2887_v30  ;;  %v2476_v21 = vadd.f32 %v8569_v33, %v8493_v51 }
 0x2e8   :  { %v2861_v53 = vadd.f32 1.0, %v6437_v62  ;;  %6448 = vpow2.f32 %v5163_v15  ;;  %v2755_v37 = vadd.f32 %v2754_v54, %v8567_v22  ;;  %v5159_v52 = vmul.f32 -1.442695, %v2833_v39  ;;  %5613 = vmatprep.subr.bf16.mxu0 %v9589_v24  ;;  %v8723_v31 = vpop.f32.mrf.mxu1  ;;  %v8733_v30 = vpop.permute.xlu1 %6190 }
 0x2e9   :  { %v2756_v58 = vpop.f32.mrf.mxu0  ;;  %v2543_v15 = vadd.f32 %v8563_v19, %v2437_v25  ;;  %v6138_v62 = vunpack.i.h.bf16 %v8619_v13  ;;  %v8725_v19 = vpop.permute.xlu0 %6175  ;;  %v2798_v56 = vadd.f32 %v2797_v32, %v8638_v40 }
 0x2ea   :  { %6450 = vrcp.f32 %v2861_v53  ;;  %v2834_v12 = vadd.f32 %v2755_v37, %v2540_v27  ;;  %v2757_v23 = vadd.f32 %v2756_v58, %v8608_v46  ;;  %v2889_v27 = vadd.f32 %v2751_v11, %v2538_v6  ;;  %v2800_v51 = vpop.f32.mrf.mxu1 }
 0x2eb   :  { %v6439_v2 = vpop.eup %6438  ;;  %6452 = vpow2.f32 %v5159_v52  ;;  %v2758_v9 = vpop.f32.mrf.mxu0  ;;  %v5166_v11 = vmul.f32 -1.442695, %v2888_v8 }
 0x2ec   :  { %v2862_v41 = vadd.f32 1.0, %v6439_v2  ;;  %v5160_v16 = vmul.f32 -1.442695, %v2834_v12  ;;  %v2759_v38 = vadd.f32 %v2758_v9, %v8567_v22  ;;  %6454 = vpow2.f32 %v5164_v20  ;;  %v9619_v2 = vld [vmem:[#allocation52_spill] sm:$0xff] }
 0x2ed   :  { %v2760_v39 = vpop.f32.mrf.mxu0  ;;  %v2890_v25 = vadd.f32 %v2757_v23, %v2541_v50  ;;  %v6137_v22 = vunpack.i.l.bf16 %v8619_v13  ;;  %v2544_v20 = vadd.f32 %v8612_v60, %v8572_v55  ;;  %v5167_v12 = vmul.f32 -1.442695, %v2889_v27  ;;  %v8744_v8 = vpop.permute.xlu0 %6185  ;;  %v9624_v13 = vld [vmem:[#allocation43_spill] sm:$0xff] }
 0x2ee   :  { %6456 = vrcp.f32 %v2862_v41  ;;  %v2835_v54 = vadd.f32 %v2759_v38, %v2543_v15  ;;  %v2761_v53 = vadd.f32 %v2760_v39, %v8608_v46  ;;  %v2524_v15 = vadd.f32 %v8615_v7, %v2476_v21  ;;  %9591 = vst [vmem:[#allocation36_spill] sm:$0xff] %v8744_v8 }
 0x2ef   :  { %v6441_v37 = vpop.eup %6440  ;;  %6458 = vpow2.f32 %v5160_v16  ;;  %v5168_v55 = vmul.f32 -1.442695, %v2890_v25  ;;  %v2479_v41 = vadd.f32 %v8604_v48, %v8507_v61  ;;  %v2801_v38 = vadd.f32 %v2800_v51, %v8638_v40  ;;  %v8748_v25 = vpop.permute.xlu1 %6200 }
 0x2f0   :  { %v2863_v52 = vadd.f32 1.0, %v6441_v37  ;;  %v5161_v58 = vmul.f32 -1.442695, %v2835_v54  ;;  %6460 = vpow2.f32 %v5165_v59  ;;  %v6443_v33 = vpop.eup %6442  ;;  %v2891_v60 = vadd.f32 %v2761_v53, %v2544_v20  ;;  %v8751_v61 = vpop.f32.mrf.mxu1 }
 0x2f1   :  { %v6162_v27 = vunpack.i.l.bf16 %v8652_v45  ;;  %v2916_v39 = vadd.f32 1.0, %v6443_v33  ;;  %v2484_v20 = vadd.f32 %v8546_v42, %v8489_v47 }
 0x2f2   :  { %6462 = vrcp.f32 %v2863_v52  ;;  %v5169_v37 = vmul.f32 -1.442695, %v2891_v60 }
 0x2f3   :  { %v6445_v50 = vpop.eup %6444  ;;  %6464 = vpow2.f32 %v5161_v58 }
 0x2f4   :  { %v6447_v9 = vpop.eup %6446  ;;  %6466 = vpow2.f32 %v5166_v11  ;;  %v2940_v16 = vmul.f32 %v6445_v50, %v2798_v56  ;;  %v2527_v56 = vadd.f32 %v8615_v7, %v2479_v41  ;;  %v2813_v41 = vpop.f32.mrf.mxu1 }
 0x2f5   :  { %v6449_v59 = vpop.eup %6448  ;;  %v2864_v54 = vadd.f32 1.0, %v6447_v9  ;;  %6468 = vpow2.f32 %v5167_v12  ;;  %v2806_v12 = vadd.f32 %v8696_v17, %v8638_v40  ;;  %v2530_v17 = vadd.f32 %v8615_v7, %v2484_v20 }
 0x2f6   :  { %6470 = vpow2.f32 %v5168_v55  ;;  %v2948_v21 = vadd.f32 %v2940_v16, %v2524_v15  ;;  %v2917_v50 = vadd.f32 1.0, %v6449_v59  ;;  %v8763_v15 = vpop.permute.xlu0 %6195  ;;  %v8778_v11 = vpop.f32.mrf.mxu1 }
 0x2f7   :  { %v6451_v48 = vpop.eup %6450  ;;  %6472 = vrcp.f32 %v2864_v54 }
 0x2f8   :  { %v6453_v58 = vpop.eup %6452  ;;  %6474 = vtanh.f32 %v2948_v21  ;;  %v2941_v51 = vmul.f32 %v6451_v48, %v2801_v38  ;;  %v8768_v21 = vpop.permute.xlu1 %6210  ;;  %v9592_v48 = vld [vmem:[#allocation60_spill] sm:$0xff] }
 0x2f9   :  { %6476 = vrcp.f32 %v2916_v39  ;;  %v2865_v60 = vadd.f32 1.0, %v6453_v58  ;;  %v6455_v47 = vpop.eup %6454  ;;  %v9593_v58 = vld [vmem:[#allocation39_spill] sm:$0xff] }
 0x2fa   :  { %6478 = vpow2.f32 %v5169_v37  ;;  %v2949_v9 = vadd.f32 %v2941_v51, %v2527_v56  ;;  %v2487_v52 = vadd.f32 %v9593_v58, %v9592_v48  ;;  %v2809_v37 = vadd.f32 %v8723_v31, %v8638_v40  ;;  %v8785_v56 = vpop.permute.xlu0 %6205 }
 0x2fb   :  { %v6457_v16 = vpop.eup %6456  ;;  %6480 = vrcp.f32 %v2865_v60  ;;  %v2918_v60 = vadd.f32 1.0, %v6455_v47  ;;  %9594 = vst [vmem:[#allocation56_spill] sm:$0xff] %v8785_v56 }
 0x2fc   :  { %v6459_v39 = vpop.eup %6458  ;;  %v2942_v59 = vmul.f32 %v6457_v16, %v2806_v12  ;;  %6482 = vtanh.f32 %v2949_v9  ;;  %v2533_v58 = vadd.f32 %v8615_v7, %v2487_v52  ;;  %v8790_v32 = vpop.permute.xlu1 %6220 }
 0x2fd   :  { %v2866_v42 = vadd.f32 1.0, %v6459_v39  ;;  %v6461_v6 = vpop.eup %6460  ;;  %6484 = vrcp.f32 %v2917_v50 }
 0x2fe   :  { %v2950_v55 = vadd.f32 %v2942_v59, %v2530_v17  ;;  %v9595_v17 = vld [vmem:[#allocation33_spill] sm:$0xff] }
 0x2ff   :  { %v6463_v12 = vpop.eup %6462  ;;  %6486 = vrcp.f32 %v2866_v42  ;;  %v2492_v59 = vadd.f32 %v8649_v1, %v9595_v17  ;;  %v2814_v42 = vadd.f32 %v2813_v41, %v8638_v40  ;;  %v2919_v17 = vadd.f32 1.0, %v6461_v6  ;;  %v9597_v1 = vld [vmem:[#allocation41_spill] sm:$0xff] }
 0x300   :  { %v6465_v48 = vpop.eup %6464  ;;  %6488 = vtanh.f32 %v2950_v55  ;;  %v2943_v47 = vmul.f32 %v6463_v12, %v2809_v37  ;;  %v2816_v55 = vpop.f32.mrf.mxu1  ;;  %v2500_v6 = vadd.f32 %v8627_v14, %v9597_v1 }
 0x301   :  { %v6467_v50 = vpop.eup %6466  ;;  %v2867_v31 = vadd.f32 1.0, %v6465_v48  ;;  %6490 = vrcp.f32 %v2918_v60  ;;  %v2536_v20 = vadd.f32 %v8615_v7, %v2492_v59  ;;  %v9596_v60 = vld [vmem:[#allocation37_spill] sm:$0xff]  ;;  %v2817_v12 = vadd.f32 %v2816_v55, %v8638_v40  ;;  %v8806_v48 = vpop.permute.xlu0 %6215 }
 0x302   :  { %v6469_v9 = vpop.eup %6468  ;;  %v2951_v53 = vadd.f32 %v2943_v47, %v2533_v58  ;;  %v2920_v16 = vadd.f32 1.0, %v6467_v50  ;;  %v2495_v58 = vadd.f32 %v8690_v57, %v9596_v60  ;;  %v9598_v50 = vld [vmem:[#allocation54_spill] sm:$0xff]  ;;  %v8810_v59 = vpop.permute.xlu1 %6230  ;;  %v2542_v46 = vadd.f32 %v8615_v7, %v2500_v6 }
 0x303   :  { %v6471_v37 = vpop.eup %6470  ;;  %6492 = vrcp.f32 %v2867_v31  ;;  %v2921_v41 = vadd.f32 1.0, %v6469_v9  ;;  %v9600_v9 = vld [vmem:[#allocation34_spill] sm:$0xff] }
 0x304   :  { %v6473_v51 = vpop.eup %6472  ;;  %6494 = vtanh.f32 %v2951_v53  ;;  %v9599_v53 = vunpack.c.l.bf16 %v9598_v50  ;;  %v2503_v23 = vadd.f32 %v8669_v36, %v9600_v9 }
 0x305   :  { %v6475_v52 = vpop.eup %6474  ;;  %v2944_v47 = vmul.f32 %v6473_v51, %v2814_v42  ;;  %6496 = vrcp.f32 %v2919_v17  ;;  %v2922_v51 = vadd.f32 1.0, %v6471_v37 }
 0x306   :  { %v6477_v39 = vpop.eup %6476  ;;  %v2964_v38 = vsub.f32 %v9599_v53, %v6475_v52  ;;  %6498 = vrcp.f32 %v2920_v16  ;;  %v2539_v53 = vadd.f32 %v8615_v7, %v2495_v58  ;;  %v9602_v58 = vld [vmem:[#allocation48_spill] sm:$0xff] }
 0x307   :  { %v6479_v54 = vpop.eup %6478  ;;  %v2952_v42 = vadd.f32 %v2944_v47, %v2536_v20  ;;  %v9601_v20 = vunpack.c.h.bf16 %v9598_v50  ;;  %v2545_v50 = vadd.f32 %v8615_v7, %v2503_v23  ;;  %v2825_v7 = vadd.f32 %v8778_v11, %v8638_v40  ;;  %v9609_v23 = vld [vmem:[#allocation50_spill] sm:$0xff] }
 0x308   :  { %v6481_v55 = vpop.eup %6480  ;;  %v2972_v1 = vmul.f32 %v6477_v39, %v2964_v38  ;;  %v2923_v16 = vadd.f32 1.0, %v6479_v54  ;;  %v2822_v38 = vadd.f32 %v8751_v61, %v8638_v40  ;;  %v9604_v54 = vld [vmem:[#allocation49_spill] sm:$0xff] }
 0x309   :  { %v6483_v31 = vpop.eup %6482  ;;  %6500 = vtanh.f32 %v2952_v42  ;;  %v2945_v17 = vmul.f32 %v6481_v55, %v2817_v12  ;;  %v9603_v42 = vld [vmem:[#allocation47_spill] sm:$0xff] }
 0x30a   :  { %6502 = vrcp.f32 %v2921_v41  ;;  %v8819_v37 = vadd.f32 %v6475_v52, %v2972_v1  ;;  %v2965_v47 = vsub.f32 %v9601_v20, %v6483_v31  ;;  %v6485_v60 = vpop.eup %6484  ;;  %v9605_v55 = vld [vmem:[#allocation55_spill] sm:$0xff] }
 0x30b   :  { %6504 = vrcp.f32 %v2922_v51  ;;  %v2953_v39 = vadd.f32 %v2945_v17, %v2539_v53  ;;  %v9606_v1 = vunpack.c.l.bf16 %v9605_v55  ;;  %v9607_v17 = vunpack.i.l.bf16 %v8499_v18 }
 0x30c   :  { %v6487_v36 = vpop.eup %6486  ;;  %v2973_v9 = vmul.f32 %v6485_v60, %v2965_v47  ;;  %v3063_v12 = vrot.slane %v8819_v37, %v9602_v58  ;;  %v3167_v41 = vrot.slane %v8819_v37, %v9603_v42  ;;  %v3279_v52 = vrot.slane %v8819_v37, %v7308_v4 }
 0x30d   :  { %v6489_v6 = vpop.eup %6488  ;;  %v2946_v51 = vmul.f32 %v6487_v36, %v2822_v38  ;;  %6506 = vtanh.f32 %v2953_v39  ;;  %v3391_v61 = vrot.slane %v8819_v37, %v9604_v54  ;;  %v9608_v47 = vunpack.i.l.bf16 %v8534_v43 }
 0x30e   :  { %v2966_v60 = vsub.f32 %v9606_v1, %v6489_v6  ;;  %v8836_v53 = vadd.f32 %v6483_v31, %v2973_v9  ;;  %v3092_v20 = vmul.f32 %v9607_v17, %v3063_v12  ;;  %v6491_v57 = vpop.eup %6490  ;;  %6508 = vrcp.f32 %v2923_v16 }
 0x30f   :  { %v3196_v14 = vmul.f32 %v9608_v47, %v3167_v41  ;;  %v2954_v33 = vadd.f32 %v2946_v51, %v2542_v46  ;;  %v3503_v38 = vrot.slane %v8819_v37, %v9609_v23  ;;  %v9610_v12 = vunpack.i.l.bf16 %v8555_v49 }
 0x310   :  { %v6493_v39 = vpop.eup %6492  ;;  %v2974_v36 = vmul.f32 %v6491_v57, %v2966_v60  ;;  %v3067_v31 = vrot.slane %v8836_v53, %v9602_v58  ;;  %v3171_v9 = vrot.slane %v8836_v53, %v9603_v42  ;;  %v3283_v40 = vrot.slane %v8836_v53, %v7308_v4 }
 0x311   :  { %v3308_v41 = vmul.f32 %v9610_v12, %v3279_v52  ;;  %v6495_v1 = vpop.eup %6494  ;;  %6510 = vtanh.f32 %v2954_v33  ;;  %v2947_v46 = vmul.f32 %v6493_v39, %v2825_v7  ;;  %v3204_v16 = vadd.f32 %v3196_v14, %v3092_v20  ;;  %v9616_v12 = vld [vmem:[#allocation35_spill] sm:$0xff] }
 0x312   :  { %v8854_v11 = vadd.f32 %v6489_v6, %v2974_v36  ;;  %v9611_v57 = vunpack.c.h.bf16 %v9605_v55  ;;  %v3395_v60 = vrot.slane %v8836_v53, %v9604_v54  ;;  %v3420_v17 = vmul.f32 %v6137_v22, %v3391_v61  ;;  %v6497_v7 = vpop.eup %6496  ;;  %v9614_v61 = vld [vmem:[#allocation51_spill] sm:$0xff] }
 0x313   :  { %v2955_v47 = vadd.f32 %v2947_v46, %v2545_v50  ;;  %v9612_v52 = vunpack.i.h.bf16 %v8499_v18  ;;  %v9613_v14 = vunpack.i.h.bf16 %v8534_v43  ;;  %v3532_v6 = vmul.f32 %v6162_v27, %v3503_v38  ;;  %v6499_v50 = vpop.eup %6498 }
 0x314   :  { %v2967_v51 = vsub.f32 %v9611_v57, %v6495_v1  ;;  %v3071_v55 = vrot.slane %v8854_v11, %v9602_v58  ;;  %v3175_v39 = vrot.slane %v8854_v11, %v9603_v42  ;;  %v3287_v22 = vrot.slane %v8854_v11, %v7308_v4 }
 0x315   :  { %v3093_v33 = vmul.f32 %v9612_v52, %v3067_v31  ;;  %v3197_v20 = vmul.f32 %v9613_v14, %v3171_v9  ;;  %v3399_v18 = vrot.slane %v8854_v11, %v9604_v54  ;;  %v3511_v43 = vrot.slane %v8854_v11, %v9609_v23 }
 0x316   :  { %v3623_v27 = vrot.slane %v8854_v11, %v9614_v61  ;;  %v9615_v38 = vunpack.i.h.bf16 %v8555_v49  ;;  %v3316_v31 = vadd.f32 %v3308_v41, %v3204_v16  ;;  %v6501_v9 = vpop.eup %6500  ;;  %v9617_v46 = vunpack.i.l.bf16 %v9616_v12 }
 0x317   :  { %v9618_v52 = vunpack.i.h.bf16 %v9616_v12  ;;  %v3735_v5 = vrot.slane %v8854_v11, %v9619_v2  ;;  %v3421_v24 = vmul.f32 %v6138_v62, %v3395_v60  ;;  %v6503_v44 = vpop.eup %6502  ;;  %v3310_v56 = vmul.f32 %v9620_v34, %v3287_v22  ;;  %v8898_v12 = vpop.permute.xlu0 %6225 }
 0x318   :  { %v3309_v36 = vmul.f32 %v9615_v38, %v3283_v40  ;;  %v3094_v57 = vmul.f32 %v9617_v46, %v3071_v55  ;;  %v9621_v49 = vunpack.i.h.bf16 %v8654_v29  ;;  %v9622_v16 = vunpack.i.l.bf16 %v8681_v35 }
 0x319   :  { %v3198_v14 = vmul.f32 %v9618_v52, %v3175_v39  ;;  %v9623_v55 = vunpack.i.l.bf16 %v8733_v30  ;;  %v6505_v39 = vpop.eup %6504  ;;  %v2975_v52 = vmul.f32 %v6497_v7, %v2967_v51  ;;  %v9625_v62 = vunpack.c.l.bf16 %v9624_v13 }
 0x31a   :  { %v3422_v41 = vmul.f32 %v9621_v49, %v3399_v18  ;;  %v3534_v40 = vmul.f32 %v9622_v16, %v3511_v43  ;;  %6512 = vtanh.f32 %v2955_v47  ;;  %v3205_v8 = vadd.f32 %v3197_v20, %v3093_v33  ;;  %v6507_v43 = vpop.eup %6506 }
 0x31b   :  { %v3646_v38 = vmul.f32 %v9623_v55, %v3623_v27  ;;  %v3206_v46 = vadd.f32 %v3198_v14, %v3094_v57  ;;  %v2968_v60 = vsub.f32 %v9625_v62, %v6501_v9  ;;  %v3428_v34 = vadd.f32 %v3420_v17, %v3316_v31  ;;  %v6509_v31 = vpop.eup %6508 }
 0x31c   :  { %v3507_v22 = vrot.slane %v8836_v53, %v9609_v23  ;;  %v3615_v18 = vrot.slane %v8819_v37, %v9614_v61  ;;  %v8906_v27 = vadd.f32 %v6495_v1, %v2975_v52  ;;  %v3619_v51 = vrot.slane %v8836_v53, %v9614_v61 }
 0x31d   :  { %v3318_v49 = vadd.f32 %v3310_v56, %v3206_v46  ;;  %v2976_v16 = vmul.f32 %v6499_v50, %v2968_v60  ;;  %v9626_v7 = vunpack.c.h.bf16 %v9624_v13  ;;  %v3317_v47 = vadd.f32 %v3309_v36, %v3205_v8 }
 0x31e   :  { %v9627_v17 = vunpack.i.h.bf16 %v8652_v45  ;;  %v3540_v20 = vadd.f32 %v3532_v6, %v3428_v34  ;;  %v9628_v56 = vunpack.i.l.bf16 %v8707_v0  ;;  %v9629_v50 = vunpack.i.h.bf16 %v8707_v0  ;;  %v6511_v8 = vpop.eup %6510  ;;  %v8924_v6 = vpop.permute.xlu0 %6235  ;;  %v9631_v34 = vld [vmem:[#allocation44_spill] sm:$0xff] }
 0x31f   :  { %v2969_v57 = vsub.f32 %v9626_v7, %v6507_v43  ;;  %v3430_v14 = vadd.f32 %v3422_v41, %v3318_v49  ;;  %v8914_v55 = vadd.f32 %v6501_v9, %v2976_v16  ;;  %v3429_v62 = vadd.f32 %v3421_v24, %v3317_v47  ;;  %v9630_v41 = vld [vmem:[#allocation53_spill] sm:$0xff] }
 0x320   :  { %v3533_v33 = vmul.f32 %v9627_v17, %v3507_v22  ;;  %v3644_v1 = vmul.f32 %v9628_v56, %v3615_v18  ;;  %v3645_v46 = vmul.f32 %v9629_v50, %v3619_v51  ;;  %v3727_v13 = vrot.slane %v8819_v37, %v9619_v2 }
 0x321   :  { %v2977_v52 = vmul.f32 %v6503_v44, %v2969_v57  ;;  %v3731_v45 = vrot.slane %v8836_v53, %v9619_v2  ;;  %v3542_v36 = vadd.f32 %v3534_v40, %v3430_v14  ;;  %v3839_v60 = vrot.slane %v8819_v37, %v9630_v41 }
 0x322   :  { %v3652_v9 = vadd.f32 %v3644_v1, %v3540_v20  ;;  %v3843_v0 = vrot.slane %v8836_v53, %v9630_v41  ;;  %v9632_v44 = vunpack.c.l.bf16 %v9631_v34  ;;  %v3541_v18 = vadd.f32 %v3533_v33, %v3429_v62  ;;  %v8943_v20 = vpop.permute.xlu1 %6240 }
 0x323   :  { %v8932_v22 = vadd.f32 %v6507_v43, %v2977_v52  ;;  %v9633_v49 = vunpack.i.l.bf16 %v8748_v25  ;;  %v6232_v51 = vunpack.i.l.bf16 %v8810_v59  ;;  %v3654_v7 = vadd.f32 %v3646_v38, %v3542_v36  ;;  %v9638_v52 = vld [vmem:[#allocation32_spill] sm:$0xff]  ;;  %v8961_v36 = vpop.permute.xlu0 %6245 }
 0x324   :  { %v2970_v24 = vsub.f32 %v9632_v44, %v6511_v8  ;;  %v3847_v40 = vrot.slane %v8854_v11, %v9630_v41  ;;  %v9634_v37 = vunpack.i.h.bf16 %v8748_v25  ;;  %v3653_v53 = vadd.f32 %v3645_v46, %v3541_v18 }
 0x325   :  { %v3756_v16 = vmul.f32 %v9633_v49, %v3727_v13  ;;  %v3075_v43 = vrot.slane %v8906_v27, %v9602_v58  ;;  %v9635_v33 = vunpack.i.l.bf16 %v8768_v21  ;;  %v9636_v56 = vunpack.i.l.bf16 %v8790_v32 }
 0x326   :  { %v3757_v57 = vmul.f32 %v9634_v37, %v3731_v45  ;;  %v2978_v47 = vmul.f32 %v6505_v39, %v2970_v24  ;;  %v3179_v11 = vrot.slane %v8906_v27, %v9603_v42  ;;  %v3291_v25 = vrot.slane %v8906_v27, %v7308_v4 }
 0x327   :  { %v3764_v17 = vadd.f32 %v3756_v16, %v3652_v9  ;;  %v3758_v14 = vmul.f32 %v9635_v33, %v3735_v5  ;;  %v3868_v38 = vmul.f32 %v9636_v56, %v3839_v60  ;;  %v9637_v50 = vunpack.i.h.bf16 %v8790_v32  ;;  %v6513_v44 = vpop.eup %6512 }
 0x328   :  { %v8953_v39 = vadd.f32 %v6511_v8, %v2978_v47  ;;  %v3765_v1 = vadd.f32 %v3757_v57, %v3653_v53  ;;  %v9639_v62 = vunpack.i.l.bf16 %v9638_v52  ;;  %v6228_v5 = vunpack.i.h.bf16 %v8898_v12 }
 0x329   :  { %v3869_v46 = vmul.f32 %v9637_v50, %v3843_v0  ;;  %v6227_v45 = vunpack.i.l.bf16 %v8898_v12  ;;  %v9640_v9 = vunpack.i.h.bf16 %v9638_v52  ;;  %v3403_v8 = vrot.slane %v8906_v27, %v9604_v54 }
 0x32a   :  { %v3095_v13 = vmul.f32 %v9639_v62, %v3075_v43  ;;  %v6243_v24 = vunpack.i.h.bf16 %v8943_v20  ;;  %v3766_v32 = vadd.f32 %v3758_v14, %v3654_v7  ;;  %v8968_v0 = vadd.f32 %v3868_v38, %v3764_v17  ;;  %v6251_v14 = vpop.permute.xlu1 %6250 }
 0x32b   :  { %v3199_v60 = vmul.f32 %v9640_v9, %v3179_v11  ;;  %v8970_v18 = vadd.f32 %v3869_v46, %v3765_v1  ;;  %v9641_v49 = vunpack.c.h.bf16 %v9631_v34  ;;  %v9642_v57 = vunpack.i.h.bf16 %v8553_v10 }
 0x32c   :  { %v3515_v53 = vrot.slane %v8906_v27, %v9609_v23  ;;  %v6242_v43 = vunpack.i.l.bf16 %v8943_v20  ;;  %v3870_v33 = vmul.f32 %v6232_v51, %v3847_v40  ;;  %v3627_v17 = vrot.slane %v8906_v27, %v9614_v61  ;;  %v8990_v40 = vpop.permute.xlu0 %6255 }
 0x32d   :  { %v2971_v16 = vsub.f32 %v9641_v49, %v6513_v44  ;;  %v3207_v37 = vadd.f32 %v3199_v60, %v3095_v13  ;;  %v3311_v47 = vmul.f32 %v9642_v57, %v3291_v25  ;;  %v4272_v7 = vpack.c.bf16 %v8970_v18, %v8968_v0 }
 0x32e   :  { %v6238_v34 = vunpack.i.h.bf16 %v8924_v6  ;;  %v9643_v11 = vunpack.i.h.bf16 %v8683_v63  ;;  %v6253_v1 = vunpack.i.h.bf16 %v6251_v14  ;;  %v6252_v50 = vunpack.i.l.bf16 %v6251_v14 }
 0x32f   :  { %v2979_v56 = vmul.f32 %v6509_v31, %v2971_v16  ;;  %v3319_v38 = vadd.f32 %v3311_v47, %v3207_v37  ;;  %v8986_v46 = vadd.f32 %v3870_v33, %v3766_v32  ;;  %5605 = vmatprep.mubr.bf16.mxu1 %v4272_v7  ;;  %v3739_v51 = vrot.slane %v8906_v27, %v9619_v2 }
 0x330   :  { %v3423_v25 = vmul.f32 %v9643_v11, %v3403_v8  ;;  %v9644_v13 = vunpack.i.h.bf16 %v8725_v19  ;;  %v3079_v9 = vrot.slane %v8914_v55, %v9602_v58  ;;  %v6258_v60 = vunpack.i.h.bf16 %v8990_v40 }
 0x331   :  { %v8992_v52 = vadd.f32 %v6513_v44, %v2979_v56  ;;  %v4047_v8 = vmul.f32 %v6252_v50, %v8968_v0  ;;  %v9645_v32 = vunpack.i.h.bf16 %v8763_v15  ;;  %v3083_v16 = vrot.slane %v8932_v22, %v9602_v58 }
 0x332   :  { %v3431_v62 = vadd.f32 %v3423_v25, %v3319_v38  ;;  %v3535_v31 = vmul.f32 %v9644_v13, %v3515_v53  ;;  %v3851_v44 = vrot.slane %v8906_v27, %v9630_v41  ;;  %v9646_v57 = vunpack.i.l.bf16 %v8532_v26 }
 0x333   :  { %v3647_v49 = vmul.f32 %v9645_v32, %v3627_v17  ;;  %v3183_v53 = vrot.slane %v8914_v55, %v9603_v42  ;;  %v4049_v33 = vmul.f32 %v6258_v60, %v8986_v46  ;;  %v4048_v7 = vmul.f32 %v6253_v1, %v8970_v18 }
 0x334   :  { %v3543_v37 = vadd.f32 %v3535_v31, %v3431_v62  ;;  %v3096_v47 = vmul.f32 %v9646_v57, %v3079_v9  ;;  %v9647_v14 = vunpack.i.h.bf16 %v8579_v3  ;;  %v3187_v56 = vrot.slane %v8932_v22, %v9603_v42 }
 0x335   :  { %v9648_v11 = vunpack.i.h.bf16 %v8806_v48  ;;  %v9649_v25 = vunpack.i.h.bf16 %v8532_v26  ;;  %v3295_v62 = vrot.slane %v8914_v55, %v7308_v4  ;;  %v6237_v13 = vunpack.i.l.bf16 %v8924_v6 }
 0x336   :  { %v3097_v17 = vmul.f32 %v9647_v14, %v3083_v16  ;;  %v3655_v38 = vadd.f32 %v3647_v49, %v3543_v37  ;;  %v4055_v31 = vrot.slane %v4047_v8, 4  ;;  %v9650_v1 = vunpack.i.l.bf16 %v8553_v10  ;;  %v9032_v14 = vpop.permute.xlu1 %6260  ;;  %v9034_v10 = vpop.permute.xlu0 %6265 }
 0x337   :  { %v3759_v27 = vmul.f32 %v9648_v11, %v3739_v51  ;;  %v3200_v50 = vmul.f32 %v9649_v25, %v3183_v53  ;;  %v3299_v9 = vrot.slane %v8932_v22, %v7308_v4  ;;  %v3871_v32 = vmul.f32 %v6238_v34, %v3851_v44 }
 0x338   :  { %v3201_v3 = vmul.f32 %v9650_v1, %v3187_v56  ;;  %v9651_v51 = vunpack.i.l.bf16 %v8654_v29  ;;  %v6248_v26 = vunpack.i.h.bf16 %v8961_v36  ;;  %v4067_v37 = vrot.slane %v4049_v33, 4 }
 0x339   :  { %v3767_v60 = vadd.f32 %v3759_v27, %v3655_v38  ;;  %v3208_v49 = vadd.f32 %v3200_v50, %v3096_v47  ;;  %v9652_v53 = vunpack.i.l.bf16 %v8683_v63  ;;  %v4061_v56 = vrot.slane %v4048_v7, 4 }
 0x33a   :  { %v3312_v16 = vmul.f32 %v9651_v51, %v3295_v62  ;;  %v3209_v57 = vadd.f32 %v3201_v3, %v3097_v17  ;;  %v3407_v34 = vrot.slane %v8914_v55, %v9604_v54  ;;  %v6263_v29 = vunpack.i.h.bf16 %v9032_v14 }
 0x33b   :  { %v3313_v6 = vmul.f32 %v9652_v53, %v3299_v9  ;;  %v9036_v11 = vadd.f32 %v3871_v32, %v3767_v60  ;;  %v6247_v44 = vunpack.i.l.bf16 %v8961_v36  ;;  %v3411_v63 = vrot.slane %v8932_v22, %v9604_v54  ;;  %v9655_v53 = vld [vmem:[#allocation36_spill] sm:$0xff] }
 0x33c   :  { %v3320_v38 = vadd.f32 %v3312_v16, %v3208_v49  ;;  %v6262_v17 = vunpack.i.l.bf16 %v9032_v14  ;;  %v9045_v27 = vadd.f32 %v4055_v31, %v4047_v8  ;;  %v9653_v50 = vunpack.i.h.bf16 %v8709_v28 }
 0x33d   :  { %v3321_v47 = vadd.f32 %v3313_v6, %v3209_v57  ;;  %v4273_v25 = vpack.c.bf16 %v9036_v11, %v8986_v46  ;;  %v6268_v1 = vunpack.i.h.bf16 %v9034_v10  ;;  %v4050_v3 = vmul.f32 %v6263_v29, %v9036_v11 }
 0x33e   :  { %v3424_v62 = vmul.f32 %v9653_v50, %v3407_v34  ;;  %v9654_v9 = vunpack.i.l.bf16 %v8725_v19  ;;  %v3519_v32 = vrot.slane %v8914_v55, %v9609_v23  ;;  %v9057_v49 = vadd.f32 %v4067_v37, %v4049_v33 }
 0x33f   :  { %v9059_v8 = vadd.f32 %v4061_v56, %v4048_v7  ;;  %5606 = vmatmul.mubr.bf16.vlgmr.msra.gmra.mxu1 %v4273_v25  ;;  %v3523_v51 = vrot.slane %v8932_v22, %v9609_v23  ;;  %v6267_v16 = vunpack.i.l.bf16 %v9034_v10  ;;  %v9656_v6 = vunpack.i.h.bf16 %v9655_v53 }
 0x340   :  { %v3425_v60 = vmul.f32 %v9654_v9, %v3411_v63  ;;  %v3432_v31 = vadd.f32 %v3424_v62, %v3320_v38  ;;  %v3631_v19 = vrot.slane %v8914_v55, %v9614_v61  ;;  %v4057_v29 = vrot.slane %v9045_v27, 2 }
 0x341   :  { %v3536_v34 = vmul.f32 %v9656_v6, %v3519_v32  ;;  %v9657_v33 = vunpack.i.l.bf16 %v8763_v15  ;;  %v3635_v37 = vrot.slane %v8932_v22, %v9614_v61  ;;  %v3743_v56 = vrot.slane %v8914_v55, %v9619_v2 }
 0x342   :  { %v3433_v57 = vadd.f32 %v3425_v60, %v3321_v47  ;;  %v4073_v38 = vrot.slane %v4050_v3, 4  ;;  %v9658_v47 = vld [vmem:[#allocation56_spill] sm:$0xff]  ;;  %v3747_v50 = vrot.slane %v8932_v22, %v9619_v2  ;;  %v4069_v62 = vrot.slane %v9057_v49, 2 }
 0x343   :  { %v3537_v7 = vmul.f32 %v9657_v33, %v3523_v51  ;;  %v3544_v10 = vadd.f32 %v3536_v34, %v3432_v31  ;;  %v9659_v63 = vunpack.i.h.bf16 %v9658_v47  ;;  %v4063_v9 = vrot.slane %v9059_v8, 2 }
 0x344   :  { %v9660_v60 = vunpack.i.l.bf16 %v8806_v48  ;;  %v3760_v6 = vmul.f32 %v6228_v5, %v3743_v56  ;;  %v3855_v31 = vrot.slane %v8914_v55, %v9630_v41  ;;  %v3859_v34 = vrot.slane %v8932_v22, %v9630_v41 }
 0x345   :  { %v3648_v25 = vmul.f32 %v9659_v63, %v3631_v19  ;;  %v3545_v15 = vadd.f32 %v3537_v7, %v3433_v57  ;;  %v3761_v33 = vmul.f32 %v6237_v13, %v3747_v50  ;;  %v3087_v63 = vrot.slane %v8953_v39, %v9602_v58  ;;  %v9663_v13 = vld [vmem:[#allocation46_spill] sm:$0xff] }
 0x346   :  { %v3649_v32 = vmul.f32 %v9660_v60, %v3635_v37  ;;  %v3091_v57 = vrot.slane %v8992_v52, %v9602_v58  ;;  %v4074_v48 = vadd.f32 %v4073_v38, %v4050_v3  ;;  %v3872_v37 = vmul.f32 %v6243_v24, %v3855_v31 }
 0x347   :  { %v3656_v51 = vadd.f32 %v3648_v25, %v3544_v10  ;;  %v3191_v5 = vrot.slane %v8953_v39, %v9603_v42  ;;  %v3873_v56 = vmul.f32 %v6248_v26, %v3859_v34  ;;  %v9661_v10 = vld [vmem:[#allocation38_spill] sm:$0xff]  ;;  %v9664_v50 = vunpack.i.l.bf16 %v9663_v13 }
 0x348   :  { %v3657_v19 = vadd.f32 %v3649_v32, %v3545_v15  ;;  %v9662_v22 = vunpack.i.l.bf16 %v9661_v10  ;;  %v3195_v3 = vrot.slane %v8992_v52, %v9603_v42  ;;  %v9665_v38 = vunpack.i.h.bf16 %v9661_v10 }
 0x349   :  { %v3768_v7 = vadd.f32 %v3760_v6, %v3656_v51  ;;  %v3099_v15 = vmul.f32 %v9664_v50, %v3091_v57  ;;  %v3303_v24 = vrot.slane %v8953_v39, %v7308_v4  ;;  %v3307_v26 = vrot.slane %v8992_v52, %v7308_v4 }
 0x34a   :  { %v3769_v55 = vadd.f32 %v3761_v33, %v3657_v19  ;;  %v3098_v25 = vmul.f32 %v9662_v22, %v3087_v63  ;;  %v3202_v32 = vmul.f32 %v9665_v38, %v3191_v5  ;;  %v3415_v6 = vrot.slane %v8953_v39, %v9604_v54 }
 0x34b   :  { %v9101_v60 = vadd.f32 %v3872_v37, %v3768_v7  ;;  %v3419_v31 = vrot.slane %v8992_v52, %v9604_v54  ;;  %v9666_v42 = vunpack.i.h.bf16 %v9663_v13  ;;  %v9667_v63 = vunpack.i.l.bf16 %v8709_v28 }
 0x34c   :  { %v9109_v51 = vadd.f32 %v3873_v56, %v3769_v55  ;;  %v3210_v33 = vadd.f32 %v3202_v32, %v3098_v25  ;;  %v9668_v37 = vunpack.i.h.bf16 %v8681_v35  ;;  %v9669_v55 = vunpack.i.l.bf16 %v9655_v53 }
 0x34d   :  { %v4051_v34 = vmul.f32 %v6267_v16, %v9101_v60  ;;  %v3203_v19 = vmul.f32 %v9666_v42, %v3195_v3  ;;  %v3314_v57 = vmul.f32 %v9667_v63, %v3303_v24  ;;  %v9670_v22 = vunpack.i.h.bf16 %v8733_v30 }
 0x34e   :  { %v4052_v7 = vmul.f32 %v6268_v1, %v9109_v51  ;;  %v4274_v4 = vpack.c.bf16 %v9109_v51, %v9101_v60  ;;  %v3315_v5 = vmul.f32 %v9668_v37, %v3307_v26  ;;  %v3426_v54 = vmul.f32 %v9669_v55, %v3415_v6 }
 0x34f   :  { %v4079_v56 = vrot.slane %v4051_v34, 4  ;;  %v3211_v16 = vadd.f32 %v3203_v19, %v3099_v15  ;;  %v3322_v10 = vadd.f32 %v3314_v57, %v3210_v33  ;;  %v3427_v25 = vmul.f32 %v9670_v22, %v3419_v31 }
 0x350   :  { %v4085_v13 = vrot.slane %v4052_v7, 4  ;;  %5609 = vmatprep.mubr.bf16.mxu1 %v4274_v4  ;;  %v3527_v28 = vrot.slane %v8953_v39, %v9609_v23  ;;  %v3531_v1 = vrot.slane %v8992_v52, %v9609_v23  ;;  %v3639_v35 = vrot.slane %v8953_v39, %v9614_v61  ;;  %v6271_v4 = vpop.permute.xlu1 %6270 }
 0x351   :  { %v4080_v50 = vadd.f32 %v4079_v56, %v4051_v34  ;;  %v3323_v53 = vadd.f32 %v3315_v5, %v3211_v16  ;;  %v3434_v3 = vadd.f32 %v3426_v54, %v3322_v10  ;;  %v3643_v15 = vrot.slane %v8992_v52, %v9614_v61 }
 0x352   :  { %v4064_v30 = vadd.f32 %v4063_v9, %v9059_v8  ;;  %v4075_v38 = vrot.slane %v4074_v48, 2  ;;  %v4086_v32 = vadd.f32 %v4085_v13, %v4052_v7  ;;  %v9671_v24 = vunpack.i.l.bf16 %v9658_v47 }
 0x353   :  { %v3435_v6 = vadd.f32 %v3427_v25, %v3323_v53  ;;  %v9672_v31 = vunpack.i.h.bf16 %v8768_v21  ;;  %v3650_v42 = vmul.f32 %v6227_v45, %v3639_v35  ;;  %v3751_v34 = vrot.slane %v8953_v39, %v9619_v2 }
 0x354   :  { %v3538_v26 = vmul.f32 %v9671_v24, %v3527_v28  ;;  %v4081_v19 = vrot.slane %v4080_v50, 2  ;;  %v3755_v61 = vrot.slane %v8992_v52, %v9619_v2  ;;  %v3863_v8 = vrot.slane %v8953_v39, %v9630_v41 }
 0x355   :  { %v3539_v23 = vmul.f32 %v9672_v31, %v3531_v1  ;;  %v4087_v47 = vrot.slane %v4086_v32, 2  ;;  %v9673_v63 = vunpack.i.h.bf16 %v8810_v59  ;;  %v3867_v12 = vrot.slane %v8992_v52, %v9630_v41 }
 0x356   :  { %v3546_v33 = vadd.f32 %v3538_v26, %v3434_v3  ;;  %v6257_v45 = vunpack.i.l.bf16 %v8990_v40  ;;  %v4070_v57 = vadd.f32 %v4069_v62, %v9057_v49  ;;  %v3762_v2 = vmul.f32 %v6242_v43, %v3751_v34 }
 0x357   :  { %v3547_v9 = vadd.f32 %v3539_v23, %v3435_v6  ;;  %v3651_v21 = vmul.f32 %v9673_v63, %v3643_v15  ;;  %v4058_v39 = vadd.f32 %v4057_v29, %v9045_v27  ;;  %v4076_v59 = vadd.f32 %v4075_v38, %v4074_v48 }
 0x358   :  { %v3658_v7 = vadd.f32 %v3650_v42, %v3546_v33  ;;  %v3763_v41 = vmul.f32 %v6247_v44, %v3755_v61  ;;  %v4082_v52 = vadd.f32 %v4081_v19, %v4080_v50  ;;  %v3874_v5 = vmul.f32 %v6257_v45, %v3863_v8 }
 0x359   :  { %v3659_v37 = vadd.f32 %v3651_v21, %v3547_v9  ;;  %v4065_v55 = vrot.slane %v4064_v30, 1  ;;  %v4088_v54 = vadd.f32 %v4087_v47, %v4086_v32  ;;  %v3875_v20 = vmul.f32 %v6262_v17, %v3867_v12 }
 0x35a   :  { %v3770_v40 = vadd.f32 %v3762_v2, %v3658_v7  ;;  %v6272_v43 = vunpack.i.l.bf16 %v6271_v4  ;;  %v4071_v62 = vrot.slane %v4070_v57, 1  ;;  %v6273_v16 = vunpack.i.h.bf16 %v6271_v4 }
 0x35b   :  { %v3771_v49 = vadd.f32 %v3763_v41, %v3659_v37  ;;  %v4059_v27 = vrot.slane %v4058_v39, 1  ;;  %v4077_v29 = vrot.slane %v4076_v59, 1  ;;  %v4083_v36 = vrot.slane %v4082_v52, 1 }
 0x35c   :  { %v9169_v56 = vadd.f32 %v3874_v5, %v3770_v40  ;;  %v4066_v10 = vadd.f32 %v4065_v55, %v4064_v30  ;;  %v4089_v22 = vrot.slane %v4088_v54, 1  ;;  %v4072_v17 = vadd.f32 %v4071_v62, %v4070_v57  ;;  %v6409_v62 = vld [vmem:[#allocation17 + $0x20] sm:$0xff]  }
 0x35d   :  { %v9171_v48 = vadd.f32 %v3875_v20, %v3771_v49  ;;  %v4060_v28 = vadd.f32 %v4059_v27, %v4058_v39  ;;  %v4078_v35 = vadd.f32 %v4077_v29, %v4076_v59  ;;  %v4084_v50 = vadd.f32 %v4083_v36, %v4082_v52  ;;  %v6407_v20 = vld [vmem:[#allocation17 + $0x30] sm:$0xff]   ;;  %v6412_v29 = vld [vmem:[#allocation17 + $0x8] sm:$0xff]   ;;  %v6413_v36 = vld [vmem:[#allocation17] sm:$0xff]  }
 0x35e   :  { %v4053_v44 = vmul.f32 %v6272_v43, %v9169_v56  ;;  %v9674_v3 = vmov 0.0   ;;  %v4139_v15 = vpack.c.bf16 %v4066_v10, %v4066_v10  ;;  %v4090_v38 = vadd.f32 %v4089_v22, %v4088_v54  ;;  %v6406_v54 = vld [vmem:[#allocation17 + $0x38] sm:$0xff]   ;;  %v6408_v43 = vld [vmem:[#allocation17 + $0x28] sm:$0xff]   ;;  %v6411_v27 = vld [vmem:[#allocation17 + $0x10] sm:$0xff]  }
 0x35f   :  { %v4054_v25 = vmul.f32 %v6273_v16, %v9171_v48  ;;  %v4275_v14 = vpack.c.bf16 %v9171_v48, %v9169_v56  ;;  %v4140_v32 = vpack.c.bf16 %v4072_v17, %v4072_v17  ;;  %v4138_v26 = vpack.c.bf16 %v4060_v28, %v4060_v28  ;;  %v6410_v16 = vld [vmem:[#allocation17 + $0x18] sm:$0xff]  }
 0x360   :  { %v4091_v13 = vrot.slane %v4053_v44, 4  ;;  %v4141_v31 = vpack.c.bf16 %v4078_v35, %v4078_v35  ;;  %v4142_v23 = vpack.c.bf16 %v4084_v50, %v4084_v50  ;;  %v4161_v34 = vunpack.c.l.b16 %v4139_v15  ;;  %v9675_v50 = vld [vmem:[#allocation45_spill] sm:$0xff] }
 0x361   :  { %v4097_v1 = vrot.slane %v4054_v25, 4  ;;  %5610 = vmatmul.mubr.bf16.gmra.mxu1 %v4275_v14  ;;  %v4143_v19 = vpack.c.bf16 %v4090_v38, %v4090_v38  ;;  %v4162_v61 = vunpack.c.l.b16 %v4140_v32  ;;  %v4160_v47 = vunpack.c.l.b16 %v4138_v26  ;;  %v5259_v32 = vld [vmem:[%s9300_s19] ss:$0 sm:$0xff] }
 0x362   :  { %v4092_v53 = vadd.f32 %v4091_v13, %v4053_v44  ;;  %5649 = vmatprep.mubr.msk.bf16.mxu1 %vm6836_vm1, %v9674_v3  ;;  %v4163_v63 = vunpack.c.l.b16 %v4141_v31  ;;  %v4164_v21 = vunpack.c.l.b16 %v4142_v23 }
 0x363   :  { %v4098_v30 = vadd.f32 %v4097_v1, %v4054_v25  ;;  %v4169_v45 = vsel %vm4168_vm2, %v4161_v34, %v4160_v47  ;;  %v4165_v57 = vunpack.c.l.b16 %v4143_v19  ;;  %v6837_v25 = vmov 1966171168   ;;  %v5250_v1 = vld [vmem:[%s9298_s17] ss:$0 sm:$0xff] }
 0x364   :  { %v4093_v24 = vrot.slane %v4092_v53, 2  ;;  %v4171_v4 = vsel %vm4170_vm3, %v4162_v61, %v4169_v45  ;;  %v4398_v14 = vunpack.c.l.s4 %v6837_v25 }
 0x365   :  { %v4099_v6 = vrot.slane %v4098_v30, 2  ;;  %v4173_v59 = vsel %vm4172_vm4, %v4163_v63, %v4171_v4 }
 0x366   :  { %v4094_v42 = vadd.f32 %v4093_v24, %v4092_v53  ;;  %v4175_v41 = vsel %vm4174_vm5, %v4164_v21, %v4173_v59  ;;  %v4399_v28 = vunpack.c.0.s8 %v4398_v14 }
 0x367   :  { %v4100_v33 = vadd.f32 %v4099_v6, %v4098_v30  ;;  %v4177_v40 = vsel %vm4176_vm6, %v4165_v57, %v4175_v41 }
 0x368   :  { %v4095_v8 = vrot.slane %v4094_v42, 1  ;;  %v4402_v53 = vsub.s32 %v4399_v28, %v9675_v50 }
 0x369   :  { %v4101_v9 = vrot.slane %v4100_v33, 1 }
 0x36a   :  { %v4096_v12 = vadd.f32 %v4095_v8, %v4094_v42 }
 0x36b   :  { %v4102_v7 = vadd.f32 %v4101_v9, %v4100_v33 }
 0x36c   :  { %v4144_v2 = vpack.c.bf16 %v4096_v12, %v4096_v12 }
 0x36d   :  { %v4145_v39 = vpack.c.bf16 %v4102_v7, %v4102_v7 }
 0x36e   :  { %v4166_v37 = vunpack.c.l.b16 %v4144_v2 }
 0x36f   :  { %v4167_v52 = vunpack.c.l.b16 %v4145_v39 }
 0x370   :  { %v4179_v5 = vsel %vm4178_vm7, %v4166_v37, %v4177_v40 }
 0x371   :  { %v4181_v55 = vsel %vm4180_vm8, %v4167_v52, %v4179_v5 }
 0x372   :  { %v4182_v49 = vpack.c.b16 %v4181_v55, %v4181_v55 }
 0x374   :  { %5586 = vmatmul.mubr.bf16.vlgmr.msra.gmra.mxu0 %v4182_v49 }
 0x375   :  { %5614 = vmatpush3.bf16.msra.mxu0 %v6406_v54  ;;  %5629 = vmatprep.mubr.msk.bf16.mxu0 %vm6836_vm1, %v9674_v3 }
 0x376   :  { %5615 = vmatprep.subr.bf16.mxu0 %v9674_v3 }
 0x379   :  { %5616 = vmatpush3.bf16.msra.mxu0 %v6407_v20 }
 0x37a   :  { %5617 = vmatprep.subr.bf16.mxu0 %v9674_v3 }
 0x37d   :  { %5618 = vmatpush3.bf16.msra.mxu0 %v6408_v43 }
 0x37e   :  { %5619 = vmatprep.subr.bf16.mxu0 %v9674_v3 }
 0x381   :  { %5620 = vmatpush3.bf16.msra.mxu0 %v6409_v62 }
 0x382   :  { %5621 = vmatprep.subr.bf16.mxu0 %v9674_v3 }
 0x385   :  { %5622 = vmatpush3.bf16.msra.mxu0 %v6410_v16 }
 0x386   :  { %5623 = vmatprep.subr.bf16.mxu0 %v9674_v3 }
 0x389   :  { %5624 = vmatpush3.bf16.msra.mxu0 %v6411_v27 }
 0x38a   :  { %5625 = vmatprep.subr.bf16.mxu0 %v9674_v3 }
 0x38d   :  { %5626 = vmatpush3.bf16.msra.mxu0 %v6412_v29 }
 0x38e   :  { %5627 = vmatprep.subr.bf16.mxu0 %v9674_v3 }
 0x391   :  { %5628 = vmatpush3.bf16.msra.mxu0 %v6413_v36 }
 0x392   :  { %5653 = vmatprep.subr.bf16.mxu0 %v9674_v3 }
 0x394   :  { %5630 = vmatmul.mubr.bf16.vlgmr.msra.gmra.mxu0 %v4182_v49 }
 0x395   :  { %5669 = vmatprep.mubr.msk.bf16.mxu0 %vm6836_vm1, %v9674_v3 }
 0x3ff   :  { %v5607_v44 = vpop.f32.mrf.mxu1 }
 0x400   :  { %v4373_v19 = vadd.f32 %v5607_v44, %v5259_v32 }
 0x401   :  { %v4364_v10 = vpop.f32.mrf.mxu1 }
 0x402   :  { %v4365_v33 = vadd.f32 %v5259_v32, %v4364_v10 }
 0x403   :  { %v5608_v22 = vpop.f32.mrf.mxu1 }
 0x404   :  { %v4376_v61 = vadd.f32 %v5608_v22, %v5259_v32 }
 0x405   :  { %v4367_v17 = vpop.f32.mrf.mxu1 }
 0x406   :  { %v4368_v45 = vadd.f32 %v5259_v32, %v4367_v17 }
 0x421   :  { %v5611_v13 = vpop.f32.mrf.mxu1 }
 0x422   :  { %v4389_v57 = vadd.f32 %v5611_v13, %v5259_v32 }
 0x423   :  { %v4380_v35 = vpop.f32.mrf.mxu1 }
 0x424   :  { %v4381_v7 = vadd.f32 %v5259_v32, %v4380_v35 }
 0x425   :  { %v5612_v24 = vpop.f32.mrf.mxu1 }
 0x426   :  { %v4392_v22 = vadd.f32 %v5612_v24, %v5259_v32 }
 0x427   :  { %v4383_v47 = vpop.f32.mrf.mxu1 }
 0x428   :  { %v4384_v41 = vadd.f32 %v5259_v32, %v4383_v47 }
 0x434   :  { %v4266_v15 = vpop.f32.mrf.mxu0 }
 0x435   :  { %v4267_v38 = vadd.f32 %v5250_v1, %v4266_v15 }
 0x436   :  { %v5587_v30 = vpop.f32.mrf.mxu0 }
 0x437   :  { %v4396_v26 = vcombine.high %v4267_v38, %v4267_v38  ;;  %v4403_v6 = vrot.slane %v4267_v38, %v4402_v53 }
 0x438   :  { %v4269_v31 = vpop.f32.mrf.mxu0 }
 0x439   :  { %v4410_v23 = vrot.slane %v4396_v26, %v4402_v53  ;;  %v4411_v42 = vcombine.high %v4403_v6, %v4403_v6  ;;  %v4419_v34 = vrot.slane %v4403_v6, %v4402_v53 }
 0x43a   :  { %v5588_v8 = vpop.f32.mrf.mxu0 }
 0x43b   :  { %v4412_v9 = vcombine.high %v4410_v23, %v4410_v23  ;;  %v4426_v63 = vrot.slane %v4410_v23, %v4402_v53  ;;  %v4433_v21 = vrot.slane %v4411_v42, %v4402_v53  ;;  %v4441_v12 = vcombine.high %v4419_v34, %v4419_v34 }
 0x43c   :  { %v4448_v2 = vrot.slane %v4419_v34, %v9602_v58 }
 0x43d   :  { %v4440_v4 = vrot.slane %v4412_v9, %v4402_v53  ;;  %v4442_v39 = vcombine.high %v4426_v63, %v4426_v63  ;;  %v4443_v59 = vcombine.high %v4433_v21, %v4433_v21  ;;  %v4452_v37 = vrot.slane %v4433_v21, %v9602_v58  ;;  %v5276_v21 = vld [vmem:[%s9301_s20] ss:$0 sm:$0xff] }
 0x43e   :  { %v4456_v52 = vrot.slane %v4441_v12, %v9602_v58  ;;  %v4464_v40 = vrot.slane %v4426_v63, %v9602_v58  ;;  %v4485_v5 = vadd.f32 %v4448_v2, %v4365_v33 }
 0x43f   :  { %v4444_v55 = vcombine.high %v4440_v4, %v4440_v4  ;;  %v4460_v54 = vrot.slane %v4443_v59, %v9602_v58  ;;  %v4468_v49 = vrot.slane %v4440_v4, %v9602_v58  ;;  %v4472_v20 = vrot.slane %v4442_v39, %v9602_v58 }
 0x440   :  { %v4486_v43 = vadd.f32 %v4452_v37, %v4368_v45  ;;  %v4487_v62 = vadd.f32 %v4456_v52, %v4373_v19  ;;  %v4489_v16 = vadd.f32 %v4464_v40, %v4381_v7  ;;  %v5268_v27 = vmul.f32 -1.442695, %v4485_v5 }
 0x441   :  { %v4476_v29 = vrot.slane %v4444_v55, %v9602_v58  ;;  %v4488_v36 = vadd.f32 %v4460_v54, %v4376_v61  ;;  %v4490_v44 = vadd.f32 %v4468_v49, %v4384_v41  ;;  %v4491_v10 = vadd.f32 %v4472_v20, %v4389_v57 }
 0x442   :  { %6514 = vpow2.f32 %v5268_v27  ;;  %v5269_v25 = vmul.f32 -1.442695, %v4486_v43  ;;  %v5270_v14 = vmul.f32 -1.442695, %v4487_v62  ;;  %v5272_v13 = vmul.f32 -1.442695, %v4489_v16 }
 0x443   :  { %v5271_v17 = vmul.f32 -1.442695, %v4488_v36  ;;  %v4492_v28 = vadd.f32 %v4476_v29, %v4392_v22  ;;  %v5273_v1 = vmul.f32 -1.442695, %v4490_v44  ;;  %v5274_v35 = vmul.f32 -1.442695, %v4491_v10 }
 0x444   :  { %6516 = vpow2.f32 %v5269_v25  ;;  %v6550_v43 = vld [vmem:[%s9572_s22] sm:$0xff]  ;;  %v6551_v27 = vld [vmem:[%s9572_s22 + $0x8] sm:$0xff]  ;;  %v6552_v44 = vld [vmem:[%s9572_s22 + $0x10] sm:$0xff] }
 0x445   :  { %6518 = vpow2.f32 %v5270_v14  ;;  %v5275_v50 = vmul.f32 -1.442695, %v4492_v28  ;;  %v6553_v25 = vld [vmem:[%s9572_s22 + $0x20] sm:$0xff] }
 0x446   :  { %6520 = vpow2.f32 %v5271_v17 }
 0x447   :  { %6522 = vpow2.f32 %v5272_v13  ;;  %v6554_v13 = vld [vmem:[%s9572_s22 + $0x18] sm:$0xff] }
 0x448   :  { %6524 = vpow2.f32 %v5273_v1 }
 0x449   :  { %6526 = vpow2.f32 %v5274_v35  ;;  %v6555_v35 = vld [vmem:[%s9572_s22 + $0x30] sm:$0xff] }
 0x44a   :  { %6528 = vpow2.f32 %v5275_v50 }
 0x44f   :  { %v6515_v58 = vpop.eup %6514 }
 0x450   :  { %v4517_v53 = vadd.f32 1.0, %v6515_v58 }
 0x451   :  { %v6517_v15 = vpop.eup %6516 }
 0x452   :  { %v6519_v38 = vpop.eup %6518  ;;  %v4518_v30 = vadd.f32 1.0, %v6517_v15  ;;  %6530 = vrcp.f32 %v4517_v53  ;;  %v6556_v53 = vld [vmem:[%s9572_s22 + $0x28] sm:$0xff] }
 0x453   :  { %v6521_v32 = vpop.eup %6520  ;;  %v4519_v24 = vadd.f32 1.0, %v6519_v38 }
 0x454   :  { %v6523_v26 = vpop.eup %6522  ;;  %6532 = vrcp.f32 %v4518_v30  ;;  %v9213_v6 = vpop.f32.mrf.mxu0  ;;  %v4520_v31 = vadd.f32 1.0, %v6521_v32  ;;  %v6557_v30 = vld [vmem:[%s9572_s22 + $0x38] sm:$0xff] }
 0x455   :  { %v6525_v23 = vpop.eup %6524  ;;  %v4521_v42 = vadd.f32 1.0, %v6523_v26  ;;  %6534 = vrcp.f32 %v4519_v24  ;;  %v6414_v24 = vld [vmem:[#allocation16 + $0x38] sm:$0xff]   ;;  %v6415_v26 = vld [vmem:[#allocation16 + $0x30] sm:$0xff]  }
 0x456   :  { %v6527_v34 = vpop.eup %6526  ;;  %v5631_v19 = vpop.f32.mrf.mxu0  ;;  %v4522_v8 = vadd.f32 1.0, %v6525_v23  ;;  %5634 = vmatpush3.bf16.msra.mxu1 %v6414_v24  ;;  %v6417_v23 = vld [vmem:[#allocation16 + $0x20] sm:$0xff]  }
 0x457   :  { %v4523_v33 = vadd.f32 1.0, %v6527_v34  ;;  %6536 = vrcp.f32 %v4521_v42  ;;  %v6529_v47 = vpop.eup %6528  ;;  %5635 = vmatprep.subr.bf16.mxu1 %v9674_v3  ;;  %v6418_v42 = vld [vmem:[#allocation16 + $0x18] sm:$0xff]   ;;  %v6423_v19 = vld [vmem:[#allocation19 + $0x30] sm:$0xff]  }
 0x458   :  { %v4818_v61 = vpop.f32.mrf.mxu0  ;;  %6538 = vrcp.f32 %v4520_v31  ;;  %v4524_v63 = vadd.f32 1.0, %v6529_v47  ;;  %v6416_v31 = vld [vmem:[#allocation16 + $0x28] sm:$0xff]   ;;  %v6422_v34 = vld [vmem:[#allocation19 + $0x38] sm:$0xff]   ;;  %v6425_v47 = vld [vmem:[#allocation19 + $0x20] sm:$0xff]  }
 0x459   :  { %6540 = vrcp.f32 %v4523_v33  ;;  %5654 = vmatpush3.bf16.msra.mxu0 %v6422_v34  ;;  %v6419_v33 = vld [vmem:[#allocation16 + $0x10] sm:$0xff]   ;;  %v6424_v61 = vld [vmem:[#allocation19 + $0x28] sm:$0xff]  }
 0x45a   :  { %v5632_v9 = vpop.f32.mrf.mxu0  ;;  %6542 = vrcp.f32 %v4522_v8  ;;  %5636 = vmatpush3.bf16.msra.mxu1 %v6415_v26  ;;  %5655 = vmatprep.subr.bf16.mxu0 %v9674_v3  ;;  %v6420_v8 = vld [vmem:[#allocation16 + $0x8] sm:$0xff]  }
 0x45b   :  { %6544 = vrcp.f32 %v4524_v63  ;;  %5637 = vmatprep.subr.bf16.mxu1 %v9674_v3  ;;  %v6421_v9 = vld [vmem:[#allocation16] sm:$0xff]   ;;  %v6426_v63 = vld [vmem:[#allocation19 + $0x18] sm:$0xff]  }
 0x45d   :  { %5656 = vmatpush3.bf16.msra.mxu0 %v6423_v19 }
 0x45e   :  { %5638 = vmatpush3.bf16.msra.mxu1 %v6416_v31  ;;  %5657 = vmatprep.subr.bf16.mxu0 %v9674_v3 }
 0x45f   :  { %v6531_v12 = vpop.eup %6530  ;;  %5639 = vmatprep.subr.bf16.mxu1 %v9674_v3 }
 0x460   :  { %v4547_v45 = vmul.f32 %v6531_v12, %v5276_v21 }
 0x461   :  { %v6533_v57 = vpop.eup %6532  ;;  %5658 = vmatpush3.bf16.msra.mxu0 %v6424_v61 }
 0x462   :  { %v6535_v7 = vpop.eup %6534  ;;  %4555 = vadd.xlane.f32.xlu0 %v4547_v45  ;;  %v4548_v2 = vmul.f32 %v6533_v57, %v5276_v21  ;;  %5640 = vmatpush3.bf16.msra.mxu1 %v6417_v23 }
 0x463   :  { %v4549_v39 = vmul.f32 %v6535_v7, %v5276_v21  ;;  %5641 = vmatprep.subr.bf16.mxu1 %v9674_v3  ;;  %5659 = vmatprep.subr.bf16.mxu0 %v9674_v3 }
 0x464   :  { %v6537_v4 = vpop.eup %6536  ;;  %4557 = vadd.xlane.f32.xlu1 %v4548_v2 }
 0x465   :  { %v6539_v59 = vpop.eup %6538  ;;  %v4551_v37 = vmul.f32 %v6537_v4, %v5276_v21  ;;  %5660 = vmatpush3.bf16.msra.mxu0 %v6425_v47 }
 0x466   :  { %4559 = vadd.xlane.f32.xlu0 %v4549_v39  ;;  %v6541_v41 = vpop.eup %6540  ;;  %v4550_v52 = vmul.f32 %v6539_v59, %v5276_v21  ;;  %5642 = vmatpush3.bf16.msra.mxu1 %v6418_v42 }
 0x467   :  { %v6543_v40 = vpop.eup %6542  ;;  %v4553_v5 = vmul.f32 %v6541_v41, %v5276_v21  ;;  %5643 = vmatprep.subr.bf16.mxu1 %v9674_v3  ;;  %5661 = vmatprep.subr.bf16.mxu0 %v9674_v3 }
 0x468   :  { %4563 = vadd.xlane.f32.xlu1 %v4551_v37  ;;  %v4552_v55 = vmul.f32 %v6543_v40, %v5276_v21  ;;  %v6545_v54 = vpop.eup %6544 }
 0x469   :  { %v4554_v49 = vmul.f32 %v6545_v54, %v5276_v21  ;;  %5662 = vmatpush3.bf16.msra.mxu0 %v6426_v63  ;;  %v6427_v21 = vld [vmem:[#allocation19 + $0x10] sm:$0xff]  }
 0x46a   :  { %4561 = vadd.xlane.f32.xlu0 %v4550_v52  ;;  %5644 = vmatpush3.bf16.msra.mxu1 %v6419_v33 }
 0x46b   :  { %5645 = vmatprep.subr.bf16.mxu1 %v9674_v3  ;;  %5663 = vmatprep.subr.bf16.mxu0 %v9674_v3 }
 0x46c   :  { %4567 = vadd.xlane.f32.xlu1 %v4553_v5 }
 0x46d   :  { %5664 = vmatpush3.bf16.msra.mxu0 %v6427_v21 }
 0x46e   :  { %4565 = vadd.xlane.f32.xlu0 %v4552_v55  ;;  %5646 = vmatpush3.bf16.msra.mxu1 %v6420_v8 }
 0x46f   :  { %5647 = vmatprep.subr.bf16.mxu1 %v9674_v3  ;;  %5665 = vmatprep.subr.bf16.mxu0 %v9674_v3 }
 0x472   :  { %4569 = vadd.xlane.f32.xlu0 %v4554_v49  ;;  %5648 = vmatpush3.bf16.msra.mxu1 %v6421_v9 }
 0x4eb   :  { %v4556_v20 = vpop.xlane.xlu0 %4555 }
 0x4ec   :  { %v4571_v62 = vmul.f32 %v6550_v43, %v4556_v20 }
 0x4ed   :  { %v4558_v16 = vpop.xlane.xlu1 %4557 }
 0x4ee   :  { %v4572_v29 = vmul.f32 %v6551_v27, %v4558_v16  ;;  %4581 = vperm.xlu1 %6092, %v4571_v62  }
 0x4ef   :  { %v4560_v36 = vpop.xlane.xlu0 %4559 }
 0x4f0   :  { %v4573_v10 = vmul.f32 %v6552_v44, %v4560_v36  ;;  %4586 = vperm.xlu0 %6098, %v4572_v29  }
 0x4f1   :  { %v4564_v22 = vpop.xlane.xlu1 %4563 }
 0x4f2   :  { %v4575_v14 = vmul.f32 %v6553_v25, %v4564_v22  ;;  %4591 = vperm.xlu1 %6092, %v4573_v10  }
 0x4f3   :  { %v4562_v17 = vpop.xlane.xlu0 %4561 }
 0x4f4   :  { %v4574_v28 = vmul.f32 %v6554_v13, %v4562_v17  ;;  %4601 = vperm.xlu0 %6098, %v4575_v14  }
 0x4f5   :  { %v4568_v1 = vpop.xlane.xlu1 %4567 }
 0x4f6   :  { %v4577_v50 = vmul.f32 %v6555_v35, %v4568_v1  ;;  %4596 = vperm.xlu1 %6092, %v4574_v28  }
 0x4f7   :  { %v4566_v58 = vpop.xlane.xlu0 %4565 }
 0x4f8   :  { %v4576_v15 = vmul.f32 %v6556_v53, %v4566_v58  ;;  %4611 = vperm.xlu0 %6098, %v4577_v50  }
 0x4fa   :  { %4606 = vperm.xlu1 %6092, %v4576_v15  }
 0x4fb   :  { %v4570_v38 = vpop.xlane.xlu0 %4569 }
 0x4fc   :  { %v4578_v32 = vmul.f32 %v6557_v30, %v4570_v38 }
 0x4fe   :  { %4616 = vperm.xlu1 %6092, %v4578_v32  }
 0x569   :  { %v4582_v12 = vpop.permute.xlu1 %4581 }
 0x56a   :  { %v4619_v45 = vmul.f32 %v4582_v12, %v8968_v0 }
 0x56b   :  { %v4587_v57 = vpop.permute.xlu0 %4586 }
 0x56c   :  { %v4627_v7 = vrot.slane %v4619_v45, 4  ;;  %v4620_v2 = vmul.f32 %v4587_v57, %v8970_v18 }
 0x56d   :  { %v4592_v4 = vpop.permute.xlu1 %4591 }
 0x56e   :  { %v4628_v39 = vadd.f32 %v4627_v7, %v4619_v45  ;;  %v4633_v59 = vrot.slane %v4620_v2, 4  ;;  %v4621_v37 = vmul.f32 %v4592_v4, %v8986_v46 }
 0x56f   :  { %v4602_v41 = vpop.permute.xlu0 %4601 }
 0x570   :  { %v4629_v52 = vrot.slane %v4628_v39, 2  ;;  %v4634_v40 = vadd.f32 %v4633_v59, %v4620_v2  ;;  %v4639_v5 = vrot.slane %v4621_v37, 4  ;;  %v4623_v55 = vmul.f32 %v4602_v41, %v9101_v60 }
 0x571   :  { %v4597_v54 = vpop.permute.xlu1 %4596 }
 0x572   :  { %v4630_v49 = vadd.f32 %v4629_v52, %v4628_v39  ;;  %v4635_v20 = vrot.slane %v4634_v40, 2  ;;  %v4640_v43 = vadd.f32 %v4639_v5, %v4621_v37  ;;  %v4651_v0 = vrot.slane %v4623_v55, 4 }
 0x573   :  { %v4622_v62 = vmul.f32 %v4597_v54, %v9036_v11  ;;  %v4612_v16 = vpop.permute.xlu0 %4611 }
 0x574   :  { %v4631_v18 = vrot.slane %v4630_v49, 1  ;;  %v4636_v27 = vadd.f32 %v4635_v20, %v4634_v40  ;;  %v4641_v29 = vrot.slane %v4640_v43, 2  ;;  %v4652_v36 = vadd.f32 %v4651_v0, %v4623_v55 }
 0x575   :  { %v4645_v44 = vrot.slane %v4622_v62, 4  ;;  %v4625_v46 = vmul.f32 %v4612_v16, %v9169_v56  ;;  %v4607_v10 = vpop.permute.xlu1 %4606 }
 0x576   :  { %v4632_v22 = vadd.f32 %v4631_v18, %v4630_v49  ;;  %v4637_v25 = vrot.slane %v4636_v27, 1  ;;  %v4642_v14 = vadd.f32 %v4641_v29, %v4640_v43  ;;  %v4653_v60 = vrot.slane %v4652_v36, 2 }
 0x577   :  { %v4646_v17 = vadd.f32 %v4645_v44, %v4622_v62  ;;  %v4663_v13 = vrot.slane %v4625_v46, 4  ;;  %v4624_v28 = vmul.f32 %v4607_v10, %v9109_v51  ;;  %v6429_v10 = vld [vmem:[#allocation19] sm:$0xff]  }
 0x578   :  { %v4638_v1 = vadd.f32 %v4637_v25, %v4636_v27  ;;  %v4643_v35 = vrot.slane %v4642_v14, 1  ;;  %v4654_v11 = vadd.f32 %v4653_v60, %v4652_v36  ;;  %v4725_v38 = vpack.c.bf16 %v4632_v22, %v4632_v22  ;;  %v5293_v22 = vld [vmem:[%s9304_s23] ss:$0 sm:$0xff]  ;;  %s6778_s23 = scalar_lea.vmem %s5045_s2, 128 }
 0x579   :  { %v4647_v50 = vrot.slane %v4646_v17, 2  ;;  %v4664_v58 = vadd.f32 %v4663_v13, %v4625_v46  ;;  %v4657_v53 = vrot.slane %v4624_v28, 4  ;;  %v4617_v15 = vpop.permute.xlu1 %4616  ;;  %v6428_v46 = vld [vmem:[#allocation19 + $0x8] sm:$0xff]   ;;  %p6779_p13 = scmp.ne.s32.totalorder %s5045_s2, %s6778_s23  ;;  %p6784_p1 = scmp.lt.s32.totalorder %s6778_s23, %s6778_s23 }
 0x57a   :  { %v4726_v30 = vpack.c.bf16 %v4638_v1, %v4638_v1  ;;  %v4644_v32 = vadd.f32 %v4643_v35, %v4642_v14  ;;  %v4655_v56 = vrot.slane %v4654_v11, 1  ;;  %v4626_v23 = vmul.f32 %v4617_v15, %v9171_v48  ;;  %5666 = vmatpush3.bf16.msra.mxu0 %v6428_v46 }
 0x57b   :  { %v4648_v24 = vadd.f32 %v4647_v50, %v4646_v17  ;;  %v4665_v26 = vrot.slane %v4664_v58, 2  ;;  %v4658_v31 = vadd.f32 %v4657_v53, %v4624_v28  ;;  %v4829_v8 = vunpack.c.l.b16 %v4725_v38  ;;  %5667 = vmatprep.subr.bf16.mxu0 %v9674_v3  ;;  %p6785_p2 = por %p6784_p1, %p6783_p0 }
 0x57c   :  { %v4830_v42 = vunpack.c.l.b16 %v4726_v30  ;;  %v4727_v34 = vpack.c.bf16 %v4644_v32, %v4644_v32  ;;  %v4669_v61 = vrot.slane %v4626_v23, 4  ;;  %v4656_v47 = vadd.f32 %v4655_v56, %v4654_v11  ;;  %v5294_v11 = vld [vmem:[%s9306_s25] ss:$0 sm:$0xff] }
 0x57d   :  { %v4649_v19 = vrot.slane %v4648_v24, 1  ;;  %v4666_v51 = vadd.f32 %v4665_v26, %v4664_v58  ;;  %v4659_v33 = vrot.slane %v4658_v31, 2  ;;  %p6786_p3 = pnand %p6785_p2, %p6779_p13 }
 0x57e   :  { %v4670_v12 = vadd.f32 %v4669_v61, %v4626_v23  ;;  %v4831_v45 = vunpack.c.l.b16 %v4727_v34  ;;  %v4837_v57 = vsel %vm4168_vm2, %v4830_v42, %v4829_v8  ;;  %v4729_v39 = vpack.c.bf16 %v4656_v47, %v4656_v47  ;;  %5668 = vmatpush3.bf16.msra.mxu0 %v6429_v10 }
 0x57f   :  { %v4650_v9 = vadd.f32 %v4649_v19, %v4648_v24  ;;  %v4667_v63 = vrot.slane %v4666_v51, 1  ;;  %v4660_v21 = vadd.f32 %v4659_v33, %v4658_v31 }
 0x580   :  { %v4671_v4 = vrot.slane %v4670_v12, 2  ;;  %v4838_v52 = vsel %vm4170_vm3, %v4831_v45, %v4837_v57  ;;  %v4833_v54 = vunpack.c.l.b16 %v4729_v39 }
 0x581   :  { %v4728_v7 = vpack.c.bf16 %v4650_v9, %v4650_v9  ;;  %v4661_v2 = vrot.slane %v4660_v21, 1  ;;  %v4668_v48 = vadd.f32 %v4667_v63, %v4666_v51 }
 0x582   :  { %v4672_v41 = vadd.f32 %v4671_v4, %v4670_v12 }
 0x583   :  { %v4832_v59 = vunpack.c.l.b16 %v4728_v7  ;;  %v4662_v37 = vadd.f32 %v4661_v2, %v4660_v21  ;;  %v4731_v49 = vpack.c.bf16 %v4668_v48, %v4668_v48 }
 0x584   :  { %v4673_v55 = vrot.slane %v4672_v41, 1 }
 0x585   :  { %v4839_v40 = vsel %vm4172_vm4, %v4832_v59, %v4838_v52  ;;  %v4730_v5 = vpack.c.bf16 %v4662_v37, %v4662_v37  ;;  %v4835_v18 = vunpack.c.l.b16 %v4731_v49 }
 0x586   :  { %v4674_v43 = vadd.f32 %v4673_v55, %v4672_v41  ;;  %v4840_v0 = vsel %vm4174_vm5, %v4833_v54, %v4839_v40 }
 0x587   :  { %v4834_v20 = vunpack.c.l.b16 %v4730_v5 }
 0x588   :  { %v4732_v16 = vpack.c.bf16 %v4674_v43, %v4674_v43 }
 0x589   :  { %v4841_v62 = vsel %vm4176_vm6, %v4834_v20, %v4840_v0 }
 0x58a   :  { %v4836_v27 = vunpack.c.l.b16 %v4732_v16  ;;  %v4842_v29 = vsel %vm4178_vm7, %v4835_v18, %v4841_v62 }
 0x58c   :  { %v4843_v36 = vsel %vm4180_vm8, %v4836_v27, %v4842_v29 }
 0x58d   :  { %v4844_v44 = vpack.c.b16 %v4843_v36, %v4843_v36 }
 0x58f   :  { %5650 = vmatmul.mubr.bf16.vlgmr.msra.gmra.mxu1 %v4844_v44 }
 0x64f   :  { %v4928_v25 = vpop.f32.mrf.mxu1 }
 0x650   :  { %v4929_v14 = vadd.f32 %v4928_v25, %v9213_v6 }
 0x651   :  { %v5651_v60 = vpop.f32.mrf.mxu1 }
 0x652   :  { %v4940_v17 = vadd.f32 %v5293_v22, %v4929_v14 }
 0x653   :  { %v4931_v13 = vpop.f32.mrf.mxu1 }
 0x654   :  { %v4941_v28 = vmax.f32 %v4940_v17, 0.0 }
 0x655   :  { %v5652_v1 = vpop.f32.mrf.mxu1 }
 0x656   :  { %v4942_v35 = vpack.c.bf16 %v4941_v28, %v4941_v28 }
 0x658   :  { %5670 = vmatmul.mubr.bf16.vlgmr.msra.gmra.mxu0 %v4942_v35 }
 0x718   :  { %v5031_v3 = vpop.f32.mrf.mxu0 }
 0x719   :  { %v5032_v50 = vadd.f32 %v5294_v11, %v5031_v3 }
 0x71a   :  { %v5671_v58 = vpop.f32.mrf.mxu0 }
 0x71b   :  { %5037 = vst [vmem:[#allocation20] sm:$0xff] %v5032_v50 }
 0x71c   :  { %v5034_v53 = vpop.f32.mrf.mxu0 }
 0x71d   :  { %6789 = shalt.err (!%p6786_p3)
}
 0x71e   :  { %5047 = dma.vmem_to_hbm [thread:$0]  %s5045_s2, 128, %s9307_s26, [#allocation4]   ;;  %v5672_v6 = vpop.f32.mrf.mxu0 }
 0x71f   :  { %6810 = dma.done.wait [#allocation4], 128  }
 0x720   :  { %6811 = vsyncadd [#allocation4], 4294967168 }
 0x721   :  { %5051 = vsyncpa [#allocation3], 1 }
 0x722   :  { %5052 = vsyncpa [#allocation6], 1 }
 0x723   :  { %5053 = vsyncpa [#allocation9], 1 }
 0x724   :  { %5054 = vsyncpa [#allocation12], 1 }
 0x725   :  { %5055 = vsyncpa [#allocation15], 1 }
 0x726   :  { %5056 = vsyncpa [#allocation18], 1 }
 0x727   :  { %5057 = vsyncpa [#allocation4], 1 }

</bundles_post_ra>
